<compile_context>
chip_gen: v7x
topology: tpu7x:2x2x1
jax: 0.10.0
libtpu: 0.0.40
codegen_flags: <defaults>
</compile_context>

<pallas_src>
import functools

import jax
import jax.numpy as jnp
from jax.experimental import pallas as pl
from jax.experimental.pallas import tpu as pltpu


_VMEM = pl.BlockSpec(memory_space=pltpu.MemorySpace.VMEM)


# ----------------------------------------------------------------------------
# Fused Pallas kernel
# ----------------------------------------------------------------------------
def _lstm_cell(gates, h_prev, c_prev, m, H):
    """One LSTM cell update. gates layout is [i, f, o, g] (4H columns), f32."""
    sfo = jax.nn.sigmoid(gates[:, :3 * H])          # i, f, o together
    g_g = jnp.tanh(gates[:, 3 * H:])
    i_g = sfo[:, :H]
    f_g = sfo[:, H:2 * H]
    o_g = sfo[:, 2 * H:]
    c_new = f_g * c_prev + i_g * g_g
    h_new = o_g * jnp.tanh(c_new)
    # pack_padded_sequence semantics: padded steps do not advance the state.
    h = jnp.where(m, h_new, h_prev)
    c = jnp.where(m, c_new, c_prev)
    return h, c


def _sentiment_kernel(len_ref, x_ref, *refs, n_layers, T, B, H, E, out_dim):
    """Whole forward pass (all LSTM layers, both directions, final FC).

    len_ref: (B, 1)  int32 valid lengths
    x_ref:   (T, B, E) f32 embedded input
    per layer l: w_ih (D_in, 8H) bf16   [fwd 4H | bwd 4H], gate order i,f,o,g
                 w_hh_f (H, 4H) bf16
                 w_hh_b (H, 4H) bf16
                 b      (1, 8H) f32     (b_ih + b_hh, fwd | bwd)
    fc_w: (2H, out_dim) bf16, fc_b: (1, out_dim) f32
    out_ref: (B, out_dim) f32
    """
    f32, bf16 = jnp.float32, jnp.bfloat16
    H4, H8 = 4 * H, 8 * H

    # parse refs: 4 per layer, then fc_w, fc_b, then the output ref
    layer_refs = []
    k = 0
    for _ in range(n_layers):
        layer_refs.append((refs[k], refs[k + 1], refs[k + 2], refs[k + 3]))
        k += 4
    fcw_ref, fcb_ref, out_ref = refs[k], refs[k + 1], refs[k + 2]

    lens = len_ref[...]                               # (B, 1) int32
    masks = [lens > t for t in range(T)]              # (B, 1) bool, t valid

    y_f2d = None                                      # (T*B, H) prev-layer fwd outputs
    y_b2d = None                                      # (T*B, H) prev-layer bwd outputs
    h_f_fin = h_b_fin = None

    for l in range(n_layers):
        wih_ref, whhf_ref, whhb_ref, b_ref = layer_refs[l]
        last = (l == n_layers - 1)

        # ---- hoisted input projection: one big matmul per layer ----
        if l == 0:
            x2d = x_ref[...].reshape(T * B, E).astype(bf16)
            xp = jnp.dot(x2d, wih_ref[...], preferred_element_type=f32)
        else:
            # input is [y_fwd | y_bwd]; split the weight rows to avoid a concat
            xp = (jnp.dot(y_f2d.astype(bf16), wih_ref[:H, :],
                          preferred_element_type=f32)
                  + jnp.dot(y_b2d.astype(bf16), wih_ref[H:, :],
                            preferred_element_type=f32))
        xp = (xp + b_ref[...]).reshape(T, B, H8)      # (T, B, 8H) f32

        w_hh_f = whhf_ref[...]                        # (H, 4H) bf16, hoisted load
        w_hh_b = whhb_ref[...]

        h_f = jnp.zeros((B, H), f32)
        c_f = jnp.zeros((B, H), f32)
        h_b = jnp.zeros((B, H), f32)
        c_b = jnp.zeros((B, H), f32)
        yf = [None] * T
        yb = [None] * T

        # ---- fully-unrolled recurrence; only (B,H)@(H,4H) matmuls inside ----
        for i in range(T):
            tf = i
            tb = T - 1 - i
            g_f = xp[tf, :, :H4] + jnp.dot(h_f.astype(bf16), w_hh_f,
                                           preferred_element_type=f32)
            g_b = xp[tb, :, H4:] + jnp.dot(h_b.astype(bf16), w_hh_b,
                                           preferred_element_type=f32)
            h_f, c_f = _lstm_cell(g_f, h_f, c_f, masks[tf], H)
            h_b, c_b = _lstm_cell(g_b, h_b, c_b, masks[tb], H)
            if not last:
                # next layer input (padded positions zeroed, as pad_packed would)
                yf[tf] = jnp.where(masks[tf], h_f, 0.0)
                yb[tb] = jnp.where(masks[tb], h_b, 0.0)

        if not last:
            y_f2d = jnp.stack(yf, axis=0).reshape(T * B, H)
            y_b2d = jnp.stack(yb, axis=0).reshape(T * B, H)
        h_f_fin, h_b_fin = h_f, h_b

    # ---- fused FC on concat(hidden[-2], hidden[-1]); split rows to skip concat
    fcw = fcw_ref[...]                                # (2H, out_dim) bf16
    out = (jnp.dot(h_f_fin.astype(bf16), fcw[:H, :], preferred_element_type=f32)
           + jnp.dot(h_b_fin.astype(bf16), fcw[H:, :], preferred_element_type=f32)
           + fcb_ref[...])
    out_ref[...] = out


# ----------------------------------------------------------------------------
# Wrapper
# ----------------------------------------------------------------------------
def sentiment_pallas(kparams, lengths_col, embedded, n_layers, out_dim):
    T, B, E = embedded.shape
    H = kparams["H"]

    inputs = [lengths_col, embedded]
    for l in range(n_layers):
        lp = kparams["layers"][l]
        inputs += [lp["w_ih"], lp["w_hh_f"], lp["w_hh_b"], lp["b"]]
    inputs += [kparams["fc_w"], kparams["fc_b"]]

    kernel = functools.partial(_sentiment_kernel, n_layers=n_layers, T=T, B=B,
                               H=H, E=E, out_dim=out_dim)
    return pl.pallas_call(
        kernel,
        out_shape=jax.ShapeDtypeStruct((B, out_dim), jnp.float32),
        in_specs=[_VMEM] * len(inputs),
        out_specs=_VMEM,
    )(*inputs)


def sentiment_forward(params, kparams, text, text_lengths, n_layers):
    # embedding lookup + dropout (identity in eval mode) -- JAX glue
    embedded = params["embedding"][text]                     # (T, B, E) f32
    lens_col = text_lengths.astype(jnp.int32).reshape(-1, 1) # (B, 1)
    out_dim = params["fc_b"].shape[1]
    return sentiment_pallas(kparams, lens_col, embedded, n_layers, out_dim)


# ----------------------------------------------------------------------------
# Parameters (PyTorch-equivalent layout) + kernel-format preparation
# ----------------------------------------------------------------------------
def init_params(key, vocab_size, embedding_dim, hidden_dim, output_dim,
                n_layers, pad_idx):
    keys = jax.random.split(key, 3 + 6 * n_layers * 2)
    ki = iter(keys)

    emb = 0.1 * jax.random.normal(next(ki), (vocab_size, embedding_dim),
                                  jnp.float32)
    emb = emb.at[pad_idx].set(0.0)                           # padding_idx row

    lstm = []
    for l in range(n_layers):
        d_in = embedding_dim if l == 0 else 2 * hidden_dim
        layer = {}
        for d in ("fwd", "bwd"):
            # math layout: W_ih^T (D_in,4H), W_hh^T (H,4H); PyTorch gate order i,f,g,o
            w_ih = 0.1 * jax.random.normal(next(ki), (d_in, 4 * hidden_dim),
                                           jnp.float32)
            w_hh = 0.1 * jax.random.normal(next(ki), (hidden_dim, 4 * hidden_dim),
                                           jnp.float32)
            b = 0.1 * jax.random.normal(next(ki), (1, 4 * hidden_dim),
                                        jnp.float32)          # b_ih + b_hh combined
            layer[d] = {"w_ih": w_ih, "w_hh": w_hh, "b": b}
        lstm.append(layer)

    fc_w = 0.1 * jax.random.normal(next(ki), (2 * hidden_dim, output_dim),
                                   jnp.float32)
    fc_b = 0.1 * jax.random.normal(next(ki), (1, output_dim), jnp.float32)

    return {"embedding": emb, "lstm": lstm, "fc_w": fc_w, "fc_b": fc_b}


def prepare_kernel_params(params, hidden_dim, n_layers):
    """Reorder gates to [i,f,o,g], fuse fwd|bwd input weights/biases, cast matmul
    weights to bf16 (f32 accumulation stays in the kernel)."""
    H = hidden_dim

    def reorder(w):      # last dim 4H in [i,f,g,o] -> [i,f,o,g]
        return jnp.concatenate([w[..., :2 * H], w[..., 3 * H:],
                                w[..., 2 * H:3 * H]], axis=-1)

    layers = []
    for l in range(n_layers):
        pf = params["lstm"][l]["fwd"]
        pb = params["lstm"][l]["bwd"]
        w_ih = jnp.concatenate([reorder(pf["w_ih"]), reorder(pb["w_ih"])],
                               axis=1).astype(jnp.bfloat16)          # (D_in, 8H)
        b = jnp.concatenate([reorder(pf["b"]), reorder(pb["b"])], axis=1)  # (1,8H)
        layers.append({
            "w_ih": w_ih,
            "w_hh_f": reorder(pf["w_hh"]).astype(jnp.bfloat16),      # (H, 4H)
            "w_hh_b": reorder(pb["w_hh"]).astype(jnp.bfloat16),
            "b": b.astype(jnp.float32),
        })

    return {"H": H, "layers": layers,
            "fc_w": params["fc_w"].astype(jnp.bfloat16),
            "fc_b": params["fc_b"].astype(jnp.float32)}


# ----------------------------------------------------------------------------
if __name__ == "__main__":
    VOCAB, EMB, HID, OUT = 50, 32, 32, 2
    N_LAYERS, PAD_IDX = 2, 0
    T, B = 8, 8

    key = jax.random.PRNGKey(0)
    k_params, k_text = jax.random.split(key)

    params = init_params(k_params, VOCAB, EMB, HID, OUT, N_LAYERS, PAD_IDX)
    kparams = prepare_kernel_params(params, HID, N_LAYERS)

    # text_lengths sorted descending (pack_padded_sequence convention)
    text_lengths = jnp.array([8, 7, 6, 5, 4, 4, 3, 2], dtype=jnp.int32)
    text = jax.random.randint(k_text, (T, B), 1, VOCAB, dtype=jnp.int32)
    valid = jnp.arange(T)[:, None] < text_lengths[None, :]
    text = jnp.where(valid, text, PAD_IDX)                   # pad with pad_idx

    out = sentiment_forward(params, kparams, text, text_lengths, N_LAYERS)
    out = jax.block_until_ready(out)
    assert out.shape == (B, OUT) and out.dtype == jnp.float32
    assert bool(jnp.all(jnp.isfinite(out)))
    print("KERNEL_OK")
</pallas_src>

<mosaic_0001>
module attributes {stable_mosaic.version = 11 : i64} {
  func.func @_sentiment_kernel(%arg0: memref<8x1xi32, #tpu.memory_space<vmem>>, %arg1: memref<8x8x32xf32, #tpu.memory_space<vmem>>, %arg2: memref<32x256xbf16, #tpu.memory_space<vmem>>, %arg3: memref<32x128xbf16, #tpu.memory_space<vmem>>, %arg4: memref<32x128xbf16, #tpu.memory_space<vmem>>, %arg5: memref<1x256xf32, #tpu.memory_space<vmem>>, %arg6: memref<64x256xbf16, #tpu.memory_space<vmem>>, %arg7: memref<32x128xbf16, #tpu.memory_space<vmem>>, %arg8: memref<32x128xbf16, #tpu.memory_space<vmem>>, %arg9: memref<1x256xf32, #tpu.memory_space<vmem>>, %arg10: memref<64x2xbf16, #tpu.memory_space<vmem>>, %arg11: memref<1x2xf32, #tpu.memory_space<vmem>>, %arg12: memref<8x2xf32, #tpu.memory_space<vmem>>) attributes {dimension_semantics = [], scalar_prefetch = 0 : i64, scratch_operands = 0 : i64, tpu.core_type = #tpu.core_type<tc>} {
    %c0 = arith.constant 0 : index
    %c0_0 = arith.constant 0 : index
    %0 = vector.load %arg0[%c0, %c0_0] : memref<8x1xi32, #tpu.memory_space<vmem>>, vector<8x1xi32>
    %c0_i32 = arith.constant 0 : i32
    %1 = vector.broadcast %c0_i32 : i32 to vector<8x1xi32>
    %2 = arith.cmpi sgt, %0, %1 : vector<8x1xi32>
    %c1_i32 = arith.constant 1 : i32
    %3 = vector.broadcast %c1_i32 : i32 to vector<8x1xi32>
    %4 = arith.cmpi sgt, %0, %3 : vector<8x1xi32>
    %c2_i32 = arith.constant 2 : i32
    %5 = vector.broadcast %c2_i32 : i32 to vector<8x1xi32>
    %6 = arith.cmpi sgt, %0, %5 : vector<8x1xi32>
    %c3_i32 = arith.constant 3 : i32
    %7 = vector.broadcast %c3_i32 : i32 to vector<8x1xi32>
    %8 = arith.cmpi sgt, %0, %7 : vector<8x1xi32>
    %c4_i32 = arith.constant 4 : i32
    %9 = vector.broadcast %c4_i32 : i32 to vector<8x1xi32>
    %10 = arith.cmpi sgt, %0, %9 : vector<8x1xi32>
    %c5_i32 = arith.constant 5 : i32
    %11 = vector.broadcast %c5_i32 : i32 to vector<8x1xi32>
    %12 = arith.cmpi sgt, %0, %11 : vector<8x1xi32>
    %c6_i32 = arith.constant 6 : i32
    %13 = vector.broadcast %c6_i32 : i32 to vector<8x1xi32>
    %14 = arith.cmpi sgt, %0, %13 : vector<8x1xi32>
    %c7_i32 = arith.constant 7 : i32
    %15 = vector.broadcast %c7_i32 : i32 to vector<8x1xi32>
    %16 = arith.cmpi sgt, %0, %15 : vector<8x1xi32>
    %c0_1 = arith.constant 0 : index
    %c0_2 = arith.constant 0 : index
    %c0_3 = arith.constant 0 : index
    %17 = vector.load %arg1[%c0_1, %c0_2, %c0_3] : memref<8x8x32xf32, #tpu.memory_space<vmem>>, vector<8x8x32xf32>
    %18 = vector.shape_cast %17 : vector<8x8x32xf32> to vector<64x32xf32>
    %19 = arith.truncf %18 : vector<64x32xf32> to vector<64x32xbf16>
    %c0_4 = arith.constant 0 : index
    %c0_5 = arith.constant 0 : index
    %20 = vector.load %arg2[%c0_4, %c0_5] : memref<32x256xbf16, #tpu.memory_space<vmem>>, vector<32x256xbf16>
    %cst = arith.constant dense<0.000000e+00> : vector<64x256xf32>
    %21 = tpu.matmul %19, %20, %cst {dimension_numbers = #tpu.dot_dimension_numbers<[1], [0], [0], [1], [0, 0, 1, 1], [], []>} : vector<64x32xbf16>, vector<32x256xbf16>, vector<64x256xf32> -> vector<64x256xf32>
    %c0_6 = arith.constant 0 : index
    %c0_7 = arith.constant 0 : index
    %22 = vector.load %arg5[%c0_6, %c0_7] : memref<1x256xf32, #tpu.memory_space<vmem>>, vector<1x256xf32>
    %23 = vector.broadcast %22 : vector<1x256xf32> to vector<64x256xf32>
    %24 = arith.addf %21, %23 : vector<64x256xf32>
    %25 = vector.shape_cast %24 : vector<64x256xf32> to vector<8x8x256xf32>
    %c0_8 = arith.constant 0 : index
    %c0_9 = arith.constant 0 : index
    %26 = vector.load %arg3[%c0_8, %c0_9] : memref<32x128xbf16, #tpu.memory_space<vmem>>, vector<32x128xbf16>
    %c0_10 = arith.constant 0 : index
    %c0_11 = arith.constant 0 : index
    %27 = vector.load %arg4[%c0_10, %c0_11] : memref<32x128xbf16, #tpu.memory_space<vmem>>, vector<32x128xbf16>
    %cst_12 = arith.constant 0.000000e+00 : f32
    %28 = vector.broadcast %cst_12 : f32 to vector<8x32xf32>
    %cst_13 = arith.constant 0.000000e+00 : f32
    %29 = vector.broadcast %cst_13 : f32 to vector<8x32xf32>
    %cst_14 = arith.constant 0.000000e+00 : f32
    %30 = vector.broadcast %cst_14 : f32 to vector<8x32xf32>
    %cst_15 = arith.constant 0.000000e+00 : f32
    %31 = vector.broadcast %cst_15 : f32 to vector<8x32xf32>
    %32 = vector.extract_strided_slice %25 {offsets = [0, 0, 0], sizes = [1, 8, 128], strides = [1, 1, 1]} : vector<8x8x256xf32> to vector<1x8x128xf32>
    %33 = vector.shape_cast %32 : vector<1x8x128xf32> to vector<8x128xf32>
    %34 = arith.truncf %28 : vector<8x32xf32> to vector<8x32xbf16>
    %cst_16 = arith.constant dense<0.000000e+00> : vector<8x128xf32>
    %35 = tpu.matmul %34, %26, %cst_16 {dimension_numbers = #tpu.dot_dimension_numbers<[1], [0], [0], [1], [0, 0, 1, 1], [], []>} : vector<8x32xbf16>, vector<32x128xbf16>, vector<8x128xf32> -> vector<8x128xf32>
    %36 = arith.addf %33, %35 : vector<8x128xf32>
    %37 = vector.extract_strided_slice %25 {offsets = [7, 0, 128], sizes = [1, 8, 128], strides = [1, 1, 1]} : vector<8x8x256xf32> to vector<1x8x128xf32>
    %38 = vector.shape_cast %37 : vector<1x8x128xf32> to vector<8x128xf32>
    %39 = arith.truncf %30 : vector<8x32xf32> to vector<8x32xbf16>
    %cst_17 = arith.constant dense<0.000000e+00> : vector<8x128xf32>
    %40 = tpu.matmul %39, %27, %cst_17 {dimension_numbers = #tpu.dot_dimension_numbers<[1], [0], [0], [1], [0, 0, 1, 1], [], []>} : vector<8x32xbf16>, vector<32x128xbf16>, vector<8x128xf32> -> vector<8x128xf32>
    %41 = arith.addf %38, %40 : vector<8x128xf32>
    %42 = vector.extract_strided_slice %36 {offsets = [0, 0], sizes = [8, 96], strides = [1, 1]} : vector<8x128xf32> to vector<8x96xf32>
    %43 = arith.negf %42 : vector<8x96xf32>
    %44 = math.exp %43 : vector<8x96xf32>
    %cst_18 = arith.constant 1.000000e+00 : f32
    %45 = vector.broadcast %cst_18 : f32 to vector<8x96xf32>
    %46 = arith.addf %45, %44 : vector<8x96xf32>
    %47 = arith.divf %45, %46 : vector<8x96xf32>
    %48 = vector.extract_strided_slice %36 {offsets = [0, 96], sizes = [8, 32], strides = [1, 1]} : vector<8x128xf32> to vector<8x32xf32>
    %49 = math.tanh %48 : vector<8x32xf32>
    %50 = vector.extract_strided_slice %47 {offsets = [0, 0], sizes = [8, 32], strides = [1, 1]} : vector<8x96xf32> to vector<8x32xf32>
    %51 = vector.extract_strided_slice %47 {offsets = [0, 32], sizes = [8, 32], strides = [1, 1]} : vector<8x96xf32> to vector<8x32xf32>
    %52 = vector.extract_strided_slice %47 {offsets = [0, 64], sizes = [8, 32], strides = [1, 1]} : vector<8x96xf32> to vector<8x32xf32>
    %53 = arith.mulf %51, %29 : vector<8x32xf32>
    %54 = arith.mulf %50, %49 : vector<8x32xf32>
    %55 = arith.addf %53, %54 : vector<8x32xf32>
    %56 = math.tanh %55 : vector<8x32xf32>
    %57 = arith.mulf %52, %56 : vector<8x32xf32>
    %58 = vector.shape_cast %2 : vector<8x1xi1> to vector<8x1xi1>
    %59 = vector.broadcast %58 : vector<8x1xi1> to vector<8x32xi1>
    %60 = arith.select %59, %57, %28 : vector<8x32xi1>, vector<8x32xf32>
    %61 = vector.shape_cast %2 : vector<8x1xi1> to vector<8x1xi1>
    %62 = vector.broadcast %61 : vector<8x1xi1> to vector<8x32xi1>
    %63 = arith.select %62, %55, %29 : vector<8x32xi1>, vector<8x32xf32>
    %64 = vector.extract_strided_slice %41 {offsets = [0, 0], sizes = [8, 96], strides = [1, 1]} : vector<8x128xf32> to vector<8x96xf32>
    %65 = arith.negf %64 : vector<8x96xf32>
    %66 = math.exp %65 : vector<8x96xf32>
    %cst_19 = arith.constant 1.000000e+00 : f32
    %67 = vector.broadcast %cst_19 : f32 to vector<8x96xf32>
    %68 = arith.addf %67, %66 : vector<8x96xf32>
    %69 = arith.divf %67, %68 : vector<8x96xf32>
    %70 = vector.extract_strided_slice %41 {offsets = [0, 96], sizes = [8, 32], strides = [1, 1]} : vector<8x128xf32> to vector<8x32xf32>
    %71 = math.tanh %70 : vector<8x32xf32>
    %72 = vector.extract_strided_slice %69 {offsets = [0, 0], sizes = [8, 32], strides = [1, 1]} : vector<8x96xf32> to vector<8x32xf32>
    %73 = vector.extract_strided_slice %69 {offsets = [0, 32], sizes = [8, 32], strides = [1, 1]} : vector<8x96xf32> to vector<8x32xf32>
    %74 = vector.extract_strided_slice %69 {offsets = [0, 64], sizes = [8, 32], strides = [1, 1]} : vector<8x96xf32> to vector<8x32xf32>
    %75 = arith.mulf %73, %31 : vector<8x32xf32>
    %76 = arith.mulf %72, %71 : vector<8x32xf32>
    %77 = arith.addf %75, %76 : vector<8x32xf32>
    %78 = math.tanh %77 : vector<8x32xf32>
    %79 = arith.mulf %74, %78 : vector<8x32xf32>
    %80 = vector.shape_cast %16 : vector<8x1xi1> to vector<8x1xi1>
    %81 = vector.broadcast %80 : vector<8x1xi1> to vector<8x32xi1>
    %82 = arith.select %81, %79, %30 : vector<8x32xi1>, vector<8x32xf32>
    %83 = vector.shape_cast %16 : vector<8x1xi1> to vector<8x1xi1>
    %84 = vector.broadcast %83 : vector<8x1xi1> to vector<8x32xi1>
    %85 = arith.select %84, %77, %31 : vector<8x32xi1>, vector<8x32xf32>
    %cst_20 = arith.constant 0.000000e+00 : f32
    %86 = vector.shape_cast %2 : vector<8x1xi1> to vector<8x1xi1>
    %87 = vector.broadcast %86 : vector<8x1xi1> to vector<8x32xi1>
    %88 = vector.broadcast %cst_20 : f32 to vector<8x32xf32>
    %89 = arith.select %87, %60, %88 : vector<8x32xi1>, vector<8x32xf32>
    %cst_21 = arith.constant 0.000000e+00 : f32
    %90 = vector.shape_cast %16 : vector<8x1xi1> to vector<8x1xi1>
    %91 = vector.broadcast %90 : vector<8x1xi1> to vector<8x32xi1>
    %92 = vector.broadcast %cst_21 : f32 to vector<8x32xf32>
    %93 = arith.select %91, %82, %92 : vector<8x32xi1>, vector<8x32xf32>
    %94 = vector.extract_strided_slice %25 {offsets = [1, 0, 0], sizes = [1, 8, 128], strides = [1, 1, 1]} : vector<8x8x256xf32> to vector<1x8x128xf32>
    %95 = vector.shape_cast %94 : vector<1x8x128xf32> to vector<8x128xf32>
    %96 = arith.truncf %60 : vector<8x32xf32> to vector<8x32xbf16>
    %cst_22 = arith.constant dense<0.000000e+00> : vector<8x128xf32>
    %97 = tpu.matmul %96, %26, %cst_22 {dimension_numbers = #tpu.dot_dimension_numbers<[1], [0], [0], [1], [0, 0, 1, 1], [], []>} : vector<8x32xbf16>, vector<32x128xbf16>, vector<8x128xf32> -> vector<8x128xf32>
    %98 = arith.addf %95, %97 : vector<8x128xf32>
    %99 = vector.extract_strided_slice %25 {offsets = [6, 0, 128], sizes = [1, 8, 128], strides = [1, 1, 1]} : vector<8x8x256xf32> to vector<1x8x128xf32>
    %100 = vector.shape_cast %99 : vector<1x8x128xf32> to vector<8x128xf32>
    %101 = arith.truncf %82 : vector<8x32xf32> to vector<8x32xbf16>
    %cst_23 = arith.constant dense<0.000000e+00> : vector<8x128xf32>
    %102 = tpu.matmul %101, %27, %cst_23 {dimension_numbers = #tpu.dot_dimension_numbers<[1], [0], [0], [1], [0, 0, 1, 1], [], []>} : vector<8x32xbf16>, vector<32x128xbf16>, vector<8x128xf32> -> vector<8x128xf32>
    %103 = arith.addf %100, %102 : vector<8x128xf32>
    %104 = vector.extract_strided_slice %98 {offsets = [0, 0], sizes = [8, 96], strides = [1, 1]} : vector<8x128xf32> to vector<8x96xf32>
    %105 = arith.negf %104 : vector<8x96xf32>
    %106 = math.exp %105 : vector<8x96xf32>
    %cst_24 = arith.constant 1.000000e+00 : f32
    %107 = vector.broadcast %cst_24 : f32 to vector<8x96xf32>
    %108 = arith.addf %107, %106 : vector<8x96xf32>
    %109 = arith.divf %107, %108 : vector<8x96xf32>
    %110 = vector.extract_strided_slice %98 {offsets = [0, 96], sizes = [8, 32], strides = [1, 1]} : vector<8x128xf32> to vector<8x32xf32>
    %111 = math.tanh %110 : vector<8x32xf32>
    %112 = vector.extract_strided_slice %109 {offsets = [0, 0], sizes = [8, 32], strides = [1, 1]} : vector<8x96xf32> to vector<8x32xf32>
    %113 = vector.extract_strided_slice %109 {offsets = [0, 32], sizes = [8, 32], strides = [1, 1]} : vector<8x96xf32> to vector<8x32xf32>
    %114 = vector.extract_strided_slice %109 {offsets = [0, 64], sizes = [8, 32], strides = [1, 1]} : vector<8x96xf32> to vector<8x32xf32>
    %115 = arith.mulf %113, %63 : vector<8x32xf32>
    %116 = arith.mulf %112, %111 : vector<8x32xf32>
    %117 = arith.addf %115, %116 : vector<8x32xf32>
    %118 = math.tanh %117 : vector<8x32xf32>
    %119 = arith.mulf %114, %118 : vector<8x32xf32>
    %120 = vector.shape_cast %4 : vector<8x1xi1> to vector<8x1xi1>
    %121 = vector.broadcast %120 : vector<8x1xi1> to vector<8x32xi1>
    %122 = arith.select %121, %119, %60 : vector<8x32xi1>, vector<8x32xf32>
    %123 = vector.shape_cast %4 : vector<8x1xi1> to vector<8x1xi1>
    %124 = vector.broadcast %123 : vector<8x1xi1> to vector<8x32xi1>
    %125 = arith.select %124, %117, %63 : vector<8x32xi1>, vector<8x32xf32>
    %126 = vector.extract_strided_slice %103 {offsets = [0, 0], sizes = [8, 96], strides = [1, 1]} : vector<8x128xf32> to vector<8x96xf32>
    %127 = arith.negf %126 : vector<8x96xf32>
    %128 = math.exp %127 : vector<8x96xf32>
    %cst_25 = arith.constant 1.000000e+00 : f32
    %129 = vector.broadcast %cst_25 : f32 to vector<8x96xf32>
    %130 = arith.addf %129, %128 : vector<8x96xf32>
    %131 = arith.divf %129, %130 : vector<8x96xf32>
    %132 = vector.extract_strided_slice %103 {offsets = [0, 96], sizes = [8, 32], strides = [1, 1]} : vector<8x128xf32> to vector<8x32xf32>
    %133 = math.tanh %132 : vector<8x32xf32>
    %134 = vector.extract_strided_slice %131 {offsets = [0, 0], sizes = [8, 32], strides = [1, 1]} : vector<8x96xf32> to vector<8x32xf32>
    %135 = vector.extract_strided_slice %131 {offsets = [0, 32], sizes = [8, 32], strides = [1, 1]} : vector<8x96xf32> to vector<8x32xf32>
    %136 = vector.extract_strided_slice %131 {offsets = [0, 64], sizes = [8, 32], strides = [1, 1]} : vector<8x96xf32> to vector<8x32xf32>
    %137 = arith.mulf %135, %85 : vector<8x32xf32>
    %138 = arith.mulf %134, %133 : vector<8x32xf32>
    %139 = arith.addf %137, %138 : vector<8x32xf32>
    %140 = math.tanh %139 : vector<8x32xf32>
    %141 = arith.mulf %136, %140 : vector<8x32xf32>
    %142 = vector.shape_cast %14 : vector<8x1xi1> to vector<8x1xi1>
    %143 = vector.broadcast %142 : vector<8x1xi1> to vector<8x32xi1>
    %144 = arith.select %143, %141, %82 : vector<8x32xi1>, vector<8x32xf32>
    %145 = vector.shape_cast %14 : vector<8x1xi1> to vector<8x1xi1>
    %146 = vector.broadcast %145 : vector<8x1xi1> to vector<8x32xi1>
    %147 = arith.select %146, %139, %85 : vector<8x32xi1>, vector<8x32xf32>
    %cst_26 = arith.constant 0.000000e+00 : f32
    %148 = vector.shape_cast %4 : vector<8x1xi1> to vector<8x1xi1>
    %149 = vector.broadcast %148 : vector<8x1xi1> to vector<8x32xi1>
    %150 = vector.broadcast %cst_26 : f32 to vector<8x32xf32>
    %151 = arith.select %149, %122, %150 : vector<8x32xi1>, vector<8x32xf32>
    %cst_27 = arith.constant 0.000000e+00 : f32
    %152 = vector.shape_cast %14 : vector<8x1xi1> to vector<8x1xi1>
    %153 = vector.broadcast %152 : vector<8x1xi1> to vector<8x32xi1>
    %154 = vector.broadcast %cst_27 : f32 to vector<8x32xf32>
    %155 = arith.select %153, %144, %154 : vector<8x32xi1>, vector<8x32xf32>
    %156 = vector.extract_strided_slice %25 {offsets = [2, 0, 0], sizes = [1, 8, 128], strides = [1, 1, 1]} : vector<8x8x256xf32> to vector<1x8x128xf32>
    %157 = vector.shape_cast %156 : vector<1x8x128xf32> to vector<8x128xf32>
    %158 = arith.truncf %122 : vector<8x32xf32> to vector<8x32xbf16>
    %cst_28 = arith.constant dense<0.000000e+00> : vector<8x128xf32>
    %159 = tpu.matmul %158, %26, %cst_28 {dimension_numbers = #tpu.dot_dimension_numbers<[1], [0], [0], [1], [0, 0, 1, 1], [], []>} : vector<8x32xbf16>, vector<32x128xbf16>, vector<8x128xf32> -> vector<8x128xf32>
    %160 = arith.addf %157, %159 : vector<8x128xf32>
    %161 = vector.extract_strided_slice %25 {offsets = [5, 0, 128], sizes = [1, 8, 128], strides = [1, 1, 1]} : vector<8x8x256xf32> to vector<1x8x128xf32>
    %162 = vector.shape_cast %161 : vector<1x8x128xf32> to vector<8x128xf32>
    %163 = arith.truncf %144 : vector<8x32xf32> to vector<8x32xbf16>
    %cst_29 = arith.constant dense<0.000000e+00> : vector<8x128xf32>
    %164 = tpu.matmul %163, %27, %cst_29 {dimension_numbers = #tpu.dot_dimension_numbers<[1], [0], [0], [1], [0, 0, 1, 1], [], []>} : vector<8x32xbf16>, vector<32x128xbf16>, vector<8x128xf32> -> vector<8x128xf32>
    %165 = arith.addf %162, %164 : vector<8x128xf32>
    %166 = vector.extract_strided_slice %160 {offsets = [0, 0], sizes = [8, 96], strides = [1, 1]} : vector<8x128xf32> to vector<8x96xf32>
    %167 = arith.negf %166 : vector<8x96xf32>
    %168 = math.exp %167 : vector<8x96xf32>
    %cst_30 = arith.constant 1.000000e+00 : f32
    %169 = vector.broadcast %cst_30 : f32 to vector<8x96xf32>
    %170 = arith.addf %169, %168 : vector<8x96xf32>
    %171 = arith.divf %169, %170 : vector<8x96xf32>
    %172 = vector.extract_strided_slice %160 {offsets = [0, 96], sizes = [8, 32], strides = [1, 1]} : vector<8x128xf32> to vector<8x32xf32>
    %173 = math.tanh %172 : vector<8x32xf32>
    %174 = vector.extract_strided_slice %171 {offsets = [0, 0], sizes = [8, 32], strides = [1, 1]} : vector<8x96xf32> to vector<8x32xf32>
    %175 = vector.extract_strided_slice %171 {offsets = [0, 32], sizes = [8, 32], strides = [1, 1]} : vector<8x96xf32> to vector<8x32xf32>
    %176 = vector.extract_strided_slice %171 {offsets = [0, 64], sizes = [8, 32], strides = [1, 1]} : vector<8x96xf32> to vector<8x32xf32>
    %177 = arith.mulf %175, %125 : vector<8x32xf32>
    %178 = arith.mulf %174, %173 : vector<8x32xf32>
    %179 = arith.addf %177, %178 : vector<8x32xf32>
    %180 = math.tanh %179 : vector<8x32xf32>
    %181 = arith.mulf %176, %180 : vector<8x32xf32>
    %182 = vector.shape_cast %6 : vector<8x1xi1> to vector<8x1xi1>
    %183 = vector.broadcast %182 : vector<8x1xi1> to vector<8x32xi1>
    %184 = arith.select %183, %181, %122 : vector<8x32xi1>, vector<8x32xf32>
    %185 = vector.shape_cast %6 : vector<8x1xi1> to vector<8x1xi1>
    %186 = vector.broadcast %185 : vector<8x1xi1> to vector<8x32xi1>
    %187 = arith.select %186, %179, %125 : vector<8x32xi1>, vector<8x32xf32>
    %188 = vector.extract_strided_slice %165 {offsets = [0, 0], sizes = [8, 96], strides = [1, 1]} : vector<8x128xf32> to vector<8x96xf32>
    %189 = arith.negf %188 : vector<8x96xf32>
    %190 = math.exp %189 : vector<8x96xf32>
    %cst_31 = arith.constant 1.000000e+00 : f32
    %191 = vector.broadcast %cst_31 : f32 to vector<8x96xf32>
    %192 = arith.addf %191, %190 : vector<8x96xf32>
    %193 = arith.divf %191, %192 : vector<8x96xf32>
    %194 = vector.extract_strided_slice %165 {offsets = [0, 96], sizes = [8, 32], strides = [1, 1]} : vector<8x128xf32> to vector<8x32xf32>
    %195 = math.tanh %194 : vector<8x32xf32>
    %196 = vector.extract_strided_slice %193 {offsets = [0, 0], sizes = [8, 32], strides = [1, 1]} : vector<8x96xf32> to vector<8x32xf32>
    %197 = vector.extract_strided_slice %193 {offsets = [0, 32], sizes = [8, 32], strides = [1, 1]} : vector<8x96xf32> to vector<8x32xf32>
    %198 = vector.extract_strided_slice %193 {offsets = [0, 64], sizes = [8, 32], strides = [1, 1]} : vector<8x96xf32> to vector<8x32xf32>
    %199 = arith.mulf %197, %147 : vector<8x32xf32>
    %200 = arith.mulf %196, %195 : vector<8x32xf32>
    %201 = arith.addf %199, %200 : vector<8x32xf32>
    %202 = math.tanh %201 : vector<8x32xf32>
    %203 = arith.mulf %198, %202 : vector<8x32xf32>
    %204 = vector.shape_cast %12 : vector<8x1xi1> to vector<8x1xi1>
    %205 = vector.broadcast %204 : vector<8x1xi1> to vector<8x32xi1>
    %206 = arith.select %205, %203, %144 : vector<8x32xi1>, vector<8x32xf32>
    %207 = vector.shape_cast %12 : vector<8x1xi1> to vector<8x1xi1>
    %208 = vector.broadcast %207 : vector<8x1xi1> to vector<8x32xi1>
    %209 = arith.select %208, %201, %147 : vector<8x32xi1>, vector<8x32xf32>
    %cst_32 = arith.constant 0.000000e+00 : f32
    %210 = vector.shape_cast %6 : vector<8x1xi1> to vector<8x1xi1>
    %211 = vector.broadcast %210 : vector<8x1xi1> to vector<8x32xi1>
    %212 = vector.broadcast %cst_32 : f32 to vector<8x32xf32>
    %213 = arith.select %211, %184, %212 : vector<8x32xi1>, vector<8x32xf32>
    %cst_33 = arith.constant 0.000000e+00 : f32
    %214 = vector.shape_cast %12 : vector<8x1xi1> to vector<8x1xi1>
    %215 = vector.broadcast %214 : vector<8x1xi1> to vector<8x32xi1>
    %216 = vector.broadcast %cst_33 : f32 to vector<8x32xf32>
    %217 = arith.select %215, %206, %216 : vector<8x32xi1>, vector<8x32xf32>
    %218 = vector.extract_strided_slice %25 {offsets = [3, 0, 0], sizes = [1, 8, 128], strides = [1, 1, 1]} : vector<8x8x256xf32> to vector<1x8x128xf32>
    %219 = vector.shape_cast %218 : vector<1x8x128xf32> to vector<8x128xf32>
    %220 = arith.truncf %184 : vector<8x32xf32> to vector<8x32xbf16>
    %cst_34 = arith.constant dense<0.000000e+00> : vector<8x128xf32>
    %221 = tpu.matmul %220, %26, %cst_34 {dimension_numbers = #tpu.dot_dimension_numbers<[1], [0], [0], [1], [0, 0, 1, 1], [], []>} : vector<8x32xbf16>, vector<32x128xbf16>, vector<8x128xf32> -> vector<8x128xf32>
    %222 = arith.addf %219, %221 : vector<8x128xf32>
    %223 = vector.extract_strided_slice %25 {offsets = [4, 0, 128], sizes = [1, 8, 128], strides = [1, 1, 1]} : vector<8x8x256xf32> to vector<1x8x128xf32>
    %224 = vector.shape_cast %223 : vector<1x8x128xf32> to vector<8x128xf32>
    %225 = arith.truncf %206 : vector<8x32xf32> to vector<8x32xbf16>
    %cst_35 = arith.constant dense<0.000000e+00> : vector<8x128xf32>
    %226 = tpu.matmul %225, %27, %cst_35 {dimension_numbers = #tpu.dot_dimension_numbers<[1], [0], [0], [1], [0, 0, 1, 1], [], []>} : vector<8x32xbf16>, vector<32x128xbf16>, vector<8x128xf32> -> vector<8x128xf32>
    %227 = arith.addf %224, %226 : vector<8x128xf32>
    %228 = vector.extract_strided_slice %222 {offsets = [0, 0], sizes = [8, 96], strides = [1, 1]} : vector<8x128xf32> to vector<8x96xf32>
    %229 = arith.negf %228 : vector<8x96xf32>
    %230 = math.exp %229 : vector<8x96xf32>
    %cst_36 = arith.constant 1.000000e+00 : f32
    %231 = vector.broadcast %cst_36 : f32 to vector<8x96xf32>
    %232 = arith.addf %231, %230 : vector<8x96xf32>
    %233 = arith.divf %231, %232 : vector<8x96xf32>
    %234 = vector.extract_strided_slice %222 {offsets = [0, 96], sizes = [8, 32], strides = [1, 1]} : vector<8x128xf32> to vector<8x32xf32>
    %235 = math.tanh %234 : vector<8x32xf32>
    %236 = vector.extract_strided_slice %233 {offsets = [0, 0], sizes = [8, 32], strides = [1, 1]} : vector<8x96xf32> to vector<8x32xf32>
    %237 = vector.extract_strided_slice %233 {offsets = [0, 32], sizes = [8, 32], strides = [1, 1]} : vector<8x96xf32> to vector<8x32xf32>
    %238 = vector.extract_strided_slice %233 {offsets = [0, 64], sizes = [8, 32], strides = [1, 1]} : vector<8x96xf32> to vector<8x32xf32>
    %239 = arith.mulf %237, %187 : vector<8x32xf32>
    %240 = arith.mulf %236, %235 : vector<8x32xf32>
    %241 = arith.addf %239, %240 : vector<8x32xf32>
    %242 = math.tanh %241 : vector<8x32xf32>
    %243 = arith.mulf %238, %242 : vector<8x32xf32>
    %244 = vector.shape_cast %8 : vector<8x1xi1> to vector<8x1xi1>
    %245 = vector.broadcast %244 : vector<8x1xi1> to vector<8x32xi1>
    %246 = arith.select %245, %243, %184 : vector<8x32xi1>, vector<8x32xf32>
    %247 = vector.shape_cast %8 : vector<8x1xi1> to vector<8x1xi1>
    %248 = vector.broadcast %247 : vector<8x1xi1> to vector<8x32xi1>
    %249 = arith.select %248, %241, %187 : vector<8x32xi1>, vector<8x32xf32>
    %250 = vector.extract_strided_slice %227 {offsets = [0, 0], sizes = [8, 96], strides = [1, 1]} : vector<8x128xf32> to vector<8x96xf32>
    %251 = arith.negf %250 : vector<8x96xf32>
    %252 = math.exp %251 : vector<8x96xf32>
    %cst_37 = arith.constant 1.000000e+00 : f32
    %253 = vector.broadcast %cst_37 : f32 to vector<8x96xf32>
    %254 = arith.addf %253, %252 : vector<8x96xf32>
    %255 = arith.divf %253, %254 : vector<8x96xf32>
    %256 = vector.extract_strided_slice %227 {offsets = [0, 96], sizes = [8, 32], strides = [1, 1]} : vector<8x128xf32> to vector<8x32xf32>
    %257 = math.tanh %256 : vector<8x32xf32>
    %258 = vector.extract_strided_slice %255 {offsets = [0, 0], sizes = [8, 32], strides = [1, 1]} : vector<8x96xf32> to vector<8x32xf32>
    %259 = vector.extract_strided_slice %255 {offsets = [0, 32], sizes = [8, 32], strides = [1, 1]} : vector<8x96xf32> to vector<8x32xf32>
    %260 = vector.extract_strided_slice %255 {offsets = [0, 64], sizes = [8, 32], strides = [1, 1]} : vector<8x96xf32> to vector<8x32xf32>
    %261 = arith.mulf %259, %209 : vector<8x32xf32>
    %262 = arith.mulf %258, %257 : vector<8x32xf32>
    %263 = arith.addf %261, %262 : vector<8x32xf32>
    %264 = math.tanh %263 : vector<8x32xf32>
    %265 = arith.mulf %260, %264 : vector<8x32xf32>
    %266 = vector.shape_cast %10 : vector<8x1xi1> to vector<8x1xi1>
    %267 = vector.broadcast %266 : vector<8x1xi1> to vector<8x32xi1>
    %268 = arith.select %267, %265, %206 : vector<8x32xi1>, vector<8x32xf32>
    %269 = vector.shape_cast %10 : vector<8x1xi1> to vector<8x1xi1>
    %270 = vector.broadcast %269 : vector<8x1xi1> to vector<8x32xi1>
    %271 = arith.select %270, %263, %209 : vector<8x32xi1>, vector<8x32xf32>
    %cst_38 = arith.constant 0.000000e+00 : f32
    %272 = vector.shape_cast %8 : vector<8x1xi1> to vector<8x1xi1>
    %273 = vector.broadcast %272 : vector<8x1xi1> to vector<8x32xi1>
    %274 = vector.broadcast %cst_38 : f32 to vector<8x32xf32>
    %275 = arith.select %273, %246, %274 : vector<8x32xi1>, vector<8x32xf32>
    %cst_39 = arith.constant 0.000000e+00 : f32
    %276 = vector.shape_cast %10 : vector<8x1xi1> to vector<8x1xi1>
    %277 = vector.broadcast %276 : vector<8x1xi1> to vector<8x32xi1>
    %278 = vector.broadcast %cst_39 : f32 to vector<8x32xf32>
    %279 = arith.select %277, %268, %278 : vector<8x32xi1>, vector<8x32xf32>
    %280 = vector.extract_strided_slice %25 {offsets = [4, 0, 0], sizes = [1, 8, 128], strides = [1, 1, 1]} : vector<8x8x256xf32> to vector<1x8x128xf32>
    %281 = vector.shape_cast %280 : vector<1x8x128xf32> to vector<8x128xf32>
    %282 = arith.truncf %246 : vector<8x32xf32> to vector<8x32xbf16>
    %cst_40 = arith.constant dense<0.000000e+00> : vector<8x128xf32>
    %283 = tpu.matmul %282, %26, %cst_40 {dimension_numbers = #tpu.dot_dimension_numbers<[1], [0], [0], [1], [0, 0, 1, 1], [], []>} : vector<8x32xbf16>, vector<32x128xbf16>, vector<8x128xf32> -> vector<8x128xf32>
    %284 = arith.addf %281, %283 : vector<8x128xf32>
    %285 = vector.extract_strided_slice %25 {offsets = [3, 0, 128], sizes = [1, 8, 128], strides = [1, 1, 1]} : vector<8x8x256xf32> to vector<1x8x128xf32>
    %286 = vector.shape_cast %285 : vector<1x8x128xf32> to vector<8x128xf32>
    %287 = arith.truncf %268 : vector<8x32xf32> to vector<8x32xbf16>
    %cst_41 = arith.constant dense<0.000000e+00> : vector<8x128xf32>
    %288 = tpu.matmul %287, %27, %cst_41 {dimension_numbers = #tpu.dot_dimension_numbers<[1], [0], [0], [1], [0, 0, 1, 1], [], []>} : vector<8x32xbf16>, vector<32x128xbf16>, vector<8x128xf32> -> vector<8x128xf32>
    %289 = arith.addf %286, %288 : vector<8x128xf32>
    %290 = vector.extract_strided_slice %284 {offsets = [0, 0], sizes = [8, 96], strides = [1, 1]} : vector<8x128xf32> to vector<8x96xf32>
    %291 = arith.negf %290 : vector<8x96xf32>
    %292 = math.exp %291 : vector<8x96xf32>
    %cst_42 = arith.constant 1.000000e+00 : f32
    %293 = vector.broadcast %cst_42 : f32 to vector<8x96xf32>
    %294 = arith.addf %293, %292 : vector<8x96xf32>
    %295 = arith.divf %293, %294 : vector<8x96xf32>
    %296 = vector.extract_strided_slice %284 {offsets = [0, 96], sizes = [8, 32], strides = [1, 1]} : vector<8x128xf32> to vector<8x32xf32>
    %297 = math.tanh %296 : vector<8x32xf32>
    %298 = vector.extract_strided_slice %295 {offsets = [0, 0], sizes = [8, 32], strides = [1, 1]} : vector<8x96xf32> to vector<8x32xf32>
    %299 = vector.extract_strided_slice %295 {offsets = [0, 32], sizes = [8, 32], strides = [1, 1]} : vector<8x96xf32> to vector<8x32xf32>
    %300 = vector.extract_strided_slice %295 {offsets = [0, 64], sizes = [8, 32], strides = [1, 1]} : vector<8x96xf32> to vector<8x32xf32>
    %301 = arith.mulf %299, %249 : vector<8x32xf32>
    %302 = arith.mulf %298, %297 : vector<8x32xf32>
    %303 = arith.addf %301, %302 : vector<8x32xf32>
    %304 = math.tanh %303 : vector<8x32xf32>
    %305 = arith.mulf %300, %304 : vector<8x32xf32>
    %306 = vector.shape_cast %10 : vector<8x1xi1> to vector<8x1xi1>
    %307 = vector.broadcast %306 : vector<8x1xi1> to vector<8x32xi1>
    %308 = arith.select %307, %305, %246 : vector<8x32xi1>, vector<8x32xf32>
    %309 = vector.shape_cast %10 : vector<8x1xi1> to vector<8x1xi1>
    %310 = vector.broadcast %309 : vector<8x1xi1> to vector<8x32xi1>
    %311 = arith.select %310, %303, %249 : vector<8x32xi1>, vector<8x32xf32>
    %312 = vector.extract_strided_slice %289 {offsets = [0, 0], sizes = [8, 96], strides = [1, 1]} : vector<8x128xf32> to vector<8x96xf32>
    %313 = arith.negf %312 : vector<8x96xf32>
    %314 = math.exp %313 : vector<8x96xf32>
    %cst_43 = arith.constant 1.000000e+00 : f32
    %315 = vector.broadcast %cst_43 : f32 to vector<8x96xf32>
    %316 = arith.addf %315, %314 : vector<8x96xf32>
    %317 = arith.divf %315, %316 : vector<8x96xf32>
    %318 = vector.extract_strided_slice %289 {offsets = [0, 96], sizes = [8, 32], strides = [1, 1]} : vector<8x128xf32> to vector<8x32xf32>
    %319 = math.tanh %318 : vector<8x32xf32>
    %320 = vector.extract_strided_slice %317 {offsets = [0, 0], sizes = [8, 32], strides = [1, 1]} : vector<8x96xf32> to vector<8x32xf32>
    %321 = vector.extract_strided_slice %317 {offsets = [0, 32], sizes = [8, 32], strides = [1, 1]} : vector<8x96xf32> to vector<8x32xf32>
    %322 = vector.extract_strided_slice %317 {offsets = [0, 64], sizes = [8, 32], strides = [1, 1]} : vector<8x96xf32> to vector<8x32xf32>
    %323 = arith.mulf %321, %271 : vector<8x32xf32>
    %324 = arith.mulf %320, %319 : vector<8x32xf32>
    %325 = arith.addf %323, %324 : vector<8x32xf32>
    %326 = math.tanh %325 : vector<8x32xf32>
    %327 = arith.mulf %322, %326 : vector<8x32xf32>
    %328 = vector.shape_cast %8 : vector<8x1xi1> to vector<8x1xi1>
    %329 = vector.broadcast %328 : vector<8x1xi1> to vector<8x32xi1>
    %330 = arith.select %329, %327, %268 : vector<8x32xi1>, vector<8x32xf32>
    %331 = vector.shape_cast %8 : vector<8x1xi1> to vector<8x1xi1>
    %332 = vector.broadcast %331 : vector<8x1xi1> to vector<8x32xi1>
    %333 = arith.select %332, %325, %271 : vector<8x32xi1>, vector<8x32xf32>
    %cst_44 = arith.constant 0.000000e+00 : f32
    %334 = vector.shape_cast %10 : vector<8x1xi1> to vector<8x1xi1>
    %335 = vector.broadcast %334 : vector<8x1xi1> to vector<8x32xi1>
    %336 = vector.broadcast %cst_44 : f32 to vector<8x32xf32>
    %337 = arith.select %335, %308, %336 : vector<8x32xi1>, vector<8x32xf32>
    %cst_45 = arith.constant 0.000000e+00 : f32
    %338 = vector.shape_cast %8 : vector<8x1xi1> to vector<8x1xi1>
    %339 = vector.broadcast %338 : vector<8x1xi1> to vector<8x32xi1>
    %340 = vector.broadcast %cst_45 : f32 to vector<8x32xf32>
    %341 = arith.select %339, %330, %340 : vector<8x32xi1>, vector<8x32xf32>
    %342 = vector.extract_strided_slice %25 {offsets = [5, 0, 0], sizes = [1, 8, 128], strides = [1, 1, 1]} : vector<8x8x256xf32> to vector<1x8x128xf32>
    %343 = vector.shape_cast %342 : vector<1x8x128xf32> to vector<8x128xf32>
    %344 = arith.truncf %308 : vector<8x32xf32> to vector<8x32xbf16>
    %cst_46 = arith.constant dense<0.000000e+00> : vector<8x128xf32>
    %345 = tpu.matmul %344, %26, %cst_46 {dimension_numbers = #tpu.dot_dimension_numbers<[1], [0], [0], [1], [0, 0, 1, 1], [], []>} : vector<8x32xbf16>, vector<32x128xbf16>, vector<8x128xf32> -> vector<8x128xf32>
    %346 = arith.addf %343, %345 : vector<8x128xf32>
    %347 = vector.extract_strided_slice %25 {offsets = [2, 0, 128], sizes = [1, 8, 128], strides = [1, 1, 1]} : vector<8x8x256xf32> to vector<1x8x128xf32>
    %348 = vector.shape_cast %347 : vector<1x8x128xf32> to vector<8x128xf32>
    %349 = arith.truncf %330 : vector<8x32xf32> to vector<8x32xbf16>
    %cst_47 = arith.constant dense<0.000000e+00> : vector<8x128xf32>
    %350 = tpu.matmul %349, %27, %cst_47 {dimension_numbers = #tpu.dot_dimension_numbers<[1], [0], [0], [1], [0, 0, 1, 1], [], []>} : vector<8x32xbf16>, vector<32x128xbf16>, vector<8x128xf32> -> vector<8x128xf32>
    %351 = arith.addf %348, %350 : vector<8x128xf32>
    %352 = vector.extract_strided_slice %346 {offsets = [0, 0], sizes = [8, 96], strides = [1, 1]} : vector<8x128xf32> to vector<8x96xf32>
    %353 = arith.negf %352 : vector<8x96xf32>
    %354 = math.exp %353 : vector<8x96xf32>
    %cst_48 = arith.constant 1.000000e+00 : f32
    %355 = vector.broadcast %cst_48 : f32 to vector<8x96xf32>
    %356 = arith.addf %355, %354 : vector<8x96xf32>
    %357 = arith.divf %355, %356 : vector<8x96xf32>
    %358 = vector.extract_strided_slice %346 {offsets = [0, 96], sizes = [8, 32], strides = [1, 1]} : vector<8x128xf32> to vector<8x32xf32>
    %359 = math.tanh %358 : vector<8x32xf32>
    %360 = vector.extract_strided_slice %357 {offsets = [0, 0], sizes = [8, 32], strides = [1, 1]} : vector<8x96xf32> to vector<8x32xf32>
    %361 = vector.extract_strided_slice %357 {offsets = [0, 32], sizes = [8, 32], strides = [1, 1]} : vector<8x96xf32> to vector<8x32xf32>
    %362 = vector.extract_strided_slice %357 {offsets = [0, 64], sizes = [8, 32], strides = [1, 1]} : vector<8x96xf32> to vector<8x32xf32>
    %363 = arith.mulf %361, %311 : vector<8x32xf32>
    %364 = arith.mulf %360, %359 : vector<8x32xf32>
    %365 = arith.addf %363, %364 : vector<8x32xf32>
    %366 = math.tanh %365 : vector<8x32xf32>
    %367 = arith.mulf %362, %366 : vector<8x32xf32>
    %368 = vector.shape_cast %12 : vector<8x1xi1> to vector<8x1xi1>
    %369 = vector.broadcast %368 : vector<8x1xi1> to vector<8x32xi1>
    %370 = arith.select %369, %367, %308 : vector<8x32xi1>, vector<8x32xf32>
    %371 = vector.shape_cast %12 : vector<8x1xi1> to vector<8x1xi1>
    %372 = vector.broadcast %371 : vector<8x1xi1> to vector<8x32xi1>
    %373 = arith.select %372, %365, %311 : vector<8x32xi1>, vector<8x32xf32>
    %374 = vector.extract_strided_slice %351 {offsets = [0, 0], sizes = [8, 96], strides = [1, 1]} : vector<8x128xf32> to vector<8x96xf32>
    %375 = arith.negf %374 : vector<8x96xf32>
    %376 = math.exp %375 : vector<8x96xf32>
    %cst_49 = arith.constant 1.000000e+00 : f32
    %377 = vector.broadcast %cst_49 : f32 to vector<8x96xf32>
    %378 = arith.addf %377, %376 : vector<8x96xf32>
    %379 = arith.divf %377, %378 : vector<8x96xf32>
    %380 = vector.extract_strided_slice %351 {offsets = [0, 96], sizes = [8, 32], strides = [1, 1]} : vector<8x128xf32> to vector<8x32xf32>
    %381 = math.tanh %380 : vector<8x32xf32>
    %382 = vector.extract_strided_slice %379 {offsets = [0, 0], sizes = [8, 32], strides = [1, 1]} : vector<8x96xf32> to vector<8x32xf32>
    %383 = vector.extract_strided_slice %379 {offsets = [0, 32], sizes = [8, 32], strides = [1, 1]} : vector<8x96xf32> to vector<8x32xf32>
    %384 = vector.extract_strided_slice %379 {offsets = [0, 64], sizes = [8, 32], strides = [1, 1]} : vector<8x96xf32> to vector<8x32xf32>
    %385 = arith.mulf %383, %333 : vector<8x32xf32>
    %386 = arith.mulf %382, %381 : vector<8x32xf32>
    %387 = arith.addf %385, %386 : vector<8x32xf32>
    %388 = math.tanh %387 : vector<8x32xf32>
    %389 = arith.mulf %384, %388 : vector<8x32xf32>
    %390 = vector.shape_cast %6 : vector<8x1xi1> to vector<8x1xi1>
    %391 = vector.broadcast %390 : vector<8x1xi1> to vector<8x32xi1>
    %392 = arith.select %391, %389, %330 : vector<8x32xi1>, vector<8x32xf32>
    %393 = vector.shape_cast %6 : vector<8x1xi1> to vector<8x1xi1>
    %394 = vector.broadcast %393 : vector<8x1xi1> to vector<8x32xi1>
    %395 = arith.select %394, %387, %333 : vector<8x32xi1>, vector<8x32xf32>
    %cst_50 = arith.constant 0.000000e+00 : f32
    %396 = vector.shape_cast %12 : vector<8x1xi1> to vector<8x1xi1>
    %397 = vector.broadcast %396 : vector<8x1xi1> to vector<8x32xi1>
    %398 = vector.broadcast %cst_50 : f32 to vector<8x32xf32>
    %399 = arith.select %397, %370, %398 : vector<8x32xi1>, vector<8x32xf32>
    %cst_51 = arith.constant 0.000000e+00 : f32
    %400 = vector.shape_cast %6 : vector<8x1xi1> to vector<8x1xi1>
    %401 = vector.broadcast %400 : vector<8x1xi1> to vector<8x32xi1>
    %402 = vector.broadcast %cst_51 : f32 to vector<8x32xf32>
    %403 = arith.select %401, %392, %402 : vector<8x32xi1>, vector<8x32xf32>
    %404 = vector.extract_strided_slice %25 {offsets = [6, 0, 0], sizes = [1, 8, 128], strides = [1, 1, 1]} : vector<8x8x256xf32> to vector<1x8x128xf32>
    %405 = vector.shape_cast %404 : vector<1x8x128xf32> to vector<8x128xf32>
    %406 = arith.truncf %370 : vector<8x32xf32> to vector<8x32xbf16>
    %cst_52 = arith.constant dense<0.000000e+00> : vector<8x128xf32>
    %407 = tpu.matmul %406, %26, %cst_52 {dimension_numbers = #tpu.dot_dimension_numbers<[1], [0], [0], [1], [0, 0, 1, 1], [], []>} : vector<8x32xbf16>, vector<32x128xbf16>, vector<8x128xf32> -> vector<8x128xf32>
    %408 = arith.addf %405, %407 : vector<8x128xf32>
    %409 = vector.extract_strided_slice %25 {offsets = [1, 0, 128], sizes = [1, 8, 128], strides = [1, 1, 1]} : vector<8x8x256xf32> to vector<1x8x128xf32>
    %410 = vector.shape_cast %409 : vector<1x8x128xf32> to vector<8x128xf32>
    %411 = arith.truncf %392 : vector<8x32xf32> to vector<8x32xbf16>
    %cst_53 = arith.constant dense<0.000000e+00> : vector<8x128xf32>
    %412 = tpu.matmul %411, %27, %cst_53 {dimension_numbers = #tpu.dot_dimension_numbers<[1], [0], [0], [1], [0, 0, 1, 1], [], []>} : vector<8x32xbf16>, vector<32x128xbf16>, vector<8x128xf32> -> vector<8x128xf32>
    %413 = arith.addf %410, %412 : vector<8x128xf32>
    %414 = vector.extract_strided_slice %408 {offsets = [0, 0], sizes = [8, 96], strides = [1, 1]} : vector<8x128xf32> to vector<8x96xf32>
    %415 = arith.negf %414 : vector<8x96xf32>
    %416 = math.exp %415 : vector<8x96xf32>
    %cst_54 = arith.constant 1.000000e+00 : f32
    %417 = vector.broadcast %cst_54 : f32 to vector<8x96xf32>
    %418 = arith.addf %417, %416 : vector<8x96xf32>
    %419 = arith.divf %417, %418 : vector<8x96xf32>
    %420 = vector.extract_strided_slice %408 {offsets = [0, 96], sizes = [8, 32], strides = [1, 1]} : vector<8x128xf32> to vector<8x32xf32>
    %421 = math.tanh %420 : vector<8x32xf32>
    %422 = vector.extract_strided_slice %419 {offsets = [0, 0], sizes = [8, 32], strides = [1, 1]} : vector<8x96xf32> to vector<8x32xf32>
    %423 = vector.extract_strided_slice %419 {offsets = [0, 32], sizes = [8, 32], strides = [1, 1]} : vector<8x96xf32> to vector<8x32xf32>
    %424 = vector.extract_strided_slice %419 {offsets = [0, 64], sizes = [8, 32], strides = [1, 1]} : vector<8x96xf32> to vector<8x32xf32>
    %425 = arith.mulf %423, %373 : vector<8x32xf32>
    %426 = arith.mulf %422, %421 : vector<8x32xf32>
    %427 = arith.addf %425, %426 : vector<8x32xf32>
    %428 = math.tanh %427 : vector<8x32xf32>
    %429 = arith.mulf %424, %428 : vector<8x32xf32>
    %430 = vector.shape_cast %14 : vector<8x1xi1> to vector<8x1xi1>
    %431 = vector.broadcast %430 : vector<8x1xi1> to vector<8x32xi1>
    %432 = arith.select %431, %429, %370 : vector<8x32xi1>, vector<8x32xf32>
    %433 = vector.shape_cast %14 : vector<8x1xi1> to vector<8x1xi1>
    %434 = vector.broadcast %433 : vector<8x1xi1> to vector<8x32xi1>
    %435 = arith.select %434, %427, %373 : vector<8x32xi1>, vector<8x32xf32>
    %436 = vector.extract_strided_slice %413 {offsets = [0, 0], sizes = [8, 96], strides = [1, 1]} : vector<8x128xf32> to vector<8x96xf32>
    %437 = arith.negf %436 : vector<8x96xf32>
    %438 = math.exp %437 : vector<8x96xf32>
    %cst_55 = arith.constant 1.000000e+00 : f32
    %439 = vector.broadcast %cst_55 : f32 to vector<8x96xf32>
    %440 = arith.addf %439, %438 : vector<8x96xf32>
    %441 = arith.divf %439, %440 : vector<8x96xf32>
    %442 = vector.extract_strided_slice %413 {offsets = [0, 96], sizes = [8, 32], strides = [1, 1]} : vector<8x128xf32> to vector<8x32xf32>
    %443 = math.tanh %442 : vector<8x32xf32>
    %444 = vector.extract_strided_slice %441 {offsets = [0, 0], sizes = [8, 32], strides = [1, 1]} : vector<8x96xf32> to vector<8x32xf32>
    %445 = vector.extract_strided_slice %441 {offsets = [0, 32], sizes = [8, 32], strides = [1, 1]} : vector<8x96xf32> to vector<8x32xf32>
    %446 = vector.extract_strided_slice %441 {offsets = [0, 64], sizes = [8, 32], strides = [1, 1]} : vector<8x96xf32> to vector<8x32xf32>
    %447 = arith.mulf %445, %395 : vector<8x32xf32>
    %448 = arith.mulf %444, %443 : vector<8x32xf32>
    %449 = arith.addf %447, %448 : vector<8x32xf32>
    %450 = math.tanh %449 : vector<8x32xf32>
    %451 = arith.mulf %446, %450 : vector<8x32xf32>
    %452 = vector.shape_cast %4 : vector<8x1xi1> to vector<8x1xi1>
    %453 = vector.broadcast %452 : vector<8x1xi1> to vector<8x32xi1>
    %454 = arith.select %453, %451, %392 : vector<8x32xi1>, vector<8x32xf32>
    %455 = vector.shape_cast %4 : vector<8x1xi1> to vector<8x1xi1>
    %456 = vector.broadcast %455 : vector<8x1xi1> to vector<8x32xi1>
    %457 = arith.select %456, %449, %395 : vector<8x32xi1>, vector<8x32xf32>
    %cst_56 = arith.constant 0.000000e+00 : f32
    %458 = vector.shape_cast %14 : vector<8x1xi1> to vector<8x1xi1>
    %459 = vector.broadcast %458 : vector<8x1xi1> to vector<8x32xi1>
    %460 = vector.broadcast %cst_56 : f32 to vector<8x32xf32>
    %461 = arith.select %459, %432, %460 : vector<8x32xi1>, vector<8x32xf32>
    %cst_57 = arith.constant 0.000000e+00 : f32
    %462 = vector.shape_cast %4 : vector<8x1xi1> to vector<8x1xi1>
    %463 = vector.broadcast %462 : vector<8x1xi1> to vector<8x32xi1>
    %464 = vector.broadcast %cst_57 : f32 to vector<8x32xf32>
    %465 = arith.select %463, %454, %464 : vector<8x32xi1>, vector<8x32xf32>
    %466 = vector.extract_strided_slice %25 {offsets = [7, 0, 0], sizes = [1, 8, 128], strides = [1, 1, 1]} : vector<8x8x256xf32> to vector<1x8x128xf32>
    %467 = vector.shape_cast %466 : vector<1x8x128xf32> to vector<8x128xf32>
    %468 = arith.truncf %432 : vector<8x32xf32> to vector<8x32xbf16>
    %cst_58 = arith.constant dense<0.000000e+00> : vector<8x128xf32>
    %469 = tpu.matmul %468, %26, %cst_58 {dimension_numbers = #tpu.dot_dimension_numbers<[1], [0], [0], [1], [0, 0, 1, 1], [], []>} : vector<8x32xbf16>, vector<32x128xbf16>, vector<8x128xf32> -> vector<8x128xf32>
    %470 = arith.addf %467, %469 : vector<8x128xf32>
    %471 = vector.extract_strided_slice %25 {offsets = [0, 0, 128], sizes = [1, 8, 128], strides = [1, 1, 1]} : vector<8x8x256xf32> to vector<1x8x128xf32>
    %472 = vector.shape_cast %471 : vector<1x8x128xf32> to vector<8x128xf32>
    %473 = arith.truncf %454 : vector<8x32xf32> to vector<8x32xbf16>
    %cst_59 = arith.constant dense<0.000000e+00> : vector<8x128xf32>
    %474 = tpu.matmul %473, %27, %cst_59 {dimension_numbers = #tpu.dot_dimension_numbers<[1], [0], [0], [1], [0, 0, 1, 1], [], []>} : vector<8x32xbf16>, vector<32x128xbf16>, vector<8x128xf32> -> vector<8x128xf32>
    %475 = arith.addf %472, %474 : vector<8x128xf32>
    %476 = vector.extract_strided_slice %470 {offsets = [0, 0], sizes = [8, 96], strides = [1, 1]} : vector<8x128xf32> to vector<8x96xf32>
    %477 = arith.negf %476 : vector<8x96xf32>
    %478 = math.exp %477 : vector<8x96xf32>
    %cst_60 = arith.constant 1.000000e+00 : f32
    %479 = vector.broadcast %cst_60 : f32 to vector<8x96xf32>
    %480 = arith.addf %479, %478 : vector<8x96xf32>
    %481 = arith.divf %479, %480 : vector<8x96xf32>
    %482 = vector.extract_strided_slice %470 {offsets = [0, 96], sizes = [8, 32], strides = [1, 1]} : vector<8x128xf32> to vector<8x32xf32>
    %483 = math.tanh %482 : vector<8x32xf32>
    %484 = vector.extract_strided_slice %481 {offsets = [0, 0], sizes = [8, 32], strides = [1, 1]} : vector<8x96xf32> to vector<8x32xf32>
    %485 = vector.extract_strided_slice %481 {offsets = [0, 32], sizes = [8, 32], strides = [1, 1]} : vector<8x96xf32> to vector<8x32xf32>
    %486 = vector.extract_strided_slice %481 {offsets = [0, 64], sizes = [8, 32], strides = [1, 1]} : vector<8x96xf32> to vector<8x32xf32>
    %487 = arith.mulf %485, %435 : vector<8x32xf32>
    %488 = arith.mulf %484, %483 : vector<8x32xf32>
    %489 = arith.addf %487, %488 : vector<8x32xf32>
    %490 = math.tanh %489 : vector<8x32xf32>
    %491 = arith.mulf %486, %490 : vector<8x32xf32>
    %492 = vector.shape_cast %16 : vector<8x1xi1> to vector<8x1xi1>
    %493 = vector.broadcast %492 : vector<8x1xi1> to vector<8x32xi1>
    %494 = arith.select %493, %491, %432 : vector<8x32xi1>, vector<8x32xf32>
    %495 = vector.extract_strided_slice %475 {offsets = [0, 0], sizes = [8, 96], strides = [1, 1]} : vector<8x128xf32> to vector<8x96xf32>
    %496 = arith.negf %495 : vector<8x96xf32>
    %497 = math.exp %496 : vector<8x96xf32>
    %cst_61 = arith.constant 1.000000e+00 : f32
    %498 = vector.broadcast %cst_61 : f32 to vector<8x96xf32>
    %499 = arith.addf %498, %497 : vector<8x96xf32>
    %500 = arith.divf %498, %499 : vector<8x96xf32>
    %501 = vector.extract_strided_slice %475 {offsets = [0, 96], sizes = [8, 32], strides = [1, 1]} : vector<8x128xf32> to vector<8x32xf32>
    %502 = math.tanh %501 : vector<8x32xf32>
    %503 = vector.extract_strided_slice %500 {offsets = [0, 0], sizes = [8, 32], strides = [1, 1]} : vector<8x96xf32> to vector<8x32xf32>
    %504 = vector.extract_strided_slice %500 {offsets = [0, 32], sizes = [8, 32], strides = [1, 1]} : vector<8x96xf32> to vector<8x32xf32>
    %505 = vector.extract_strided_slice %500 {offsets = [0, 64], sizes = [8, 32], strides = [1, 1]} : vector<8x96xf32> to vector<8x32xf32>
    %506 = arith.mulf %504, %457 : vector<8x32xf32>
    %507 = arith.mulf %503, %502 : vector<8x32xf32>
    %508 = arith.addf %506, %507 : vector<8x32xf32>
    %509 = math.tanh %508 : vector<8x32xf32>
    %510 = arith.mulf %505, %509 : vector<8x32xf32>
    %511 = vector.shape_cast %2 : vector<8x1xi1> to vector<8x1xi1>
    %512 = vector.broadcast %511 : vector<8x1xi1> to vector<8x32xi1>
    %513 = arith.select %512, %510, %454 : vector<8x32xi1>, vector<8x32xf32>
    %cst_62 = arith.constant 0.000000e+00 : f32
    %514 = vector.shape_cast %16 : vector<8x1xi1> to vector<8x1xi1>
    %515 = vector.broadcast %514 : vector<8x1xi1> to vector<8x32xi1>
    %516 = vector.broadcast %cst_62 : f32 to vector<8x32xf32>
    %517 = arith.select %515, %494, %516 : vector<8x32xi1>, vector<8x32xf32>
    %cst_63 = arith.constant 0.000000e+00 : f32
    %518 = vector.shape_cast %2 : vector<8x1xi1> to vector<8x1xi1>
    %519 = vector.broadcast %518 : vector<8x1xi1> to vector<8x32xi1>
    %520 = vector.broadcast %cst_63 : f32 to vector<8x32xf32>
    %521 = arith.select %519, %513, %520 : vector<8x32xi1>, vector<8x32xf32>
    %522 = vector.shape_cast %89 : vector<8x32xf32> to vector<1x8x32xf32>
    %523 = vector.shape_cast %151 : vector<8x32xf32> to vector<1x8x32xf32>
    %524 = vector.shape_cast %213 : vector<8x32xf32> to vector<1x8x32xf32>
    %525 = vector.shape_cast %275 : vector<8x32xf32> to vector<1x8x32xf32>
    %526 = vector.shape_cast %337 : vector<8x32xf32> to vector<1x8x32xf32>
    %527 = vector.shape_cast %399 : vector<8x32xf32> to vector<1x8x32xf32>
    %528 = vector.shape_cast %461 : vector<8x32xf32> to vector<1x8x32xf32>
    %529 = vector.shape_cast %517 : vector<8x32xf32> to vector<1x8x32xf32>
    %530 = tpu.concatenate %522, %523, %524, %525, %526, %527, %528, %529 in 0 : vector<1x8x32xf32>, vector<1x8x32xf32>, vector<1x8x32xf32>, vector<1x8x32xf32>, vector<1x8x32xf32>, vector<1x8x32xf32>, vector<1x8x32xf32>, vector<1x8x32xf32> -> vector<8x8x32xf32>
    %531 = vector.shape_cast %530 : vector<8x8x32xf32> to vector<64x32xf32>
    %532 = vector.shape_cast %521 : vector<8x32xf32> to vector<1x8x32xf32>
    %533 = vector.shape_cast %465 : vector<8x32xf32> to vector<1x8x32xf32>
    %534 = vector.shape_cast %403 : vector<8x32xf32> to vector<1x8x32xf32>
    %535 = vector.shape_cast %341 : vector<8x32xf32> to vector<1x8x32xf32>
    %536 = vector.shape_cast %279 : vector<8x32xf32> to vector<1x8x32xf32>
    %537 = vector.shape_cast %217 : vector<8x32xf32> to vector<1x8x32xf32>
    %538 = vector.shape_cast %155 : vector<8x32xf32> to vector<1x8x32xf32>
    %539 = vector.shape_cast %93 : vector<8x32xf32> to vector<1x8x32xf32>
    %540 = tpu.concatenate %532, %533, %534, %535, %536, %537, %538, %539 in 0 : vector<1x8x32xf32>, vector<1x8x32xf32>, vector<1x8x32xf32>, vector<1x8x32xf32>, vector<1x8x32xf32>, vector<1x8x32xf32>, vector<1x8x32xf32>, vector<1x8x32xf32> -> vector<8x8x32xf32>
    %541 = vector.shape_cast %540 : vector<8x8x32xf32> to vector<64x32xf32>
    %542 = arith.truncf %531 : vector<64x32xf32> to vector<64x32xbf16>
    %c0_64 = arith.constant 0 : index
    %c0_65 = arith.constant 0 : index
    %543 = vector.load %arg6[%c0_64, %c0_65] : memref<64x256xbf16, #tpu.memory_space<vmem>>, vector<32x256xbf16>
    %cst_66 = arith.constant dense<0.000000e+00> : vector<64x256xf32>
    %544 = tpu.matmul %542, %543, %cst_66 {dimension_numbers = #tpu.dot_dimension_numbers<[1], [0], [0], [1], [0, 0, 1, 1], [], []>} : vector<64x32xbf16>, vector<32x256xbf16>, vector<64x256xf32> -> vector<64x256xf32>
    %545 = arith.truncf %541 : vector<64x32xf32> to vector<64x32xbf16>
    %c32 = arith.constant 32 : index
    %c0_67 = arith.constant 0 : index
    %546 = vector.load %arg6[%c32, %c0_67] : memref<64x256xbf16, #tpu.memory_space<vmem>>, vector<32x256xbf16>
    %cst_68 = arith.constant dense<0.000000e+00> : vector<64x256xf32>
    %547 = tpu.matmul %545, %546, %cst_68 {dimension_numbers = #tpu.dot_dimension_numbers<[1], [0], [0], [1], [0, 0, 1, 1], [], []>} : vector<64x32xbf16>, vector<32x256xbf16>, vector<64x256xf32> -> vector<64x256xf32>
    %548 = arith.addf %544, %547 : vector<64x256xf32>
    %c0_69 = arith.constant 0 : index
    %c0_70 = arith.constant 0 : index
    %549 = vector.load %arg9[%c0_69, %c0_70] : memref<1x256xf32, #tpu.memory_space<vmem>>, vector<1x256xf32>
    %550 = vector.broadcast %549 : vector<1x256xf32> to vector<64x256xf32>
    %551 = arith.addf %548, %550 : vector<64x256xf32>
    %552 = vector.shape_cast %551 : vector<64x256xf32> to vector<8x8x256xf32>
    %c0_71 = arith.constant 0 : index
    %c0_72 = arith.constant 0 : index
    %553 = vector.load %arg7[%c0_71, %c0_72] : memref<32x128xbf16, #tpu.memory_space<vmem>>, vector<32x128xbf16>
    %c0_73 = arith.constant 0 : index
    %c0_74 = arith.constant 0 : index
    %554 = vector.load %arg8[%c0_73, %c0_74] : memref<32x128xbf16, #tpu.memory_space<vmem>>, vector<32x128xbf16>
    %cst_75 = arith.constant 0.000000e+00 : f32
    %555 = vector.broadcast %cst_75 : f32 to vector<8x32xf32>
    %cst_76 = arith.constant 0.000000e+00 : f32
    %556 = vector.broadcast %cst_76 : f32 to vector<8x32xf32>
    %cst_77 = arith.constant 0.000000e+00 : f32
    %557 = vector.broadcast %cst_77 : f32 to vector<8x32xf32>
    %cst_78 = arith.constant 0.000000e+00 : f32
    %558 = vector.broadcast %cst_78 : f32 to vector<8x32xf32>
    %559 = vector.extract_strided_slice %552 {offsets = [0, 0, 0], sizes = [1, 8, 128], strides = [1, 1, 1]} : vector<8x8x256xf32> to vector<1x8x128xf32>
    %560 = vector.shape_cast %559 : vector<1x8x128xf32> to vector<8x128xf32>
    %561 = arith.truncf %555 : vector<8x32xf32> to vector<8x32xbf16>
    %cst_79 = arith.constant dense<0.000000e+00> : vector<8x128xf32>
    %562 = tpu.matmul %561, %553, %cst_79 {dimension_numbers = #tpu.dot_dimension_numbers<[1], [0], [0], [1], [0, 0, 1, 1], [], []>} : vector<8x32xbf16>, vector<32x128xbf16>, vector<8x128xf32> -> vector<8x128xf32>
    %563 = arith.addf %560, %562 : vector<8x128xf32>
    %564 = vector.extract_strided_slice %552 {offsets = [7, 0, 128], sizes = [1, 8, 128], strides = [1, 1, 1]} : vector<8x8x256xf32> to vector<1x8x128xf32>
    %565 = vector.shape_cast %564 : vector<1x8x128xf32> to vector<8x128xf32>
    %566 = arith.truncf %557 : vector<8x32xf32> to vector<8x32xbf16>
    %cst_80 = arith.constant dense<0.000000e+00> : vector<8x128xf32>
    %567 = tpu.matmul %566, %554, %cst_80 {dimension_numbers = #tpu.dot_dimension_numbers<[1], [0], [0], [1], [0, 0, 1, 1], [], []>} : vector<8x32xbf16>, vector<32x128xbf16>, vector<8x128xf32> -> vector<8x128xf32>
    %568 = arith.addf %565, %567 : vector<8x128xf32>
    %569 = vector.extract_strided_slice %563 {offsets = [0, 0], sizes = [8, 96], strides = [1, 1]} : vector<8x128xf32> to vector<8x96xf32>
    %570 = arith.negf %569 : vector<8x96xf32>
    %571 = math.exp %570 : vector<8x96xf32>
    %cst_81 = arith.constant 1.000000e+00 : f32
    %572 = vector.broadcast %cst_81 : f32 to vector<8x96xf32>
    %573 = arith.addf %572, %571 : vector<8x96xf32>
    %574 = arith.divf %572, %573 : vector<8x96xf32>
    %575 = vector.extract_strided_slice %563 {offsets = [0, 96], sizes = [8, 32], strides = [1, 1]} : vector<8x128xf32> to vector<8x32xf32>
    %576 = math.tanh %575 : vector<8x32xf32>
    %577 = vector.extract_strided_slice %574 {offsets = [0, 0], sizes = [8, 32], strides = [1, 1]} : vector<8x96xf32> to vector<8x32xf32>
    %578 = vector.extract_strided_slice %574 {offsets = [0, 32], sizes = [8, 32], strides = [1, 1]} : vector<8x96xf32> to vector<8x32xf32>
    %579 = vector.extract_strided_slice %574 {offsets = [0, 64], sizes = [8, 32], strides = [1, 1]} : vector<8x96xf32> to vector<8x32xf32>
    %580 = arith.mulf %578, %556 : vector<8x32xf32>
    %581 = arith.mulf %577, %576 : vector<8x32xf32>
    %582 = arith.addf %580, %581 : vector<8x32xf32>
    %583 = math.tanh %582 : vector<8x32xf32>
    %584 = arith.mulf %579, %583 : vector<8x32xf32>
    %585 = vector.shape_cast %2 : vector<8x1xi1> to vector<8x1xi1>
    %586 = vector.broadcast %585 : vector<8x1xi1> to vector<8x32xi1>
    %587 = arith.select %586, %584, %555 : vector<8x32xi1>, vector<8x32xf32>
    %588 = vector.shape_cast %2 : vector<8x1xi1> to vector<8x1xi1>
    %589 = vector.broadcast %588 : vector<8x1xi1> to vector<8x32xi1>
    %590 = arith.select %589, %582, %556 : vector<8x32xi1>, vector<8x32xf32>
    %591 = vector.extract_strided_slice %568 {offsets = [0, 0], sizes = [8, 96], strides = [1, 1]} : vector<8x128xf32> to vector<8x96xf32>
    %592 = arith.negf %591 : vector<8x96xf32>
    %593 = math.exp %592 : vector<8x96xf32>
    %cst_82 = arith.constant 1.000000e+00 : f32
    %594 = vector.broadcast %cst_82 : f32 to vector<8x96xf32>
    %595 = arith.addf %594, %593 : vector<8x96xf32>
    %596 = arith.divf %594, %595 : vector<8x96xf32>
    %597 = vector.extract_strided_slice %568 {offsets = [0, 96], sizes = [8, 32], strides = [1, 1]} : vector<8x128xf32> to vector<8x32xf32>
    %598 = math.tanh %597 : vector<8x32xf32>
    %599 = vector.extract_strided_slice %596 {offsets = [0, 0], sizes = [8, 32], strides = [1, 1]} : vector<8x96xf32> to vector<8x32xf32>
    %600 = vector.extract_strided_slice %596 {offsets = [0, 32], sizes = [8, 32], strides = [1, 1]} : vector<8x96xf32> to vector<8x32xf32>
    %601 = vector.extract_strided_slice %596 {offsets = [0, 64], sizes = [8, 32], strides = [1, 1]} : vector<8x96xf32> to vector<8x32xf32>
    %602 = arith.mulf %600, %558 : vector<8x32xf32>
    %603 = arith.mulf %599, %598 : vector<8x32xf32>
    %604 = arith.addf %602, %603 : vector<8x32xf32>
    %605 = math.tanh %604 : vector<8x32xf32>
    %606 = arith.mulf %601, %605 : vector<8x32xf32>
    %607 = vector.shape_cast %16 : vector<8x1xi1> to vector<8x1xi1>
    %608 = vector.broadcast %607 : vector<8x1xi1> to vector<8x32xi1>
    %609 = arith.select %608, %606, %557 : vector<8x32xi1>, vector<8x32xf32>
    %610 = vector.shape_cast %16 : vector<8x1xi1> to vector<8x1xi1>
    %611 = vector.broadcast %610 : vector<8x1xi1> to vector<8x32xi1>
    %612 = arith.select %611, %604, %558 : vector<8x32xi1>, vector<8x32xf32>
    %613 = vector.extract_strided_slice %552 {offsets = [1, 0, 0], sizes = [1, 8, 128], strides = [1, 1, 1]} : vector<8x8x256xf32> to vector<1x8x128xf32>
    %614 = vector.shape_cast %613 : vector<1x8x128xf32> to vector<8x128xf32>
    %615 = arith.truncf %587 : vector<8x32xf32> to vector<8x32xbf16>
    %cst_83 = arith.constant dense<0.000000e+00> : vector<8x128xf32>
    %616 = tpu.matmul %615, %553, %cst_83 {dimension_numbers = #tpu.dot_dimension_numbers<[1], [0], [0], [1], [0, 0, 1, 1], [], []>} : vector<8x32xbf16>, vector<32x128xbf16>, vector<8x128xf32> -> vector<8x128xf32>
    %617 = arith.addf %614, %616 : vector<8x128xf32>
    %618 = vector.extract_strided_slice %552 {offsets = [6, 0, 128], sizes = [1, 8, 128], strides = [1, 1, 1]} : vector<8x8x256xf32> to vector<1x8x128xf32>
    %619 = vector.shape_cast %618 : vector<1x8x128xf32> to vector<8x128xf32>
    %620 = arith.truncf %609 : vector<8x32xf32> to vector<8x32xbf16>
    %cst_84 = arith.constant dense<0.000000e+00> : vector<8x128xf32>
    %621 = tpu.matmul %620, %554, %cst_84 {dimension_numbers = #tpu.dot_dimension_numbers<[1], [0], [0], [1], [0, 0, 1, 1], [], []>} : vector<8x32xbf16>, vector<32x128xbf16>, vector<8x128xf32> -> vector<8x128xf32>
    %622 = arith.addf %619, %621 : vector<8x128xf32>
    %623 = vector.extract_strided_slice %617 {offsets = [0, 0], sizes = [8, 96], strides = [1, 1]} : vector<8x128xf32> to vector<8x96xf32>
    %624 = arith.negf %623 : vector<8x96xf32>
    %625 = math.exp %624 : vector<8x96xf32>
    %cst_85 = arith.constant 1.000000e+00 : f32
    %626 = vector.broadcast %cst_85 : f32 to vector<8x96xf32>
    %627 = arith.addf %626, %625 : vector<8x96xf32>
    %628 = arith.divf %626, %627 : vector<8x96xf32>
    %629 = vector.extract_strided_slice %617 {offsets = [0, 96], sizes = [8, 32], strides = [1, 1]} : vector<8x128xf32> to vector<8x32xf32>
    %630 = math.tanh %629 : vector<8x32xf32>
    %631 = vector.extract_strided_slice %628 {offsets = [0, 0], sizes = [8, 32], strides = [1, 1]} : vector<8x96xf32> to vector<8x32xf32>
    %632 = vector.extract_strided_slice %628 {offsets = [0, 32], sizes = [8, 32], strides = [1, 1]} : vector<8x96xf32> to vector<8x32xf32>
    %633 = vector.extract_strided_slice %628 {offsets = [0, 64], sizes = [8, 32], strides = [1, 1]} : vector<8x96xf32> to vector<8x32xf32>
    %634 = arith.mulf %632, %590 : vector<8x32xf32>
    %635 = arith.mulf %631, %630 : vector<8x32xf32>
    %636 = arith.addf %634, %635 : vector<8x32xf32>
    %637 = math.tanh %636 : vector<8x32xf32>
    %638 = arith.mulf %633, %637 : vector<8x32xf32>
    %639 = vector.shape_cast %4 : vector<8x1xi1> to vector<8x1xi1>
    %640 = vector.broadcast %639 : vector<8x1xi1> to vector<8x32xi1>
    %641 = arith.select %640, %638, %587 : vector<8x32xi1>, vector<8x32xf32>
    %642 = vector.shape_cast %4 : vector<8x1xi1> to vector<8x1xi1>
    %643 = vector.broadcast %642 : vector<8x1xi1> to vector<8x32xi1>
    %644 = arith.select %643, %636, %590 : vector<8x32xi1>, vector<8x32xf32>
    %645 = vector.extract_strided_slice %622 {offsets = [0, 0], sizes = [8, 96], strides = [1, 1]} : vector<8x128xf32> to vector<8x96xf32>
    %646 = arith.negf %645 : vector<8x96xf32>
    %647 = math.exp %646 : vector<8x96xf32>
    %cst_86 = arith.constant 1.000000e+00 : f32
    %648 = vector.broadcast %cst_86 : f32 to vector<8x96xf32>
    %649 = arith.addf %648, %647 : vector<8x96xf32>
    %650 = arith.divf %648, %649 : vector<8x96xf32>
    %651 = vector.extract_strided_slice %622 {offsets = [0, 96], sizes = [8, 32], strides = [1, 1]} : vector<8x128xf32> to vector<8x32xf32>
    %652 = math.tanh %651 : vector<8x32xf32>
    %653 = vector.extract_strided_slice %650 {offsets = [0, 0], sizes = [8, 32], strides = [1, 1]} : vector<8x96xf32> to vector<8x32xf32>
    %654 = vector.extract_strided_slice %650 {offsets = [0, 32], sizes = [8, 32], strides = [1, 1]} : vector<8x96xf32> to vector<8x32xf32>
    %655 = vector.extract_strided_slice %650 {offsets = [0, 64], sizes = [8, 32], strides = [1, 1]} : vector<8x96xf32> to vector<8x32xf32>
    %656 = arith.mulf %654, %612 : vector<8x32xf32>
    %657 = arith.mulf %653, %652 : vector<8x32xf32>
    %658 = arith.addf %656, %657 : vector<8x32xf32>
    %659 = math.tanh %658 : vector<8x32xf32>
    %660 = arith.mulf %655, %659 : vector<8x32xf32>
    %661 = vector.shape_cast %14 : vector<8x1xi1> to vector<8x1xi1>
    %662 = vector.broadcast %661 : vector<8x1xi1> to vector<8x32xi1>
    %663 = arith.select %662, %660, %609 : vector<8x32xi1>, vector<8x32xf32>
    %664 = vector.shape_cast %14 : vector<8x1xi1> to vector<8x1xi1>
    %665 = vector.broadcast %664 : vector<8x1xi1> to vector<8x32xi1>
    %666 = arith.select %665, %658, %612 : vector<8x32xi1>, vector<8x32xf32>
    %667 = vector.extract_strided_slice %552 {offsets = [2, 0, 0], sizes = [1, 8, 128], strides = [1, 1, 1]} : vector<8x8x256xf32> to vector<1x8x128xf32>
    %668 = vector.shape_cast %667 : vector<1x8x128xf32> to vector<8x128xf32>
    %669 = arith.truncf %641 : vector<8x32xf32> to vector<8x32xbf16>
    %cst_87 = arith.constant dense<0.000000e+00> : vector<8x128xf32>
    %670 = tpu.matmul %669, %553, %cst_87 {dimension_numbers = #tpu.dot_dimension_numbers<[1], [0], [0], [1], [0, 0, 1, 1], [], []>} : vector<8x32xbf16>, vector<32x128xbf16>, vector<8x128xf32> -> vector<8x128xf32>
    %671 = arith.addf %668, %670 : vector<8x128xf32>
    %672 = vector.extract_strided_slice %552 {offsets = [5, 0, 128], sizes = [1, 8, 128], strides = [1, 1, 1]} : vector<8x8x256xf32> to vector<1x8x128xf32>
    %673 = vector.shape_cast %672 : vector<1x8x128xf32> to vector<8x128xf32>
    %674 = arith.truncf %663 : vector<8x32xf32> to vector<8x32xbf16>
    %cst_88 = arith.constant dense<0.000000e+00> : vector<8x128xf32>
    %675 = tpu.matmul %674, %554, %cst_88 {dimension_numbers = #tpu.dot_dimension_numbers<[1], [0], [0], [1], [0, 0, 1, 1], [], []>} : vector<8x32xbf16>, vector<32x128xbf16>, vector<8x128xf32> -> vector<8x128xf32>
    %676 = arith.addf %673, %675 : vector<8x128xf32>
    %677 = vector.extract_strided_slice %671 {offsets = [0, 0], sizes = [8, 96], strides = [1, 1]} : vector<8x128xf32> to vector<8x96xf32>
    %678 = arith.negf %677 : vector<8x96xf32>
    %679 = math.exp %678 : vector<8x96xf32>
    %cst_89 = arith.constant 1.000000e+00 : f32
    %680 = vector.broadcast %cst_89 : f32 to vector<8x96xf32>
    %681 = arith.addf %680, %679 : vector<8x96xf32>
    %682 = arith.divf %680, %681 : vector<8x96xf32>
    %683 = vector.extract_strided_slice %671 {offsets = [0, 96], sizes = [8, 32], strides = [1, 1]} : vector<8x128xf32> to vector<8x32xf32>
    %684 = math.tanh %683 : vector<8x32xf32>
    %685 = vector.extract_strided_slice %682 {offsets = [0, 0], sizes = [8, 32], strides = [1, 1]} : vector<8x96xf32> to vector<8x32xf32>
    %686 = vector.extract_strided_slice %682 {offsets = [0, 32], sizes = [8, 32], strides = [1, 1]} : vector<8x96xf32> to vector<8x32xf32>
    %687 = vector.extract_strided_slice %682 {offsets = [0, 64], sizes = [8, 32], strides = [1, 1]} : vector<8x96xf32> to vector<8x32xf32>
    %688 = arith.mulf %686, %644 : vector<8x32xf32>
    %689 = arith.mulf %685, %684 : vector<8x32xf32>
    %690 = arith.addf %688, %689 : vector<8x32xf32>
    %691 = math.tanh %690 : vector<8x32xf32>
    %692 = arith.mulf %687, %691 : vector<8x32xf32>
    %693 = vector.shape_cast %6 : vector<8x1xi1> to vector<8x1xi1>
    %694 = vector.broadcast %693 : vector<8x1xi1> to vector<8x32xi1>
    %695 = arith.select %694, %692, %641 : vector<8x32xi1>, vector<8x32xf32>
    %696 = vector.shape_cast %6 : vector<8x1xi1> to vector<8x1xi1>
    %697 = vector.broadcast %696 : vector<8x1xi1> to vector<8x32xi1>
    %698 = arith.select %697, %690, %644 : vector<8x32xi1>, vector<8x32xf32>
    %699 = vector.extract_strided_slice %676 {offsets = [0, 0], sizes = [8, 96], strides = [1, 1]} : vector<8x128xf32> to vector<8x96xf32>
    %700 = arith.negf %699 : vector<8x96xf32>
    %701 = math.exp %700 : vector<8x96xf32>
    %cst_90 = arith.constant 1.000000e+00 : f32
    %702 = vector.broadcast %cst_90 : f32 to vector<8x96xf32>
    %703 = arith.addf %702, %701 : vector<8x96xf32>
    %704 = arith.divf %702, %703 : vector<8x96xf32>
    %705 = vector.extract_strided_slice %676 {offsets = [0, 96], sizes = [8, 32], strides = [1, 1]} : vector<8x128xf32> to vector<8x32xf32>
    %706 = math.tanh %705 : vector<8x32xf32>
    %707 = vector.extract_strided_slice %704 {offsets = [0, 0], sizes = [8, 32], strides = [1, 1]} : vector<8x96xf32> to vector<8x32xf32>
    %708 = vector.extract_strided_slice %704 {offsets = [0, 32], sizes = [8, 32], strides = [1, 1]} : vector<8x96xf32> to vector<8x32xf32>
    %709 = vector.extract_strided_slice %704 {offsets = [0, 64], sizes = [8, 32], strides = [1, 1]} : vector<8x96xf32> to vector<8x32xf32>
    %710 = arith.mulf %708, %666 : vector<8x32xf32>
    %711 = arith.mulf %707, %706 : vector<8x32xf32>
    %712 = arith.addf %710, %711 : vector<8x32xf32>
    %713 = math.tanh %712 : vector<8x32xf32>
    %714 = arith.mulf %709, %713 : vector<8x32xf32>
    %715 = vector.shape_cast %12 : vector<8x1xi1> to vector<8x1xi1>
    %716 = vector.broadcast %715 : vector<8x1xi1> to vector<8x32xi1>
    %717 = arith.select %716, %714, %663 : vector<8x32xi1>, vector<8x32xf32>
    %718 = vector.shape_cast %12 : vector<8x1xi1> to vector<8x1xi1>
    %719 = vector.broadcast %718 : vector<8x1xi1> to vector<8x32xi1>
    %720 = arith.select %719, %712, %666 : vector<8x32xi1>, vector<8x32xf32>
    %721 = vector.extract_strided_slice %552 {offsets = [3, 0, 0], sizes = [1, 8, 128], strides = [1, 1, 1]} : vector<8x8x256xf32> to vector<1x8x128xf32>
    %722 = vector.shape_cast %721 : vector<1x8x128xf32> to vector<8x128xf32>
    %723 = arith.truncf %695 : vector<8x32xf32> to vector<8x32xbf16>
    %cst_91 = arith.constant dense<0.000000e+00> : vector<8x128xf32>
    %724 = tpu.matmul %723, %553, %cst_91 {dimension_numbers = #tpu.dot_dimension_numbers<[1], [0], [0], [1], [0, 0, 1, 1], [], []>} : vector<8x32xbf16>, vector<32x128xbf16>, vector<8x128xf32> -> vector<8x128xf32>
    %725 = arith.addf %722, %724 : vector<8x128xf32>
    %726 = vector.extract_strided_slice %552 {offsets = [4, 0, 128], sizes = [1, 8, 128], strides = [1, 1, 1]} : vector<8x8x256xf32> to vector<1x8x128xf32>
    %727 = vector.shape_cast %726 : vector<1x8x128xf32> to vector<8x128xf32>
    %728 = arith.truncf %717 : vector<8x32xf32> to vector<8x32xbf16>
    %cst_92 = arith.constant dense<0.000000e+00> : vector<8x128xf32>
    %729 = tpu.matmul %728, %554, %cst_92 {dimension_numbers = #tpu.dot_dimension_numbers<[1], [0], [0], [1], [0, 0, 1, 1], [], []>} : vector<8x32xbf16>, vector<32x128xbf16>, vector<8x128xf32> -> vector<8x128xf32>
    %730 = arith.addf %727, %729 : vector<8x128xf32>
    %731 = vector.extract_strided_slice %725 {offsets = [0, 0], sizes = [8, 96], strides = [1, 1]} : vector<8x128xf32> to vector<8x96xf32>
    %732 = arith.negf %731 : vector<8x96xf32>
    %733 = math.exp %732 : vector<8x96xf32>
    %cst_93 = arith.constant 1.000000e+00 : f32
    %734 = vector.broadcast %cst_93 : f32 to vector<8x96xf32>
    %735 = arith.addf %734, %733 : vector<8x96xf32>
    %736 = arith.divf %734, %735 : vector<8x96xf32>
    %737 = vector.extract_strided_slice %725 {offsets = [0, 96], sizes = [8, 32], strides = [1, 1]} : vector<8x128xf32> to vector<8x32xf32>
    %738 = math.tanh %737 : vector<8x32xf32>
    %739 = vector.extract_strided_slice %736 {offsets = [0, 0], sizes = [8, 32], strides = [1, 1]} : vector<8x96xf32> to vector<8x32xf32>
    %740 = vector.extract_strided_slice %736 {offsets = [0, 32], sizes = [8, 32], strides = [1, 1]} : vector<8x96xf32> to vector<8x32xf32>
    %741 = vector.extract_strided_slice %736 {offsets = [0, 64], sizes = [8, 32], strides = [1, 1]} : vector<8x96xf32> to vector<8x32xf32>
    %742 = arith.mulf %740, %698 : vector<8x32xf32>
    %743 = arith.mulf %739, %738 : vector<8x32xf32>
    %744 = arith.addf %742, %743 : vector<8x32xf32>
    %745 = math.tanh %744 : vector<8x32xf32>
    %746 = arith.mulf %741, %745 : vector<8x32xf32>
    %747 = vector.shape_cast %8 : vector<8x1xi1> to vector<8x1xi1>
    %748 = vector.broadcast %747 : vector<8x1xi1> to vector<8x32xi1>
    %749 = arith.select %748, %746, %695 : vector<8x32xi1>, vector<8x32xf32>
    %750 = vector.shape_cast %8 : vector<8x1xi1> to vector<8x1xi1>
    %751 = vector.broadcast %750 : vector<8x1xi1> to vector<8x32xi1>
    %752 = arith.select %751, %744, %698 : vector<8x32xi1>, vector<8x32xf32>
    %753 = vector.extract_strided_slice %730 {offsets = [0, 0], sizes = [8, 96], strides = [1, 1]} : vector<8x128xf32> to vector<8x96xf32>
    %754 = arith.negf %753 : vector<8x96xf32>
    %755 = math.exp %754 : vector<8x96xf32>
    %cst_94 = arith.constant 1.000000e+00 : f32
    %756 = vector.broadcast %cst_94 : f32 to vector<8x96xf32>
    %757 = arith.addf %756, %755 : vector<8x96xf32>
    %758 = arith.divf %756, %757 : vector<8x96xf32>
    %759 = vector.extract_strided_slice %730 {offsets = [0, 96], sizes = [8, 32], strides = [1, 1]} : vector<8x128xf32> to vector<8x32xf32>
    %760 = math.tanh %759 : vector<8x32xf32>
    %761 = vector.extract_strided_slice %758 {offsets = [0, 0], sizes = [8, 32], strides = [1, 1]} : vector<8x96xf32> to vector<8x32xf32>
    %762 = vector.extract_strided_slice %758 {offsets = [0, 32], sizes = [8, 32], strides = [1, 1]} : vector<8x96xf32> to vector<8x32xf32>
    %763 = vector.extract_strided_slice %758 {offsets = [0, 64], sizes = [8, 32], strides = [1, 1]} : vector<8x96xf32> to vector<8x32xf32>
    %764 = arith.mulf %762, %720 : vector<8x32xf32>
    %765 = arith.mulf %761, %760 : vector<8x32xf32>
    %766 = arith.addf %764, %765 : vector<8x32xf32>
    %767 = math.tanh %766 : vector<8x32xf32>
    %768 = arith.mulf %763, %767 : vector<8x32xf32>
    %769 = vector.shape_cast %10 : vector<8x1xi1> to vector<8x1xi1>
    %770 = vector.broadcast %769 : vector<8x1xi1> to vector<8x32xi1>
    %771 = arith.select %770, %768, %717 : vector<8x32xi1>, vector<8x32xf32>
    %772 = vector.shape_cast %10 : vector<8x1xi1> to vector<8x1xi1>
    %773 = vector.broadcast %772 : vector<8x1xi1> to vector<8x32xi1>
    %774 = arith.select %773, %766, %720 : vector<8x32xi1>, vector<8x32xf32>
    %775 = vector.extract_strided_slice %552 {offsets = [4, 0, 0], sizes = [1, 8, 128], strides = [1, 1, 1]} : vector<8x8x256xf32> to vector<1x8x128xf32>
    %776 = vector.shape_cast %775 : vector<1x8x128xf32> to vector<8x128xf32>
    %777 = arith.truncf %749 : vector<8x32xf32> to vector<8x32xbf16>
    %cst_95 = arith.constant dense<0.000000e+00> : vector<8x128xf32>
    %778 = tpu.matmul %777, %553, %cst_95 {dimension_numbers = #tpu.dot_dimension_numbers<[1], [0], [0], [1], [0, 0, 1, 1], [], []>} : vector<8x32xbf16>, vector<32x128xbf16>, vector<8x128xf32> -> vector<8x128xf32>
    %779 = arith.addf %776, %778 : vector<8x128xf32>
    %780 = vector.extract_strided_slice %552 {offsets = [3, 0, 128], sizes = [1, 8, 128], strides = [1, 1, 1]} : vector<8x8x256xf32> to vector<1x8x128xf32>
    %781 = vector.shape_cast %780 : vector<1x8x128xf32> to vector<8x128xf32>
    %782 = arith.truncf %771 : vector<8x32xf32> to vector<8x32xbf16>
    %cst_96 = arith.constant dense<0.000000e+00> : vector<8x128xf32>
    %783 = tpu.matmul %782, %554, %cst_96 {dimension_numbers = #tpu.dot_dimension_numbers<[1], [0], [0], [1], [0, 0, 1, 1], [], []>} : vector<8x32xbf16>, vector<32x128xbf16>, vector<8x128xf32> -> vector<8x128xf32>
    %784 = arith.addf %781, %783 : vector<8x128xf32>
    %785 = vector.extract_strided_slice %779 {offsets = [0, 0], sizes = [8, 96], strides = [1, 1]} : vector<8x128xf32> to vector<8x96xf32>
    %786 = arith.negf %785 : vector<8x96xf32>
    %787 = math.exp %786 : vector<8x96xf32>
    %cst_97 = arith.constant 1.000000e+00 : f32
    %788 = vector.broadcast %cst_97 : f32 to vector<8x96xf32>
    %789 = arith.addf %788, %787 : vector<8x96xf32>
    %790 = arith.divf %788, %789 : vector<8x96xf32>
    %791 = vector.extract_strided_slice %779 {offsets = [0, 96], sizes = [8, 32], strides = [1, 1]} : vector<8x128xf32> to vector<8x32xf32>
    %792 = math.tanh %791 : vector<8x32xf32>
    %793 = vector.extract_strided_slice %790 {offsets = [0, 0], sizes = [8, 32], strides = [1, 1]} : vector<8x96xf32> to vector<8x32xf32>
    %794 = vector.extract_strided_slice %790 {offsets = [0, 32], sizes = [8, 32], strides = [1, 1]} : vector<8x96xf32> to vector<8x32xf32>
    %795 = vector.extract_strided_slice %790 {offsets = [0, 64], sizes = [8, 32], strides = [1, 1]} : vector<8x96xf32> to vector<8x32xf32>
    %796 = arith.mulf %794, %752 : vector<8x32xf32>
    %797 = arith.mulf %793, %792 : vector<8x32xf32>
    %798 = arith.addf %796, %797 : vector<8x32xf32>
    %799 = math.tanh %798 : vector<8x32xf32>
    %800 = arith.mulf %795, %799 : vector<8x32xf32>
    %801 = vector.shape_cast %10 : vector<8x1xi1> to vector<8x1xi1>
    %802 = vector.broadcast %801 : vector<8x1xi1> to vector<8x32xi1>
    %803 = arith.select %802, %800, %749 : vector<8x32xi1>, vector<8x32xf32>
    %804 = vector.shape_cast %10 : vector<8x1xi1> to vector<8x1xi1>
    %805 = vector.broadcast %804 : vector<8x1xi1> to vector<8x32xi1>
    %806 = arith.select %805, %798, %752 : vector<8x32xi1>, vector<8x32xf32>
    %807 = vector.extract_strided_slice %784 {offsets = [0, 0], sizes = [8, 96], strides = [1, 1]} : vector<8x128xf32> to vector<8x96xf32>
    %808 = arith.negf %807 : vector<8x96xf32>
    %809 = math.exp %808 : vector<8x96xf32>
    %cst_98 = arith.constant 1.000000e+00 : f32
    %810 = vector.broadcast %cst_98 : f32 to vector<8x96xf32>
    %811 = arith.addf %810, %809 : vector<8x96xf32>
    %812 = arith.divf %810, %811 : vector<8x96xf32>
    %813 = vector.extract_strided_slice %784 {offsets = [0, 96], sizes = [8, 32], strides = [1, 1]} : vector<8x128xf32> to vector<8x32xf32>
    %814 = math.tanh %813 : vector<8x32xf32>
    %815 = vector.extract_strided_slice %812 {offsets = [0, 0], sizes = [8, 32], strides = [1, 1]} : vector<8x96xf32> to vector<8x32xf32>
    %816 = vector.extract_strided_slice %812 {offsets = [0, 32], sizes = [8, 32], strides = [1, 1]} : vector<8x96xf32> to vector<8x32xf32>
    %817 = vector.extract_strided_slice %812 {offsets = [0, 64], sizes = [8, 32], strides = [1, 1]} : vector<8x96xf32> to vector<8x32xf32>
    %818 = arith.mulf %816, %774 : vector<8x32xf32>
    %819 = arith.mulf %815, %814 : vector<8x32xf32>
    %820 = arith.addf %818, %819 : vector<8x32xf32>
    %821 = math.tanh %820 : vector<8x32xf32>
    %822 = arith.mulf %817, %821 : vector<8x32xf32>
    %823 = vector.shape_cast %8 : vector<8x1xi1> to vector<8x1xi1>
    %824 = vector.broadcast %823 : vector<8x1xi1> to vector<8x32xi1>
    %825 = arith.select %824, %822, %771 : vector<8x32xi1>, vector<8x32xf32>
    %826 = vector.shape_cast %8 : vector<8x1xi1> to vector<8x1xi1>
    %827 = vector.broadcast %826 : vector<8x1xi1> to vector<8x32xi1>
    %828 = arith.select %827, %820, %774 : vector<8x32xi1>, vector<8x32xf32>
    %829 = vector.extract_strided_slice %552 {offsets = [5, 0, 0], sizes = [1, 8, 128], strides = [1, 1, 1]} : vector<8x8x256xf32> to vector<1x8x128xf32>
    %830 = vector.shape_cast %829 : vector<1x8x128xf32> to vector<8x128xf32>
    %831 = arith.truncf %803 : vector<8x32xf32> to vector<8x32xbf16>
    %cst_99 = arith.constant dense<0.000000e+00> : vector<8x128xf32>
    %832 = tpu.matmul %831, %553, %cst_99 {dimension_numbers = #tpu.dot_dimension_numbers<[1], [0], [0], [1], [0, 0, 1, 1], [], []>} : vector<8x32xbf16>, vector<32x128xbf16>, vector<8x128xf32> -> vector<8x128xf32>
    %833 = arith.addf %830, %832 : vector<8x128xf32>
    %834 = vector.extract_strided_slice %552 {offsets = [2, 0, 128], sizes = [1, 8, 128], strides = [1, 1, 1]} : vector<8x8x256xf32> to vector<1x8x128xf32>
    %835 = vector.shape_cast %834 : vector<1x8x128xf32> to vector<8x128xf32>
    %836 = arith.truncf %825 : vector<8x32xf32> to vector<8x32xbf16>
    %cst_100 = arith.constant dense<0.000000e+00> : vector<8x128xf32>
    %837 = tpu.matmul %836, %554, %cst_100 {dimension_numbers = #tpu.dot_dimension_numbers<[1], [0], [0], [1], [0, 0, 1, 1], [], []>} : vector<8x32xbf16>, vector<32x128xbf16>, vector<8x128xf32> -> vector<8x128xf32>
    %838 = arith.addf %835, %837 : vector<8x128xf32>
    %839 = vector.extract_strided_slice %833 {offsets = [0, 0], sizes = [8, 96], strides = [1, 1]} : vector<8x128xf32> to vector<8x96xf32>
    %840 = arith.negf %839 : vector<8x96xf32>
    %841 = math.exp %840 : vector<8x96xf32>
    %cst_101 = arith.constant 1.000000e+00 : f32
    %842 = vector.broadcast %cst_101 : f32 to vector<8x96xf32>
    %843 = arith.addf %842, %841 : vector<8x96xf32>
    %844 = arith.divf %842, %843 : vector<8x96xf32>
    %845 = vector.extract_strided_slice %833 {offsets = [0, 96], sizes = [8, 32], strides = [1, 1]} : vector<8x128xf32> to vector<8x32xf32>
    %846 = math.tanh %845 : vector<8x32xf32>
    %847 = vector.extract_strided_slice %844 {offsets = [0, 0], sizes = [8, 32], strides = [1, 1]} : vector<8x96xf32> to vector<8x32xf32>
    %848 = vector.extract_strided_slice %844 {offsets = [0, 32], sizes = [8, 32], strides = [1, 1]} : vector<8x96xf32> to vector<8x32xf32>
    %849 = vector.extract_strided_slice %844 {offsets = [0, 64], sizes = [8, 32], strides = [1, 1]} : vector<8x96xf32> to vector<8x32xf32>
    %850 = arith.mulf %848, %806 : vector<8x32xf32>
    %851 = arith.mulf %847, %846 : vector<8x32xf32>
    %852 = arith.addf %850, %851 : vector<8x32xf32>
    %853 = math.tanh %852 : vector<8x32xf32>
    %854 = arith.mulf %849, %853 : vector<8x32xf32>
    %855 = vector.shape_cast %12 : vector<8x1xi1> to vector<8x1xi1>
    %856 = vector.broadcast %855 : vector<8x1xi1> to vector<8x32xi1>
    %857 = arith.select %856, %854, %803 : vector<8x32xi1>, vector<8x32xf32>
    %858 = vector.shape_cast %12 : vector<8x1xi1> to vector<8x1xi1>
    %859 = vector.broadcast %858 : vector<8x1xi1> to vector<8x32xi1>
    %860 = arith.select %859, %852, %806 : vector<8x32xi1>, vector<8x32xf32>
    %861 = vector.extract_strided_slice %838 {offsets = [0, 0], sizes = [8, 96], strides = [1, 1]} : vector<8x128xf32> to vector<8x96xf32>
    %862 = arith.negf %861 : vector<8x96xf32>
    %863 = math.exp %862 : vector<8x96xf32>
    %cst_102 = arith.constant 1.000000e+00 : f32
    %864 = vector.broadcast %cst_102 : f32 to vector<8x96xf32>
    %865 = arith.addf %864, %863 : vector<8x96xf32>
    %866 = arith.divf %864, %865 : vector<8x96xf32>
    %867 = vector.extract_strided_slice %838 {offsets = [0, 96], sizes = [8, 32], strides = [1, 1]} : vector<8x128xf32> to vector<8x32xf32>
    %868 = math.tanh %867 : vector<8x32xf32>
    %869 = vector.extract_strided_slice %866 {offsets = [0, 0], sizes = [8, 32], strides = [1, 1]} : vector<8x96xf32> to vector<8x32xf32>
    %870 = vector.extract_strided_slice %866 {offsets = [0, 32], sizes = [8, 32], strides = [1, 1]} : vector<8x96xf32> to vector<8x32xf32>
    %871 = vector.extract_strided_slice %866 {offsets = [0, 64], sizes = [8, 32], strides = [1, 1]} : vector<8x96xf32> to vector<8x32xf32>
    %872 = arith.mulf %870, %828 : vector<8x32xf32>
    %873 = arith.mulf %869, %868 : vector<8x32xf32>
    %874 = arith.addf %872, %873 : vector<8x32xf32>
    %875 = math.tanh %874 : vector<8x32xf32>
    %876 = arith.mulf %871, %875 : vector<8x32xf32>
    %877 = vector.shape_cast %6 : vector<8x1xi1> to vector<8x1xi1>
    %878 = vector.broadcast %877 : vector<8x1xi1> to vector<8x32xi1>
    %879 = arith.select %878, %876, %825 : vector<8x32xi1>, vector<8x32xf32>
    %880 = vector.shape_cast %6 : vector<8x1xi1> to vector<8x1xi1>
    %881 = vector.broadcast %880 : vector<8x1xi1> to vector<8x32xi1>
    %882 = arith.select %881, %874, %828 : vector<8x32xi1>, vector<8x32xf32>
    %883 = vector.extract_strided_slice %552 {offsets = [6, 0, 0], sizes = [1, 8, 128], strides = [1, 1, 1]} : vector<8x8x256xf32> to vector<1x8x128xf32>
    %884 = vector.shape_cast %883 : vector<1x8x128xf32> to vector<8x128xf32>
    %885 = arith.truncf %857 : vector<8x32xf32> to vector<8x32xbf16>
    %cst_103 = arith.constant dense<0.000000e+00> : vector<8x128xf32>
    %886 = tpu.matmul %885, %553, %cst_103 {dimension_numbers = #tpu.dot_dimension_numbers<[1], [0], [0], [1], [0, 0, 1, 1], [], []>} : vector<8x32xbf16>, vector<32x128xbf16>, vector<8x128xf32> -> vector<8x128xf32>
    %887 = arith.addf %884, %886 : vector<8x128xf32>
    %888 = vector.extract_strided_slice %552 {offsets = [1, 0, 128], sizes = [1, 8, 128], strides = [1, 1, 1]} : vector<8x8x256xf32> to vector<1x8x128xf32>
    %889 = vector.shape_cast %888 : vector<1x8x128xf32> to vector<8x128xf32>
    %890 = arith.truncf %879 : vector<8x32xf32> to vector<8x32xbf16>
    %cst_104 = arith.constant dense<0.000000e+00> : vector<8x128xf32>
    %891 = tpu.matmul %890, %554, %cst_104 {dimension_numbers = #tpu.dot_dimension_numbers<[1], [0], [0], [1], [0, 0, 1, 1], [], []>} : vector<8x32xbf16>, vector<32x128xbf16>, vector<8x128xf32> -> vector<8x128xf32>
    %892 = arith.addf %889, %891 : vector<8x128xf32>
    %893 = vector.extract_strided_slice %887 {offsets = [0, 0], sizes = [8, 96], strides = [1, 1]} : vector<8x128xf32> to vector<8x96xf32>
    %894 = arith.negf %893 : vector<8x96xf32>
    %895 = math.exp %894 : vector<8x96xf32>
    %cst_105 = arith.constant 1.000000e+00 : f32
    %896 = vector.broadcast %cst_105 : f32 to vector<8x96xf32>
    %897 = arith.addf %896, %895 : vector<8x96xf32>
    %898 = arith.divf %896, %897 : vector<8x96xf32>
    %899 = vector.extract_strided_slice %887 {offsets = [0, 96], sizes = [8, 32], strides = [1, 1]} : vector<8x128xf32> to vector<8x32xf32>
    %900 = math.tanh %899 : vector<8x32xf32>
    %901 = vector.extract_strided_slice %898 {offsets = [0, 0], sizes = [8, 32], strides = [1, 1]} : vector<8x96xf32> to vector<8x32xf32>
    %902 = vector.extract_strided_slice %898 {offsets = [0, 32], sizes = [8, 32], strides = [1, 1]} : vector<8x96xf32> to vector<8x32xf32>
    %903 = vector.extract_strided_slice %898 {offsets = [0, 64], sizes = [8, 32], strides = [1, 1]} : vector<8x96xf32> to vector<8x32xf32>
    %904 = arith.mulf %902, %860 : vector<8x32xf32>
    %905 = arith.mulf %901, %900 : vector<8x32xf32>
    %906 = arith.addf %904, %905 : vector<8x32xf32>
    %907 = math.tanh %906 : vector<8x32xf32>
    %908 = arith.mulf %903, %907 : vector<8x32xf32>
    %909 = vector.shape_cast %14 : vector<8x1xi1> to vector<8x1xi1>
    %910 = vector.broadcast %909 : vector<8x1xi1> to vector<8x32xi1>
    %911 = arith.select %910, %908, %857 : vector<8x32xi1>, vector<8x32xf32>
    %912 = vector.shape_cast %14 : vector<8x1xi1> to vector<8x1xi1>
    %913 = vector.broadcast %912 : vector<8x1xi1> to vector<8x32xi1>
    %914 = arith.select %913, %906, %860 : vector<8x32xi1>, vector<8x32xf32>
    %915 = vector.extract_strided_slice %892 {offsets = [0, 0], sizes = [8, 96], strides = [1, 1]} : vector<8x128xf32> to vector<8x96xf32>
    %916 = arith.negf %915 : vector<8x96xf32>
    %917 = math.exp %916 : vector<8x96xf32>
    %cst_106 = arith.constant 1.000000e+00 : f32
    %918 = vector.broadcast %cst_106 : f32 to vector<8x96xf32>
    %919 = arith.addf %918, %917 : vector<8x96xf32>
    %920 = arith.divf %918, %919 : vector<8x96xf32>
    %921 = vector.extract_strided_slice %892 {offsets = [0, 96], sizes = [8, 32], strides = [1, 1]} : vector<8x128xf32> to vector<8x32xf32>
    %922 = math.tanh %921 : vector<8x32xf32>
    %923 = vector.extract_strided_slice %920 {offsets = [0, 0], sizes = [8, 32], strides = [1, 1]} : vector<8x96xf32> to vector<8x32xf32>
    %924 = vector.extract_strided_slice %920 {offsets = [0, 32], sizes = [8, 32], strides = [1, 1]} : vector<8x96xf32> to vector<8x32xf32>
    %925 = vector.extract_strided_slice %920 {offsets = [0, 64], sizes = [8, 32], strides = [1, 1]} : vector<8x96xf32> to vector<8x32xf32>
    %926 = arith.mulf %924, %882 : vector<8x32xf32>
    %927 = arith.mulf %923, %922 : vector<8x32xf32>
    %928 = arith.addf %926, %927 : vector<8x32xf32>
    %929 = math.tanh %928 : vector<8x32xf32>
    %930 = arith.mulf %925, %929 : vector<8x32xf32>
    %931 = vector.shape_cast %4 : vector<8x1xi1> to vector<8x1xi1>
    %932 = vector.broadcast %931 : vector<8x1xi1> to vector<8x32xi1>
    %933 = arith.select %932, %930, %879 : vector<8x32xi1>, vector<8x32xf32>
    %934 = vector.shape_cast %4 : vector<8x1xi1> to vector<8x1xi1>
    %935 = vector.broadcast %934 : vector<8x1xi1> to vector<8x32xi1>
    %936 = arith.select %935, %928, %882 : vector<8x32xi1>, vector<8x32xf32>
    %937 = vector.extract_strided_slice %552 {offsets = [7, 0, 0], sizes = [1, 8, 128], strides = [1, 1, 1]} : vector<8x8x256xf32> to vector<1x8x128xf32>
    %938 = vector.shape_cast %937 : vector<1x8x128xf32> to vector<8x128xf32>
    %939 = arith.truncf %911 : vector<8x32xf32> to vector<8x32xbf16>
    %cst_107 = arith.constant dense<0.000000e+00> : vector<8x128xf32>
    %940 = tpu.matmul %939, %553, %cst_107 {dimension_numbers = #tpu.dot_dimension_numbers<[1], [0], [0], [1], [0, 0, 1, 1], [], []>} : vector<8x32xbf16>, vector<32x128xbf16>, vector<8x128xf32> -> vector<8x128xf32>
    %941 = arith.addf %938, %940 : vector<8x128xf32>
    %942 = vector.extract_strided_slice %552 {offsets = [0, 0, 128], sizes = [1, 8, 128], strides = [1, 1, 1]} : vector<8x8x256xf32> to vector<1x8x128xf32>
    %943 = vector.shape_cast %942 : vector<1x8x128xf32> to vector<8x128xf32>
    %944 = arith.truncf %933 : vector<8x32xf32> to vector<8x32xbf16>
    %cst_108 = arith.constant dense<0.000000e+00> : vector<8x128xf32>
    %945 = tpu.matmul %944, %554, %cst_108 {dimension_numbers = #tpu.dot_dimension_numbers<[1], [0], [0], [1], [0, 0, 1, 1], [], []>} : vector<8x32xbf16>, vector<32x128xbf16>, vector<8x128xf32> -> vector<8x128xf32>
    %946 = arith.addf %943, %945 : vector<8x128xf32>
    %947 = vector.extract_strided_slice %941 {offsets = [0, 0], sizes = [8, 96], strides = [1, 1]} : vector<8x128xf32> to vector<8x96xf32>
    %948 = arith.negf %947 : vector<8x96xf32>
    %949 = math.exp %948 : vector<8x96xf32>
    %cst_109 = arith.constant 1.000000e+00 : f32
    %950 = vector.broadcast %cst_109 : f32 to vector<8x96xf32>
    %951 = arith.addf %950, %949 : vector<8x96xf32>
    %952 = arith.divf %950, %951 : vector<8x96xf32>
    %953 = vector.extract_strided_slice %941 {offsets = [0, 96], sizes = [8, 32], strides = [1, 1]} : vector<8x128xf32> to vector<8x32xf32>
    %954 = math.tanh %953 : vector<8x32xf32>
    %955 = vector.extract_strided_slice %952 {offsets = [0, 0], sizes = [8, 32], strides = [1, 1]} : vector<8x96xf32> to vector<8x32xf32>
    %956 = vector.extract_strided_slice %952 {offsets = [0, 32], sizes = [8, 32], strides = [1, 1]} : vector<8x96xf32> to vector<8x32xf32>
    %957 = vector.extract_strided_slice %952 {offsets = [0, 64], sizes = [8, 32], strides = [1, 1]} : vector<8x96xf32> to vector<8x32xf32>
    %958 = arith.mulf %956, %914 : vector<8x32xf32>
    %959 = arith.mulf %955, %954 : vector<8x32xf32>
    %960 = arith.addf %958, %959 : vector<8x32xf32>
    %961 = math.tanh %960 : vector<8x32xf32>
    %962 = arith.mulf %957, %961 : vector<8x32xf32>
    %963 = vector.shape_cast %16 : vector<8x1xi1> to vector<8x1xi1>
    %964 = vector.broadcast %963 : vector<8x1xi1> to vector<8x32xi1>
    %965 = arith.select %964, %962, %911 : vector<8x32xi1>, vector<8x32xf32>
    %966 = vector.extract_strided_slice %946 {offsets = [0, 0], sizes = [8, 96], strides = [1, 1]} : vector<8x128xf32> to vector<8x96xf32>
    %967 = arith.negf %966 : vector<8x96xf32>
    %968 = math.exp %967 : vector<8x96xf32>
    %cst_110 = arith.constant 1.000000e+00 : f32
    %969 = vector.broadcast %cst_110 : f32 to vector<8x96xf32>
    %970 = arith.addf %969, %968 : vector<8x96xf32>
    %971 = arith.divf %969, %970 : vector<8x96xf32>
    %972 = vector.extract_strided_slice %946 {offsets = [0, 96], sizes = [8, 32], strides = [1, 1]} : vector<8x128xf32> to vector<8x32xf32>
    %973 = math.tanh %972 : vector<8x32xf32>
    %974 = vector.extract_strided_slice %971 {offsets = [0, 0], sizes = [8, 32], strides = [1, 1]} : vector<8x96xf32> to vector<8x32xf32>
    %975 = vector.extract_strided_slice %971 {offsets = [0, 32], sizes = [8, 32], strides = [1, 1]} : vector<8x96xf32> to vector<8x32xf32>
    %976 = vector.extract_strided_slice %971 {offsets = [0, 64], sizes = [8, 32], strides = [1, 1]} : vector<8x96xf32> to vector<8x32xf32>
    %977 = arith.mulf %975, %936 : vector<8x32xf32>
    %978 = arith.mulf %974, %973 : vector<8x32xf32>
    %979 = arith.addf %977, %978 : vector<8x32xf32>
    %980 = math.tanh %979 : vector<8x32xf32>
    %981 = arith.mulf %976, %980 : vector<8x32xf32>
    %982 = vector.shape_cast %2 : vector<8x1xi1> to vector<8x1xi1>
    %983 = vector.broadcast %982 : vector<8x1xi1> to vector<8x32xi1>
    %984 = arith.select %983, %981, %933 : vector<8x32xi1>, vector<8x32xf32>
    %c0_111 = arith.constant 0 : index
    %c0_112 = arith.constant 0 : index
    %985 = vector.load %arg10[%c0_111, %c0_112] : memref<64x2xbf16, #tpu.memory_space<vmem>>, vector<64x2xbf16>
    %986 = arith.truncf %965 : vector<8x32xf32> to vector<8x32xbf16>
    %987 = vector.extract_strided_slice %985 {offsets = [0, 0], sizes = [32, 2], strides = [1, 1]} : vector<64x2xbf16> to vector<32x2xbf16>
    %cst_113 = arith.constant dense<0.000000e+00> : vector<8x2xf32>
    %988 = tpu.matmul %986, %987, %cst_113 {dimension_numbers = #tpu.dot_dimension_numbers<[1], [0], [0], [1], [0, 0, 1, 1], [], []>} : vector<8x32xbf16>, vector<32x2xbf16>, vector<8x2xf32> -> vector<8x2xf32>
    %989 = arith.truncf %984 : vector<8x32xf32> to vector<8x32xbf16>
    %990 = vector.extract_strided_slice %985 {offsets = [32, 0], sizes = [32, 2], strides = [1, 1]} : vector<64x2xbf16> to vector<32x2xbf16>
    %cst_114 = arith.constant dense<0.000000e+00> : vector<8x2xf32>
    %991 = tpu.matmul %989, %990, %cst_114 {dimension_numbers = #tpu.dot_dimension_numbers<[1], [0], [0], [1], [0, 0, 1, 1], [], []>} : vector<8x32xbf16>, vector<32x2xbf16>, vector<8x2xf32> -> vector<8x2xf32>
    %992 = arith.addf %988, %991 : vector<8x2xf32>
    %c0_115 = arith.constant 0 : index
    %c0_116 = arith.constant 0 : index
    %993 = vector.load %arg11[%c0_115, %c0_116] : memref<1x2xf32, #tpu.memory_space<vmem>>, vector<1x2xf32>
    %994 = vector.broadcast %993 : vector<1x2xf32> to vector<8x2xf32>
    %995 = arith.addf %992, %994 : vector<8x2xf32>
    %c0_117 = arith.constant 0 : index
    %c0_118 = arith.constant 0 : index
    %996 = vector.load %arg12[%c0_117, %c0_118] : memref<8x2xf32, #tpu.memory_space<vmem>>, vector<8x2xf32>
    tpu.vector_store %arg12[%c0_117, %c0_118], %995 {strides = array<i32>} : memref<8x2xf32, #tpu.memory_space<vmem>>, vector<8x2xf32>,
    return
  }
}

</mosaic_0001>

<bundles_post_ra>
// kernel: tpu_custom_call.1
= control target key start
LH: loop header
LB: loop body
LE: loop exit
PB: predicated region body
PF: predicated region fallthrough
CT: control target
= control target key end

     0   :  { %17 = vsyncpa [#allocation3], 0  ;;  %s5429_s0 = inlined_call_operand.vmem [shape: s32[8,1], index: 0, kind: input, shape index: {}]   ;;  %s5430_s1 = inlined_call_operand.hbm [shape: f32[8,8,32], index: 1, kind: input, shape index: {}]   ;;  %s5431_s2 = inlined_call_operand.hbm [shape: bf16[32,256], index: 2, kind: input, shape index: {}]   ;;  %s5432_s3 = inlined_call_operand.hbm [shape: bf16[32,128], index: 3, kind: input, shape index: {}]   ;;  %s5433_s4 = inlined_call_operand.hbm [shape: bf16[32,128], index: 4, kind: input, shape index: {}]   ;;  %s5434_s5 = inlined_call_operand.hbm [shape: f32[1,256], index: 5, kind: input, shape index: {}]   ;;  %s5435_s6 = inlined_call_operand.vmem [shape: bf16[64,256], index: 6, kind: input, shape index: {}]   ;;  %s5436_s7 = inlined_call_operand.hbm [shape: bf16[32,128], index: 7, kind: input, shape index: {}]   ;;  %s5437_s8 = inlined_call_operand.hbm [shape: bf16[32,128], index: 8, kind: input, shape index: {}]   ;;  %s5438_s9 = inlined_call_operand.vmem [shape: f32[1,256], index: 9, kind: input, shape index: {}]   ;;  %s5439_s10 = inlined_call_operand.vmem [shape: bf16[64,2], index: 10, kind: input, shape index: {}]   ;;  %s5440_s11 = inlined_call_operand.vmem [shape: f32[1,2], index: 11, kind: input, shape index: {}]   ;;  %s5441_s12 = inlined_call_operand.vmem [shape: f32[8,2], index: 12, kind: output, shape index: {}]  }
   0x1   :  { %18 = vsyncpa [#allocation5], 0 }
   0x2   :  { %19 = vsyncpa [#allocation8], 0 }
   0x3   :  { %20 = vsyncpa [#allocation11], 0  ;;  %s4113_s21 = smov [#allocation4]   ;;  %s3951_s25 = scalar_lea.hbm %s5431_s2, 512 }
   0x4   :  { %s40_s22 = sshll.u32 %s4113_s21, 4  ;;  %p3952_p0 = scmp.ne.s32.totalorder %s5431_s2, %s3951_s25  ;;  %s41_s22 = int_to_ptr.vmem [resolvable:$true] %s40_s22 }
   0x5   :  { %p3955_p1 = scmp.lt.u32.totalorder %s3951_s25, %s5431_s2 }
   0x7   :  { %p3957_p2 = pnand %p3955_p1, %p3952_p0 }
   0x9   :  { %3960 = shalt.err (!%p3957_p2)
}
   0xa   :  { %s3961_s30 = scalar_lea.vmem %s41_s22, 512  ;;  %p3966_p4 = scmp.lt.s32.totalorder %s41_s22, %s41_s22 }
   0xb   :  { %p3962_p3 = scmp.ne.s32.totalorder %s41_s22, %s3961_s30  ;;  %p3967_p5 = scmp.lt.s32.totalorder %s3961_s30, %s3961_s30 }
   0xd   :  { %p3968_p6 = por %p3967_p5, %p3966_p4 }
   0xf   :  { %p3969_p7 = pnand %p3968_p6, %p3962_p3 }
  0x11   :  { %3972 = shalt.err (!%p3969_p7)
}
  0x12   :  { %s4114_s13 = smov 128   ;;  %s4115_s14 = smov 8  }
  0x13   :  { %46 = dma.hbm_to_vmem [thread:$0]  %s5431_s2, 512, %s41_s22, [#allocation5], %s4114_s13, %s4114_s13, %s4115_s14  }
  0x14   :  { %s4116_s17 = smov [#allocation7]   ;;  %s4117_s19 = smov [#allocation10]  }
  0x15   :  { %s64_s18 = sshll.u32 %s4116_s17, 4  ;;  %s88_s20 = sshll.u32 %s4117_s19, 4  ;;  %s65_s18 = int_to_ptr.vmem [resolvable:$true] %s64_s18  ;;  %s89_s20 = int_to_ptr.vmem [resolvable:$true] %s88_s20 }
  0x16   :  { %s3973_s24 = scalar_lea.hbm %s5433_s4, 256 }
  0x17   :  { %p3974_p8 = scmp.ne.s32.totalorder %s5433_s4, %s3973_s24  ;;  %p3977_p9 = scmp.lt.u32.totalorder %s3973_s24, %s5433_s4 }
  0x19   :  { %p3979_p10 = pnand %p3977_p9, %p3974_p8 }
  0x1b   :  { %3982 = shalt.err (!%p3979_p10)
}
  0x1c   :  { %s3983_s2 = scalar_lea.vmem %s65_s18, 256  ;;  %p3988_p12 = scmp.lt.s32.totalorder %s65_s18, %s65_s18 }
  0x1d   :  { %p3984_p11 = scmp.ne.s32.totalorder %s65_s18, %s3983_s2  ;;  %p3989_p13 = scmp.lt.s32.totalorder %s3983_s2, %s3983_s2 }
  0x1f   :  { %p3990_p0 = por %p3989_p13, %p3988_p12 }
  0x21   :  { %p3991_p1 = pnand %p3990_p0, %p3984_p11 }
  0x23   :  { %3994 = shalt.err (!%p3991_p1)
}
  0x24   :  { %s4118_s22 = smov 64   ;;  %s4119_s29 = smov 4  }
  0x25   :  { %70 = dma.hbm_to_vmem [thread:$0]  %s5433_s4, 256, %s65_s18, [#allocation8], %s4118_s22, %s4118_s22, %s4119_s29  }
  0x26   :  { %s3995_s19 = scalar_lea.hbm %s5436_s7, 256 }
  0x27   :  { %p3996_p2 = scmp.ne.s32.totalorder %s5436_s7, %s3995_s19  ;;  %p3999_p3 = scmp.lt.u32.totalorder %s3995_s19, %s5436_s7 }
  0x29   :  { %p4001_p4 = pnand %p3999_p3, %p3996_p2 }
  0x2b   :  { %4004 = shalt.err (!%p4001_p4)
}
  0x2c   :  { %s4005_s26 = scalar_lea.vmem %s89_s20, 256  ;;  %p4010_p6 = scmp.lt.s32.totalorder %s89_s20, %s89_s20 }
  0x2d   :  { %p4006_p5 = scmp.ne.s32.totalorder %s89_s20, %s4005_s26  ;;  %p4011_p7 = scmp.lt.s32.totalorder %s4005_s26, %s4005_s26 }
  0x2f   :  { %p4012_p8 = por %p4011_p7, %p4010_p6 }
  0x31   :  { %p4013_p9 = pnand %p4012_p8, %p4006_p5 }
  0x33   :  { %4016 = shalt.err (!%p4013_p9)
}
  0x34   :  { %94 = dma.hbm_to_vmem [thread:$0]  %s5436_s7, 256, %s89_s20, [#allocation11], %s4118_s22, %s4118_s22, %s4119_s29  }
  0x35   :  { %s4120_s27 = smov [#allocation2]   ;;  %s4121_s2 = smov [#allocation6]  }
  0x36   :  { %s28_s28 = sshll.u32 %s4120_s27, 4  ;;  %s52_s30 = sshll.u32 %s4121_s2, 4  ;;  %s29_s28 = int_to_ptr.vmem [resolvable:$true] %s28_s28  ;;  %s53_s30 = int_to_ptr.vmem [resolvable:$true] %s52_s30 }
  0x37   :  { %s4017_s17 = scalar_lea.hbm %s5430_s1, 1024 }
  0x38   :  { %p4018_p10 = scmp.ne.s32.totalorder %s5430_s1, %s4017_s17  ;;  %p4021_p11 = scmp.lt.u32.totalorder %s4017_s17, %s5430_s1 }
  0x3a   :  { %p4023_p12 = pnand %p4021_p11, %p4018_p10 }
  0x3c   :  { %4026 = shalt.err (!%p4023_p12)
}
  0x3d   :  { %s4027_s7 = scalar_lea.vmem %s29_s28, 1024  ;;  %p4032_p0 = scmp.lt.s32.totalorder %s29_s28, %s29_s28 }
  0x3e   :  { %p4028_p13 = scmp.ne.s32.totalorder %s29_s28, %s4027_s7  ;;  %p4033_p1 = scmp.lt.s32.totalorder %s4027_s7, %s4027_s7 }
  0x40   :  { %p4034_p2 = por %p4033_p1, %p4032_p0 }
  0x42   :  { %p4035_p3 = pnand %p4034_p2, %p4028_p13 }
  0x44   :  { %4038 = shalt.err (!%p4035_p3)
}
  0x45   :  { %34 = dma.hbm_to_vmem [thread:$0]  %s5430_s1, 1024, %s29_s28, [#allocation3], %s4114_s13, %s4114_s13, %s4115_s14  }
  0x46   :  { %s4039_s18 = scalar_lea.hbm %s5432_s3, 256 }
  0x47   :  { %p4040_p4 = scmp.ne.s32.totalorder %s5432_s3, %s4039_s18  ;;  %p4043_p5 = scmp.lt.u32.totalorder %s4039_s18, %s5432_s3 }
  0x49   :  { %p4045_p6 = pnand %p4043_p5, %p4040_p4 }
  0x4b   :  { %4048 = shalt.err (!%p4045_p6)
}
  0x4c   :  { %s4049_s17 = scalar_lea.vmem %s53_s30, 256  ;;  %p4054_p8 = scmp.lt.s32.totalorder %s53_s30, %s53_s30 }
  0x4d   :  { %p4050_p7 = scmp.ne.s32.totalorder %s53_s30, %s4049_s17  ;;  %p4055_p9 = scmp.lt.s32.totalorder %s4049_s17, %s4049_s17 }
  0x4f   :  { %p4056_p10 = por %p4055_p9, %p4054_p8 }
  0x51   :  { %p4057_p11 = pnand %p4056_p10, %p4050_p7 }
  0x53   :  { %4060 = shalt.err (!%p4057_p11)
}
  0x54   :  { %58 = dma.hbm_to_vmem [thread:$0]  %s5432_s3, 256, %s53_s30, [#allocation5], %s4118_s22, %s4118_s22, %s4119_s29  }
  0x55   :  { %s4122_s14 = smov [#allocation9]   ;;  %s4123_s19 = smov [#allocation12]  }
  0x56   :  { %s77_s28 = sshll.u32 %s4122_s14, 4  ;;  %s100_s21 = sshll.u32 %s4123_s19, 4  ;;  %s78_s28 = int_to_ptr.vmem [resolvable:$true] %s77_s28  ;;  %s101_s21 = int_to_ptr.vmem [resolvable:$true] %s100_s21 }
  0x57   :  { %s4061_s7 = scalar_lea.hbm %s5434_s5, 32 }
  0x58   :  { %p4062_p12 = scmp.ne.s32.totalorder %s5434_s5, %s4061_s7  ;;  %p4065_p13 = scmp.lt.u32.totalorder %s4061_s7, %s5434_s5 }
  0x5a   :  { %p4067_p0 = pnand %p4065_p13, %p4062_p12 }
  0x5c   :  { %4070 = shalt.err (!%p4067_p0)
}
  0x5d   :  { %s4071_s3 = scalar_lea.vmem %s78_s28, 32  ;;  %p4076_p2 = scmp.lt.s32.totalorder %s78_s28, %s78_s28 }
  0x5e   :  { %p4072_p1 = scmp.ne.s32.totalorder %s78_s28, %s4071_s3  ;;  %p4077_p3 = scmp.lt.s32.totalorder %s4071_s3, %s4071_s3 }
  0x60   :  { %p4078_p4 = por %p4077_p3, %p4076_p2 }
  0x62   :  { %p4079_p5 = pnand %p4078_p4, %p4072_p1 }
  0x64   :  { %4082 = shalt.err (!%p4079_p5)
}
  0x65   :  { %80 = dma.hbm_to_vmem [thread:$0]  %s5434_s5, 32, %s78_s28, [#allocation8]  }
  0x66   :  { %s4083_s15 = scalar_lea.hbm %s5437_s8, 256 }
  0x67   :  { %p4084_p6 = scmp.ne.s32.totalorder %s5437_s8, %s4083_s15  ;;  %p4087_p7 = scmp.lt.u32.totalorder %s4083_s15, %s5437_s8 }
  0x69   :  { %p4089_p8 = pnand %p4087_p7, %p4084_p6 }
  0x6b   :  { %4092 = shalt.err (!%p4089_p8)
}
  0x6c   :  { %s4093_s14 = scalar_lea.vmem %s101_s21, 256  ;;  %p4098_p10 = scmp.lt.s32.totalorder %s101_s21, %s101_s21 }
  0x6d   :  { %p4094_p9 = scmp.ne.s32.totalorder %s101_s21, %s4093_s14  ;;  %p4099_p11 = scmp.lt.s32.totalorder %s4093_s14, %s4093_s14 }
  0x6f   :  { %p4100_p12 = por %p4099_p11, %p4098_p10 }
  0x71   :  { %p4101_p13 = pnand %p4100_p12, %p4094_p9 }
  0x73   :  { %4104 = shalt.err (!%p4101_p13)
}
  0x74   :  { %106 = dma.hbm_to_vmem [thread:$0]  %s5437_s8, 256, %s101_s21, [#allocation11], %s4118_s22, %s4118_s22, %s4119_s29  }
  0x75   :  { %4105 = dma.done.wait [#allocation3], 1024  }
  0x76   :  { %4106 = vsyncadd [#allocation3], 4294966272 }
  0x77   :  { %4107 = dma.done.wait [#allocation5], 768  }
  0x78   :  { %4108 = vsyncadd [#allocation5], 4294966528 }
  0x79   :  { %4109 = dma.done.wait [#allocation8], 288  }
  0x7a   :  { %4110 = vsyncadd [#allocation8], 4294967008 }
  0x7b   :  { %4111 = dma.done.wait [#allocation11], 512  }
  0x7c   :  { %4112 = vsyncadd [#allocation11], 4294966784  ;;  %v4124_v0 = vmov 0.0   ;;  %v4125_v1 = vmov 0   ;;  %vm4126_vm0 = vmmov 0   ;;  %v4301_v4 = vld [vmem:[#allocation6] sm:$0xff]   ;;  %v162_v22 = vlaneseq }
  0x7d   :  { %3356 = vmatprep.subr.bf16.mxu1 %v4124_v0  ;;  %237 = vmatprep.mubr.bf16.mxu0 %v4125_v1  ;;  %v3661_v2 = vld [vmem:[#allocation4 + $0x4] ss:$8 sps:$4 sm:$0xff]   ;;  %v3663_v3 = vld [vmem:[#allocation4] ss:$8 sps:$4 sm:$0xff]   ;;  %v3665_v5 = vld [vmem:[#allocation4 + $0x14] ss:$8 sps:$4 sm:$0xff]  }
  0x7e   :  { %3360 = vmatprep.mubr.msk.bf16.mxu1 %vm4126_vm0, %v4124_v0  ;;  %3659 = vset.pattern.permute.xlu0 %v4125_v1  ;;  %v3667_v6 = vld [vmem:[#allocation4 + $0x10] ss:$8 sps:$4 sm:$0xff]   ;;  %v4304_v7 = vld [vmem:[#allocation6 + $0x8] sm:$0xff]   ;;  %v144_v8 = vld [vmem:[#allocation2] sm:$0xff]  ;;  %vm192_vm1 = vcmask 261120   ;;  %v4341_v23 = vshrl.u32 %v162_v22, 7 }
  0x7f   :  { %3660 = vset.pattern.permute.xlu1 %v4125_v1  ;;  %205 = vmatprep.subr.bf16.mxu0 %v3661_v2  ;;  %v145_v9 = vld [vmem:[#allocation2 + $0x8] sm:$0xff]  ;;  %v4308_v11 = vld [vmem:[#allocation7] sm:$0xff]   ;;  %v147_v13 = vld [vmem:[#allocation2 + $0x18] sm:$0xff]  ;;  %s4127_s8 = smov 32  }
  0x80   :  { %206 = vmatpush1.bf16.msra.mxu0 %v3663_v3  ;;  %3357 = vmatpush3.bf16.msra.mxu1 %v4301_v4  ;;  %v152_v10 = vpack.c.bf16 %v145_v9, %v144_v8  ;;  %v146_v12 = vld [vmem:[#allocation2 + $0x10] sm:$0xff]  ;;  %v4313_v14 = vld [vmem:[#allocation7 + $0x8] sm:$0xff]   ;;  %v148_v16 = vld [vmem:[#allocation2 + $0x20] sm:$0xff]  ;;  %v164_v24 = vsub.s32 0, %v4341_v23  ;;  %v168_v26 = vsub.s32 1, %v4341_v23 }
  0x81   :  { %207 = vmatprep.subr.bf16.mxu0 %v3665_v5  ;;  %3358 = vmatprep.subr.bf16.mxu1 %v4124_v0  ;;  %v153_v15 = vpack.c.bf16 %v147_v13, %v146_v12  ;;  %v149_v17 = vld [vmem:[#allocation2 + $0x28] sm:$0xff]  ;;  %v150_v19 = vld [vmem:[#allocation2 + $0x30] sm:$0xff]  ;;  %v151_v20 = vld [vmem:[#allocation2 + $0x38] sm:$0xff] }
  0x82   :  { %v154_v18 = vpack.c.bf16 %v149_v17, %v148_v16  ;;  %v155_v21 = vpack.c.bf16 %v151_v20, %v150_v19  ;;  %v160_v25 = vld [vmem:[#allocation9] sm:$0x3]  ;;  %v4381_v13 = vld [vmem:[%s5429_s0] sm:$0xff] }
  0x83   :  { %v165_v27 = vrot.slane %v160_v25, %v164_v24  ;;  %v169_v28 = vrot.slane %v160_v25, %v168_v26  ;;  %vm136_vm2 = vcmp.gt.s32.totalorder %v4381_v13, 0  ;;  %vm143_vm3 = vcmp.gt.s32.totalorder %v4381_v13, 7 }
  0x84   :  { %208 = vmatpush1.bf16.msra.mxu0 %v3667_v6  ;;  %3359 = vmatpush3.bf16.msra.mxu1 %v4304_v7  ;;  %v419_v16 = vsel %vm136_vm2, 1, %v4125_v1  ;;  %vm142_vm6 = vcmp.gt.s32.totalorder %v4381_v13, 6  ;;  %vm137_vm7 = vcmp.gt.s32.totalorder %v4381_v13, 1  ;;  %vm141_vm10 = vcmp.gt.s32.totalorder %v4381_v13, 5 }
  0x85   :  { %3388 = vmatprep.subr.bf16.mxu0 %v4124_v0  ;;  %3364 = vmatprep.subr.bf16.mxu1 %v4124_v0  ;;  %vm138_vm11 = vcmp.gt.s32.totalorder %v4381_v13, 2  ;;  %vm140_vm14 = vcmp.gt.s32.totalorder %v4381_v13, 4  ;;  %vm139_vm15 = vcmp.gt.s32.totalorder %v4381_v13, 3 }
  0x87   :  { %3159 = vmatmul.mubr.msk.bf16.vlgmr.msra.gmra.mrb[0].mxu0 %vm192_vm1, %v152_v10  ;;  %3361 = vmatmul.mubr.bf16.vlgmr.msra.gmra.mrb[0].mxu1 %v4125_v1 }
  0x88   :  { %247 = vmatprep.mubr.bf16.mxu0 %v4125_v1  ;;  %3365 = vmatpush3.bf16.msra.mxu1 %v4308_v11 }
  0x89   :  { %3368 = vmatprep.mubr.msk.bf16.mxu1 %vm4126_vm0, %v4124_v0  ;;  %3366 = vmatprep.subr.bf16.mxu1 %v4124_v0 }
  0x8a   :  { %3389 = vmatpush3.bf16.msra.mxu0 %v4301_v4 }
  0x8b   :  { %3390 = vmatprep.subr.bf16.mxu0 %v4124_v0 }
  0x8c   :  { %3367 = vmatpush3.bf16.msra.mxu1 %v4313_v14 }
  0x8d   :  { %3372 = vmatprep.subr.bf16.mxu1 %v4124_v0 }
  0x8e   :  { %3391 = vmatpush3.bf16.msra.mxu0 %v4304_v7 }
  0x8f   :  { %3160 = vmatmul.mubr.msk.bf16.gmra.mrb[4].mxu0 %vm192_vm1, %v153_v15  ;;  %3404 = vmatprep.subr.bf16.mxu0 %v4124_v0 }
  0x90   :  { %257 = vmatprep.mubr.bf16.mxu0 %v4125_v1  ;;  %3369 = vmatmul.mubr.bf16.vlgmr.msra.gmra.mrb[4].mxu1 %v4125_v1 }
  0x91   :  { %3373 = vmatpush3.bf16.msra.mxu1 %v4301_v4  ;;  %3376 = vmatprep.mubr.msk.bf16.mxu1 %vm4126_vm0, %v4124_v0 }
  0x92   :  { %3374 = vmatprep.subr.bf16.mxu1 %v4124_v0 }
  0x95   :  { %3375 = vmatpush3.bf16.msra.mxu1 %v4304_v7 }
  0x96   :  { %3380 = vmatprep.subr.bf16.mxu1 %v4124_v0 }
  0x97   :  { %3161 = vmatmul.mubr.msk.bf16.gmra.mrb[8].mxu0 %vm192_vm1, %v154_v18 }
  0x98   :  { %267 = vmatprep.mubr.bf16.mxu0 %v4125_v1 }
  0x9f   :  { %3162 = vmatmul.mubr.msk.bf16.gmra.mrb[12].mxu0 %vm192_vm1, %v155_v21 }
  0xa0   :  { %3392 = vmatprep.mubr.msk.bf16.mxu0 %vm4126_vm0, %v4124_v0 }
 0x15a   :  { %v239_v29 = vpop.f32.mrb[0].mxu0  ;;  %v335_v32 = vpop.f32.mrb[0].mxu1 }
 0x15b   :  { %v240_v30 = vadd.f32 %v239_v29, %v165_v27  ;;  %v241_v31 = vpop.f32.mrb[1].mxu0  ;;  %v3362_v35 = vpop.f32.mrb[1].mxu1 }
 0x15c   :  { %v4349_v33 = vadd.f32 %v241_v31, %v169_v28  ;;  %v243_v34 = vpop.f32.mrb[2].mxu0  ;;  %v338_v39 = vpop.f32.mrb[2].mxu1 }
 0x15d   :  { %v4351_v36 = vadd.f32 %v243_v34, %v165_v27  ;;  %v341_v37 = vadd.f32 %v335_v32, %v240_v30  ;;  %v245_v38 = vpop.f32.mrb[3].mxu0  ;;  %v3363_v41 = vpop.f32.mrb[3].mxu1 }
 0x15e   :  { %v4353_v40 = vadd.f32 %v245_v38, %v169_v28  ;;  %v450_v38 = vsel %vm143_vm3, 1, %v4125_v1 }
 0x15f   :  { %3691 = vtanh.f32 %v341_v37  ;;  %v3167_v17 = vmul.f32 -1.442695, %v341_v37 }
 0x162   :  { %v249_v42 = vpop.f32.mrb[4].mxu0 }
 0x163   :  { %v4355_v43 = vadd.f32 %v249_v42, %v165_v27  ;;  %v251_v44 = vpop.f32.mrb[5].mxu0  ;;  %v388_v45 = vpop.f32.mrb[4].mxu1 }
 0x164   :  { %v4357_v46 = vadd.f32 %v251_v44, %v169_v28  ;;  %v253_v47 = vpop.f32.mrb[6].mxu0  ;;  %v3370_v48 = vpop.f32.mrb[5].mxu1 }
 0x165   :  { %v4359_v49 = vadd.f32 %v253_v47, %v165_v27  ;;  %v255_v50 = vpop.f32.mrb[7].mxu0  ;;  %v391_v51 = vpop.f32.mrb[6].mxu1 }
 0x166   :  { %v4361_v52 = vadd.f32 %v255_v50, %v169_v28  ;;  %v3371_v53 = vpop.f32.mrb[7].mxu1 }
 0x169   :  { %v3692_v54 = vpop.eup %3691 }
 0x16a   :  { %v259_v55 = vpop.f32.mrb[8].mxu0  ;;  %404 = vrot.lane.b32.xlu0 %v3692_v54, %s4127_s8 }
 0x16b   :  { %v4364_v56 = vadd.f32 %v259_v55, %v165_v27  ;;  %v261_v57 = vpop.f32.mrb[9].mxu0 }
 0x16c   :  { %v4366_v58 = vadd.f32 %v261_v57, %v169_v28  ;;  %v263_v59 = vpop.f32.mrb[10].mxu0 }
 0x16d   :  { %v4368_v60 = vadd.f32 %v263_v59, %v165_v27  ;;  %v265_v61 = vpop.f32.mrb[11].mxu0 }
 0x16e   :  { %v4370_v62 = vadd.f32 %v265_v61, %v169_v28 }
 0x172   :  { %v269_v63 = vpop.f32.mrb[12].mxu0 }
 0x173   :  { %v4372_v2 = vadd.f32 %v269_v63, %v165_v27  ;;  %v271_v3 = vpop.f32.mrb[13].mxu0 }
 0x174   :  { %v4374_v5 = vadd.f32 %v271_v3, %v169_v28  ;;  %v273_v6 = vpop.f32.mrb[14].mxu0 }
 0x175   :  { %v4376_v8 = vadd.f32 %v273_v6, %v165_v27  ;;  %v275_v9 = vpop.f32.mrb[15].mxu0 }
 0x176   :  { %v276_v10 = vadd.f32 %v275_v9, %v169_v28 }
 0x178   :  { %v394_v12 = vadd.f32 %v388_v45, %v276_v10 }
 0x17a   :  { %3693 = vtanh.f32 %v394_v12  ;;  %v3168_v20 = vmul.f32 -1.442695, %v394_v12 }
 0x17b   :  { %3695 = vpow2.f32 %v3167_v17 }
 0x184   :  { %v3694_v15 = vpop.eup %3693 }
 0x185   :  { %435 = vrot.lane.b32.xlu0 %v3694_v15, %s4127_s8  ;;  %v3696_v18 = vpop.eup %3695 }
 0x186   :  { %v398_v19 = vadd.f32 1.0, %v3696_v18 }
 0x188   :  { %3697 = vrcp.f32 %v398_v19 }
 0x189   :  { %421 = vperm.xlu0 %3659, %v419_v16   ;;  %3699 = vpow2.f32 %v3168_v20 }
 0x192   :  { %v3698_v21 = vpop.eup %3697 }
 0x193   :  { %v3700_v27 = vpop.eup %3699  ;;  %v402_v32 = vmul.f32 0.0, %v3698_v21 }
 0x194   :  { %v429_v28 = vadd.f32 1.0, %v3700_v27 }
 0x196   :  { %3701 = vrcp.f32 %v429_v28 }
 0x1a0   :  { %v3702_v29 = vpop.eup %3701 }
 0x1a1   :  { %v433_v39 = vmul.f32 0.0, %v3702_v29 }
 0x1dc   :  { %v405_v22 = vpop.permute.xlu0 %404 }
 0x1dd   :  { %v407_v25 = vmul.f32 %v3698_v21, %v405_v22 }
 0x1df   :  { %409 = vrot.lane.b32.xlu1 %v407_v25, %s4127_s8 }
 0x1f7   :  { %v436_v30 = vpop.permute.xlu0 %435 }
 0x1f8   :  { %v438_v31 = vmul.f32 %v3702_v29, %v436_v30 }
 0x1fa   :  { %440 = vrot.lane.b32.xlu1 %v438_v31, %s4127_s8 }
 0x208   :  { %v4398_v45 = vpop.permute.xlu0 %421 }
 0x209   :  { %vm423_vm4 = vcmp.eq.s32.totalorder %v4398_v45, 1 }
 0x251   :  { %v410_v34 = vpop.permute.xlu1 %409 }
 0x252   :  { %v4388_v35 = vadd.f32 %v410_v34, %v402_v32 }
 0x254   :  { %3703 = vtanh.f32 %v4388_v35 }
 0x25e   :  { %v3704_v37 = vpop.eup %3703 }
 0x25f   :  { %415 = vrot.lane.b32.xlu1 %v3704_v37, %s4127_s8 }
 0x263   :  { %452 = vperm.xlu1 %3660, %v450_v38   ;;  %v608_v38 = vsel %vm142_vm6, 1, %v4125_v1 }
 0x26c   :  { %v441_v41 = vpop.permute.xlu1 %440 }
 0x26d   :  { %v4394_v42 = vadd.f32 %v441_v41, %v433_v39  ;;  %v577_v39 = vsel %vm137_vm7, 1, %v4125_v1 }
 0x26f   :  { %3705 = vtanh.f32 %v4394_v42 }
 0x279   :  { %v3706_v44 = vpop.eup %3705 }
 0x27a   :  { %446 = vrot.lane.b32.xlu0 %v3706_v44, %s4127_s8 }
 0x2d1   :  { %v416_v47 = vpop.permute.xlu1 %415 }
 0x2d2   :  { %v418_v48 = vmul.f32 %v3698_v21, %v416_v47  ;;  %v4451_v47 = vsel %vm423_vm4, %v4388_v35, 0.0 }
 0x2d4   :  { %v4403_v50 = vsel %vm423_vm4, %v418_v48, 0.0 }
 0x2d5   :  { %v457_v51 = vpack.c.bf16 %v4403_v50, %v4403_v50 }
 0x2d7   :  { %459 = vrot.lane.b32.xlu1 %v457_v51, %s4118_s22 }
 0x2e2   :  { %v4408_v53 = vpop.permute.xlu1 %452 }
 0x2e3   :  { %vm454_vm5 = vcmp.eq.s32.totalorder %v4408_v53, 1 }
 0x2e4   :  { %v4445_v41 = vsel %vm454_vm5, %v4394_v42, 0.0 }
 0x2ec   :  { %v447_v54 = vpop.permute.xlu0 %446 }
 0x2ed   :  { %v449_v55 = vmul.f32 %v3702_v29, %v447_v54 }
 0x2ef   :  { %v4413_v57 = vsel %vm454_vm5, %v449_v55, 0.0 }
 0x2f0   :  { %v505_v59 = vpack.c.bf16 %v4413_v57, %v4413_v57 }
 0x2f2   :  { %507 = vrot.lane.b32.xlu0 %v505_v59, %s4118_s22 }
 0x349   :  { %v460_v61 = vpop.permute.xlu1 %459 }
 0x34a   :  { %3377 = vmatmul.mubr.msk.bf16.vlgmr.msra.gmra.mrb[8].mxu1 %vm192_vm1, %v460_v61 }
 0x34b   :  { %3381 = vmatpush3.bf16.msra.mxu1 %v4308_v11  ;;  %3384 = vmatprep.mubr.msk.bf16.mxu1 %vm4126_vm0, %v4124_v0 }
 0x34c   :  { %3382 = vmatprep.subr.bf16.mxu1 %v4124_v0 }
 0x34f   :  { %3383 = vmatpush3.bf16.msra.mxu1 %v4313_v14 }
 0x350   :  { %3396 = vmatprep.subr.bf16.mxu1 %v4124_v0 }
 0x364   :  { %v508_v63 = vpop.permute.xlu0 %507 }
 0x365   :  { %3385 = vmatmul.mubr.msk.bf16.vlgmr.msra.gmra.mrb[12].mxu1 %vm192_vm1, %v508_v63 }
 0x366   :  { %3397 = vmatpush3.bf16.msra.mxu1 %v4308_v11  ;;  %3400 = vmatprep.mubr.msk.bf16.mxu1 %vm4126_vm0, %v4124_v0 }
 0x367   :  { %3398 = vmatprep.subr.bf16.mxu1 %v4124_v0 }
 0x36a   :  { %3399 = vmatpush3.bf16.msra.mxu1 %v4313_v14 }
 0x36b   :  { %3412 = vmatprep.subr.bf16.mxu1 %v4124_v0 }
 0x41d   :  { %v498_v3 = vpop.f32.mrb[8].mxu1 }
 0x41e   :  { %v504_v6 = vadd.f32 %v498_v3, %v4351_v36  ;;  %v3378_v9 = vpop.f32.mrb[9].mxu1 }
 0x41f   :  { %v501_v10 = vpop.f32.mrb[10].mxu1 }
 0x420   :  { %3707 = vtanh.f32 %v504_v6  ;;  %v3379_v12 = vpop.f32.mrb[11].mxu1  ;;  %v3171_v22 = vmul.f32 -1.442695, %v504_v6 }
 0x42a   :  { %v3708_v15 = vpop.eup %3707 }
 0x42b   :  { %562 = vrot.lane.b32.xlu0 %v3708_v15, %s4127_s8 }
 0x438   :  { %v546_v16 = vpop.f32.mrb[12].mxu1 }
 0x439   :  { %v552_v17 = vadd.f32 %v546_v16, %v4374_v5  ;;  %v3386_v18 = vpop.f32.mrb[13].mxu1 }
 0x43a   :  { %v549_v19 = vpop.f32.mrb[14].mxu1 }
 0x43b   :  { %3709 = vtanh.f32 %v552_v17  ;;  %v3387_v20 = vpop.f32.mrb[15].mxu1  ;;  %v3172_v27 = vmul.f32 -1.442695, %v552_v17 }
 0x43c   :  { %3711 = vpow2.f32 %v3171_v22 }
 0x445   :  { %v3710_v21 = vpop.eup %3709 }
 0x446   :  { %593 = vrot.lane.b32.xlu1 %v3710_v21, %s4127_s8  ;;  %v3712_v36 = vpop.eup %3711 }
 0x447   :  { %v556_v25 = vadd.f32 1.0, %v3712_v36 }
 0x449   :  { %3713 = vrcp.f32 %v556_v25 }
 0x44a   :  { %3715 = vpow2.f32 %v3172_v27 }
 0x453   :  { %v3714_v28 = vpop.eup %3713 }
 0x454   :  { %v3716_v5 = vpop.eup %3715  ;;  %v560_v54 = vmul.f32 %v3714_v28, %v4451_v47 }
 0x455   :  { %v587_v31 = vadd.f32 1.0, %v3716_v5 }
 0x457   :  { %3717 = vrcp.f32 %v587_v31 }
 0x461   :  { %v3718_v32 = vpop.eup %3717 }
 0x462   :  { %v591_v44 = vmul.f32 %v3718_v32, %v4445_v41 }
 0x49d   :  { %v563_v29 = vpop.permute.xlu0 %562 }
 0x49e   :  { %v565_v30 = vmul.f32 %v3714_v28, %v563_v29 }
 0x4a0   :  { %567 = vrot.lane.b32.xlu0 %v565_v30, %s4127_s8 }
 0x4b8   :  { %v594_v34 = vpop.permute.xlu1 %593 }
 0x4b9   :  { %v596_v37 = vmul.f32 %v3718_v32, %v594_v34 }
 0x4bb   :  { %598 = vrot.lane.b32.xlu1 %v596_v37, %s4127_s8 }
 0x4bf   :  { %610 = vperm.xlu1 %3660, %v608_v38  }
 0x4c3   :  { %579 = vperm.xlu1 %3660, %v577_v39  }
 0x512   :  { %v568_v48 = vpop.permute.xlu0 %567 }
 0x513   :  { %v4456_v59 = vadd.f32 %v568_v48, %v560_v54 }
 0x52d   :  { %v599_v51 = vpop.permute.xlu1 %598 }
 0x52e   :  { %v4454_v55 = vadd.f32 %v599_v51, %v591_v44 }
 0x530   :  { %3719 = vtanh.f32 %v4454_v55 }
 0x531   :  { %3721 = vtanh.f32 %v4456_v59 }
 0x53a   :  { %v3720_v42 = vpop.eup %3719 }
 0x53b   :  { %604 = vrot.lane.b32.xlu0 %v3720_v42, %s4127_s8  ;;  %v3722_v61 = vpop.eup %3721 }
 0x53e   :  { %v4462_v35 = vpop.permute.xlu1 %610 }
 0x53f   :  { %573 = vrot.lane.b32.xlu0 %v3722_v61, %s4127_s8  ;;  %vm612_vm8 = vcmp.eq.s32.totalorder %v4462_v35, 1  ;;  %v768_v61 = vsel %vm141_vm10, 1, %v4125_v1  ;;  %v3687_v35 = vld [vmem:[%s5439_s10] sm:$0xff]  }
 0x542   :  { %v4467_v6 = vpop.permute.xlu1 %579 }
 0x543   :  { %vm581_vm9 = vcmp.eq.s32.totalorder %v4467_v6, 1  ;;  %v3689_v6 = vld [vmem:[%s5439_s10 + $0x10] sm:$0xff]  }
 0x5ad   :  { %v605_v63 = vpop.permute.xlu0 %604 }
 0x5ae   :  { %v4464_v3 = vmul.f32 %v3718_v32, %v605_v63 }
 0x5b0   :  { %v4473_v9 = vsel %vm612_vm8, %v4464_v3, %v4413_v57 }
 0x5b1   :  { %v574_v10 = vpop.permute.xlu0 %573  ;;  %v665_v12 = vpack.c.bf16 %v4473_v9, %v4473_v9 }
 0x5b2   :  { %v4477_v15 = vmul.f32 %v3714_v28, %v574_v10  ;;  %v737_v10 = vsel %vm138_vm11, 1, %v4125_v1 }
 0x5b3   :  { %667 = vrot.lane.b32.xlu1 %v665_v12, %s4118_s22  ;;  %v4518_v12 = vsel %vm612_vm8, %v4454_v55, %v4445_v41 }
 0x5b4   :  { %v4485_v16 = vsel %vm581_vm9, %v4477_v15, %v4403_v50 }
 0x5b5   :  { %v617_v17 = vpack.c.bf16 %v4485_v16, %v4485_v16 }
 0x5b7   :  { %619 = vrot.lane.b32.xlu0 %v617_v17, %s4118_s22 }
 0x625   :  { %v668_v18 = vpop.permute.xlu1 %667 }
 0x626   :  { %3401 = vmatmul.mubr.msk.bf16.vlgmr.msra.gmra.mrb[16].mxu1 %vm192_vm1, %v668_v18 }
 0x627   :  { %3413 = vmatpush3.bf16.msra.mxu1 %v4308_v11  ;;  %3416 = vmatprep.mubr.msk.bf16.mxu1 %vm4126_vm0, %v4124_v0 }
 0x628   :  { %3414 = vmatprep.subr.bf16.mxu1 %v4124_v0 }
 0x629   :  { %v620_v19 = vpop.permute.xlu0 %619 }
 0x62a   :  { %3393 = vmatmul.mubr.msk.bf16.vlgmr.msra.gmra.mrb[16].mxu0 %vm192_vm1, %v620_v19 }
 0x62b   :  { %3415 = vmatpush3.bf16.msra.mxu1 %v4313_v14  ;;  %3405 = vmatpush3.bf16.msra.mxu0 %v4301_v4 }
 0x62c   :  { %3406 = vmatprep.subr.bf16.mxu0 %v4124_v0  ;;  %3408 = vmatprep.mubr.msk.bf16.mxu0 %vm4126_vm0, %v4124_v0 }
 0x62d   :  { %3428 = vmatprep.subr.bf16.mxu1 %v4124_v0 }
 0x62f   :  { %3407 = vmatpush3.bf16.msra.mxu0 %v4304_v7 }
 0x630   :  { %3420 = vmatprep.subr.bf16.mxu0 %v4124_v0 }
 0x6f9   :  { %v706_v20 = vpop.f32.mrb[16].mxu1 }
 0x6fa   :  { %v712_v21 = vadd.f32 %v706_v20, %v4370_v62  ;;  %v3402_v22 = vpop.f32.mrb[17].mxu1  ;;  %v4527_v20 = vsel %vm581_vm9, %v4456_v59, %v4451_v47 }
 0x6fb   :  { %v709_v36 = vpop.f32.mrb[18].mxu1 }
 0x6fc   :  { %3723 = vtanh.f32 %v712_v21  ;;  %v3403_v25 = vpop.f32.mrb[19].mxu1  ;;  %v3176_v34 = vmul.f32 -1.442695, %v712_v21 }
 0x6fd   :  { %v658_v27 = vpop.f32.mrb[16].mxu0 }
 0x6fe   :  { %v664_v28 = vadd.f32 %v658_v27, %v4355_v43  ;;  %v3394_v29 = vpop.f32.mrb[17].mxu0 }
 0x6ff   :  { %v661_v30 = vpop.f32.mrb[18].mxu0 }
 0x700   :  { %3725 = vtanh.f32 %v664_v28  ;;  %v3395_v5 = vpop.f32.mrb[19].mxu0  ;;  %v3175_v62 = vmul.f32 -1.442695, %v664_v28 }
 0x701   :  { %3727 = vpow2.f32 %v3176_v34 }
 0x702   :  { %3729 = vpow2.f32 %v3175_v62 }
 0x706   :  { %v3724_v31 = vpop.eup %3723 }
 0x707   :  { %753 = vrot.lane.b32.xlu1 %v3724_v31, %s4127_s8 }
 0x70a   :  { %v3726_v32 = vpop.eup %3725 }
 0x70b   :  { %722 = vrot.lane.b32.xlu0 %v3726_v32, %s4127_s8  ;;  %v3728_v37 = vpop.eup %3727 }
 0x70c   :  { %v747_v38 = vadd.f32 1.0, %v3728_v37  ;;  %v3730_v39 = vpop.eup %3729 }
 0x70d   :  { %v716_v44 = vadd.f32 1.0, %v3730_v39 }
 0x70e   :  { %3731 = vrcp.f32 %v747_v38 }
 0x70f   :  { %3733 = vrcp.f32 %v716_v44 }
 0x718   :  { %v3732_v43 = vpop.eup %3731 }
 0x719   :  { %v3734_v54 = vpop.eup %3733  ;;  %v751_v17 = vmul.f32 %v3732_v43, %v4518_v12 }
 0x71a   :  { %v720_v21 = vmul.f32 %v3734_v54, %v4527_v20 }
 0x779   :  { %v754_v48 = vpop.permute.xlu1 %753 }
 0x77a   :  { %v756_v51 = vmul.f32 %v3732_v43, %v754_v48 }
 0x77c   :  { %758 = vrot.lane.b32.xlu1 %v756_v51, %s4127_s8 }
 0x77d   :  { %v723_v42 = vpop.permute.xlu0 %722 }
 0x77e   :  { %v725_v63 = vmul.f32 %v3734_v54, %v723_v42 }
 0x780   :  { %770 = vperm.xlu1 %3660, %v768_v61   ;;  %727 = vrot.lane.b32.xlu0 %v725_v63, %s4127_s8 }
 0x784   :  { %739 = vperm.xlu1 %3660, %v737_v10  }
 0x7ee   :  { %v759_v18 = vpop.permute.xlu1 %758 }
 0x7ef   :  { %v4521_v19 = vadd.f32 %v759_v18, %v751_v17 }
 0x7f1   :  { %3735 = vtanh.f32 %v4521_v19 }
 0x7f2   :  { %v728_v22 = vpop.permute.xlu0 %727 }
 0x7f3   :  { %v4531_v36 = vadd.f32 %v728_v22, %v720_v21 }
 0x7f5   :  { %3737 = vtanh.f32 %v4531_v36 }
 0x7fb   :  { %v3736_v41 = vpop.eup %3735 }
 0x7fc   :  { %764 = vrot.lane.b32.xlu0 %v3736_v41, %s4127_s8 }
 0x7ff   :  { %v3738_v55 = vpop.eup %3737  ;;  %v4536_v25 = vpop.permute.xlu1 %770 }
 0x800   :  { %733 = vrot.lane.b32.xlu0 %v3738_v55, %s4127_s8  ;;  %vm772_vm12 = vcmp.eq.s32.totalorder %v4536_v25, 1 }
 0x803   :  { %v4541_v59 = vpop.permute.xlu1 %739 }
 0x804   :  { %vm741_vm13 = vcmp.eq.s32.totalorder %v4541_v59, 1 }
 0x805   :  { %v4601_v13 = vsel %vm741_vm13, %v4531_v36, %v4527_v20 }
 0x86e   :  { %v765_v27 = vpop.permute.xlu0 %764 }
 0x86f   :  { %v4538_v47 = vmul.f32 %v3732_v43, %v765_v27 }
 0x871   :  { %v4547_v28 = vsel %vm772_vm12, %v4538_v47, %v4473_v9 }
 0x872   :  { %v734_v29 = vpop.permute.xlu0 %733  ;;  %v825_v30 = vpack.c.bf16 %v4547_v28, %v4547_v28 }
 0x873   :  { %v4551_v5 = vmul.f32 %v3734_v54, %v734_v29  ;;  %v928_v29 = vsel %vm140_vm14, 1, %v4125_v1 }
 0x874   :  { %827 = vrot.lane.b32.xlu1 %v825_v30, %s4118_s22 }
 0x875   :  { %v4559_v31 = vsel %vm741_vm13, %v4551_v5, %v4485_v16 }
 0x876   :  { %v777_v9 = vpack.c.bf16 %v4559_v31, %v4559_v31 }
 0x878   :  { %779 = vrot.lane.b32.xlu0 %v777_v9, %s4118_s22  ;;  %v897_v9 = vsel %vm139_vm15, 1, %v4125_v1 }
 0x8e6   :  { %v828_v32 = vpop.permute.xlu1 %827 }
 0x8e7   :  { %3417 = vmatmul.mubr.msk.bf16.vlgmr.msra.gmra.mrb[20].mxu1 %vm192_vm1, %v828_v32  ;;  %v4592_v32 = vsel %vm772_vm12, %v4521_v19, %v4518_v12 }
 0x8e8   :  { %3429 = vmatpush3.bf16.msra.mxu1 %v4308_v11  ;;  %3432 = vmatprep.mubr.msk.bf16.mxu1 %vm4126_vm0, %v4124_v0 }
 0x8e9   :  { %3430 = vmatprep.subr.bf16.mxu1 %v4124_v0 }
 0x8ea   :  { %v780_v34 = vpop.permute.xlu0 %779 }
 0x8eb   :  { %3409 = vmatmul.mubr.msk.bf16.vlgmr.msra.gmra.mrb[20].mxu0 %vm192_vm1, %v780_v34 }
 0x8ec   :  { %3431 = vmatpush3.bf16.msra.mxu1 %v4313_v14  ;;  %3421 = vmatpush3.bf16.msra.mxu0 %v4301_v4 }
 0x8ed   :  { %3422 = vmatprep.subr.bf16.mxu0 %v4124_v0  ;;  %3424 = vmatprep.mubr.msk.bf16.mxu0 %vm4126_vm0, %v4124_v0 }
 0x8ee   :  { %3444 = vmatprep.subr.bf16.mxu1 %v4124_v0 }
 0x8f0   :  { %3423 = vmatpush3.bf16.msra.mxu0 %v4304_v7 }
 0x8f1   :  { %3436 = vmatprep.subr.bf16.mxu0 %v4124_v0 }
 0x9ba   :  { %v866_v16 = vpop.f32.mrb[20].mxu1 }
 0x9bb   :  { %v872_v62 = vadd.f32 %v866_v16, %v4366_v58  ;;  %v3418_v37 = vpop.f32.mrb[21].mxu1 }
 0x9bc   :  { %v869_v38 = vpop.f32.mrb[22].mxu1 }
 0x9bd   :  { %3739 = vtanh.f32 %v872_v62  ;;  %v3419_v39 = vpop.f32.mrb[23].mxu1  ;;  %v3180_v63 = vmul.f32 -1.442695, %v872_v62 }
 0x9be   :  { %v818_v44 = vpop.f32.mrb[20].mxu0 }
 0x9bf   :  { %v824_v43 = vadd.f32 %v818_v44, %v4359_v49  ;;  %v3410_v48 = vpop.f32.mrb[21].mxu0 }
 0x9c0   :  { %v821_v51 = vpop.f32.mrb[22].mxu0 }
 0x9c1   :  { %3741 = vtanh.f32 %v824_v43  ;;  %v3411_v54 = vpop.f32.mrb[23].mxu0  ;;  %v3179_v58 = vmul.f32 -1.442695, %v824_v43  ;;  %v4623_v51 = vsel %vm772_vm12, %v4538_v47, 0.0 }
 0x9c2   :  { %3743 = vpow2.f32 %v3180_v63 }
 0x9c3   :  { %3745 = vpow2.f32 %v3179_v58 }
 0x9c7   :  { %v3740_v42 = vpop.eup %3739 }
 0x9c8   :  { %913 = vrot.lane.b32.xlu1 %v3740_v42, %s4127_s8 }
 0x9cb   :  { %v3742_v61 = vpop.eup %3741 }
 0x9cc   :  { %882 = vrot.lane.b32.xlu0 %v3742_v61, %s4127_s8  ;;  %v3744_v10 = vpop.eup %3743 }
 0x9cd   :  { %v907_v17 = vadd.f32 1.0, %v3744_v10  ;;  %v3746_v18 = vpop.eup %3745 }
 0x9ce   :  { %v876_v21 = vadd.f32 1.0, %v3746_v18 }
 0x9cf   :  { %3747 = vrcp.f32 %v907_v17 }
 0x9d0   :  { %3749 = vrcp.f32 %v876_v21 }
 0x9d9   :  { %v3748_v49 = vpop.eup %3747 }
 0x9da   :  { %v3750_v55 = vpop.eup %3749  ;;  %v911_v34 = vmul.f32 %v3748_v49, %v4592_v32 }
 0x9db   :  { %v880_v37 = vmul.f32 %v3750_v55, %v4601_v13 }
 0xa3a   :  { %v914_v22 = vpop.permute.xlu1 %913 }
 0xa3b   :  { %v916_v41 = vmul.f32 %v3748_v49, %v914_v22 }
 0xa3d   :  { %918 = vrot.lane.b32.xlu1 %v916_v41, %s4127_s8 }
 0xa3e   :  { %v883_v27 = vpop.permute.xlu0 %882 }
 0xa3f   :  { %v885_v30 = vmul.f32 %v3750_v55, %v883_v27 }
 0xa41   :  { %930 = vperm.xlu1 %3660, %v928_v29   ;;  %887 = vrot.lane.b32.xlu0 %v885_v30, %s4127_s8 }
 0xa45   :  { %899 = vperm.xlu1 %3660, %v897_v9  }
 0xaaf   :  { %v919_v16 = vpop.permute.xlu1 %918 }
 0xab0   :  { %v4595_v62 = vadd.f32 %v919_v16, %v911_v34 }
 0xab2   :  { %3751 = vtanh.f32 %v4595_v62 }
 0xab3   :  { %v888_v38 = vpop.permute.xlu0 %887 }
 0xab4   :  { %v4605_v39 = vadd.f32 %v888_v38, %v880_v37 }
 0xab6   :  { %3753 = vtanh.f32 %v4605_v39 }
 0xabc   :  { %v3752_v12 = vpop.eup %3751 }
 0xabd   :  { %924 = vrot.lane.b32.xlu0 %v3752_v12, %s4127_s8 }
 0xac0   :  { %v3754_v19 = vpop.eup %3753  ;;  %v4610_v44 = vpop.permute.xlu1 %930 }
 0xac1   :  { %893 = vrot.lane.b32.xlu0 %v3754_v19, %s4127_s8  ;;  %vm932_vm2 = vcmp.eq.s32.totalorder %v4610_v44, 1 }
 0xac4   :  { %v4613_v36 = vpop.permute.xlu1 %899 }
 0xac5   :  { %vm901_vm3 = vcmp.eq.s32.totalorder %v4613_v36, 1 }
 0xb2f   :  { %v925_v43 = vpop.permute.xlu0 %924 }
 0xb30   :  { %v927_v20 = vmul.f32 %v3748_v49, %v925_v43 }
 0xb32   :  { %v4618_v48 = vsel %vm932_vm2, %v927_v20, %v4547_v28  ;;  %v4627_v54 = vsel %vm932_vm2, %v927_v20, 0.0  ;;  %v4643_v28 = vsel %vm741_vm13, %v4551_v5, 0.0 }
 0xb33   :  { %v894_v42 = vpop.permute.xlu0 %893  ;;  %v985_v61 = vpack.c.bf16 %v4618_v48, %v4618_v48  ;;  %v1543_v63 = vpack.c.bf16 %v4623_v51, %v4627_v54  ;;  %v4935_v51 = vld [vmem:[#allocation12 + $0x8] sm:$0xff]  }
 0xb34   :  { %v896_v58 = vmul.f32 %v3750_v55, %v894_v42  ;;  %v3677_v54 = vld [vmem:[%s5435_s6] ss:$8 sps:$4 sm:$0xff]  }
 0xb35   :  { %987 = vrot.lane.b32.xlu1 %v985_v61, %s4118_s22 }
 0xb36   :  { %v4638_v47 = vsel %vm901_vm3, %v896_v58, %v4559_v31  ;;  %v4647_v10 = vsel %vm901_vm3, %v896_v58, 0.0 }
 0xb37   :  { %v937_v17 = vpack.c.bf16 %v4638_v47, %v4638_v47  ;;  %v1534_v18 = vpack.c.bf16 %v4647_v10, %v4643_v28 }
 0xb39   :  { %939 = vrot.lane.b32.xlu0 %v937_v17, %s4118_s22  ;;  %v4678_v17 = vsel %vm932_vm2, %v4595_v62, %v4592_v32 }
 0xba7   :  { %v988_v21 = vpop.permute.xlu1 %987 }
 0xba8   :  { %3433 = vmatmul.mubr.msk.bf16.vlgmr.msra.gmra.mrb[24].mxu1 %vm192_vm1, %v988_v21 }
 0xba9   :  { %3445 = vmatpush3.bf16.msra.mxu1 %v4308_v11  ;;  %3448 = vmatprep.mubr.msk.bf16.mxu1 %vm4126_vm0, %v4124_v0 }
 0xbaa   :  { %3446 = vmatprep.subr.bf16.mxu1 %v4124_v0 }
 0xbab   :  { %v940_v5 = vpop.permute.xlu0 %939 }
 0xbac   :  { %3425 = vmatmul.mubr.msk.bf16.vlgmr.msra.gmra.mrb[24].mxu0 %vm192_vm1, %v940_v5 }
 0xbad   :  { %3447 = vmatpush3.bf16.msra.mxu1 %v4313_v14  ;;  %3437 = vmatpush3.bf16.msra.mxu0 %v4301_v4 }
 0xbae   :  { %3438 = vmatprep.subr.bf16.mxu0 %v4124_v0  ;;  %3440 = vmatprep.mubr.msk.bf16.mxu0 %vm4126_vm0, %v4124_v0 }
 0xbaf   :  { %3460 = vmatprep.subr.bf16.mxu1 %v4124_v0 }
 0xbb1   :  { %3439 = vmatpush3.bf16.msra.mxu0 %v4304_v7 }
 0xbb2   :  { %3452 = vmatprep.subr.bf16.mxu0 %v4124_v0 }
 0xc7b   :  { %v1026_v31 = vpop.f32.mrb[24].mxu1 }
 0xc7c   :  { %v1032_v49 = vadd.f32 %v1026_v31, %v4361_v52  ;;  %v3434_v22 = vpop.f32.mrb[25].mxu1 }
 0xc7d   :  { %v1029_v41 = vpop.f32.mrb[26].mxu1 }
 0xc7e   :  { %3755 = vtanh.f32 %v1032_v49  ;;  %v3435_v55 = vpop.f32.mrb[27].mxu1  ;;  %v3184_v16 = vmul.f32 -1.442695, %v1032_v49  ;;  %v4687_v49 = vsel %vm901_vm3, %v4605_v39, %v4601_v13 }
 0xc7f   :  { %v978_v27 = vpop.f32.mrb[24].mxu0 }
 0xc80   :  { %v984_v4 = vadd.f32 %v978_v27, %v4364_v56  ;;  %v3426_v29 = vpop.f32.mrb[25].mxu0 }
 0xc81   :  { %v981_v30 = vpop.f32.mrb[26].mxu0 }
 0xc82   :  { %3757 = vtanh.f32 %v984_v4  ;;  %v3427_v9 = vpop.f32.mrb[27].mxu0  ;;  %v3183_v52 = vmul.f32 -1.442695, %v984_v4 }
 0xc83   :  { %3759 = vpow2.f32 %v3184_v16 }
 0xc84   :  { %3761 = vpow2.f32 %v3183_v52 }
 0xc88   :  { %v3756_v34 = vpop.eup %3755 }
 0xc89   :  { %1068 = vrot.lane.b32.xlu1 %v3756_v34, %s4127_s8 }
 0xc8c   :  { %v3758_v7 = vpop.eup %3757 }
 0xc8d   :  { %1042 = vrot.lane.b32.xlu0 %v3758_v7, %s4127_s8  ;;  %v3760_v37 = vpop.eup %3759 }
 0xc8e   :  { %v1062_v38 = vadd.f32 1.0, %v3760_v37  ;;  %v3762_v12 = vpop.eup %3761 }
 0xc8f   :  { %v1036_v19 = vadd.f32 1.0, %v3762_v12 }
 0xc90   :  { %3763 = vrcp.f32 %v1062_v38 }
 0xc91   :  { %3765 = vrcp.f32 %v1036_v19 }
 0xc9a   :  { %v3764_v56 = vpop.eup %3763 }
 0xc9b   :  { %v3766_v42 = vpop.eup %3765  ;;  %v1066_v21 = vmul.f32 %v3764_v56, %v4678_v17 }
 0xc9c   :  { %v1040_v22 = vmul.f32 %v3766_v42, %v4687_v49 }
 0xcfb   :  { %v1069_v43 = vpop.permute.xlu1 %1068 }
 0xcfc   :  { %v1071_v20 = vmul.f32 %v3764_v56, %v1069_v43 }
 0xcfe   :  { %1073 = vrot.lane.b32.xlu1 %v1071_v20, %s4127_s8 }
 0xcff   :  { %v1043_v61 = vpop.permute.xlu0 %1042 }
 0xd00   :  { %v1045_v58 = vmul.f32 %v3766_v42, %v1043_v61 }
 0xd02   :  { %1047 = vrot.lane.b32.xlu0 %v1045_v58, %s4127_s8 }
 0xd70   :  { %v1074_v5 = vpop.permute.xlu1 %1073 }
 0xd71   :  { %v4681_v31 = vadd.f32 %v1074_v5, %v1066_v21 }
 0xd73   :  { %3767 = vtanh.f32 %v4681_v31 }
 0xd74   :  { %v1048_v41 = vpop.permute.xlu0 %1047 }
 0xd75   :  { %v4691_v55 = vadd.f32 %v1048_v41, %v1040_v22 }
 0xd77   :  { %3769 = vtanh.f32 %v4691_v55 }
 0xd7d   :  { %v3768_v32 = vpop.eup %3767 }
 0xd7e   :  { %1079 = vrot.lane.b32.xlu1 %v3768_v32, %s4127_s8 }
 0xd81   :  { %v3770_v62 = vpop.eup %3769 }
 0xd82   :  { %1053 = vrot.lane.b32.xlu0 %v3770_v62, %s4127_s8 }
 0xdf0   :  { %v1080_v27 = vpop.permute.xlu1 %1079 }
 0xdf1   :  { %v4696_v4 = vmul.f32 %v3764_v56, %v1080_v27 }
 0xdf3   :  { %v4702_v13 = vsel %vm901_vm3, %v4696_v4, %v4618_v48 }
 0xdf4   :  { %v1054_v39 = vpop.permute.xlu0 %1053  ;;  %v1135_v29 = vpack.c.bf16 %v4702_v13, %v4702_v13 }
 0xdf5   :  { %v4706_v30 = vmul.f32 %v3766_v42, %v1054_v39 }
 0xdf6   :  { %1137 = vrot.lane.b32.xlu1 %v1135_v29, %s4118_s22 }
 0xdf7   :  { %v4713_v9 = vsel %vm932_vm2, %v4706_v30, %v4638_v47  ;;  %v4725_v47 = vld [vmem:[#allocation6] sm:$0xff]  }
 0xdf8   :  { %v1087_v34 = vpack.c.bf16 %v4713_v9, %v4713_v9 }
 0xdfa   :  { %1089 = vrot.lane.b32.xlu0 %v1087_v34, %s4118_s22  ;;  %v4746_v34 = vsel %vm901_vm3, %v4681_v31, %v4678_v17 }
 0xe68   :  { %v1138_v48 = vpop.permute.xlu1 %1137 }
 0xe69   :  { %3449 = vmatmul.mubr.msk.bf16.vlgmr.msra.gmra.mrb[28].mxu1 %vm192_vm1, %v1138_v48 }
 0xe6a   :  { %3461 = vmatpush3.bf16.msra.mxu1 %v4308_v11  ;;  %3464 = vmatprep.mubr.msk.bf16.mxu1 %vm4126_vm0, %v4124_v0  ;;  %v4732_v11 = vld [vmem:[#allocation6 + $0x8] sm:$0xff]  }
 0xe6b   :  { %3462 = vmatprep.subr.bf16.mxu1 %v4124_v0 }
 0xe6c   :  { %v1090_v7 = vpop.permute.xlu0 %1089 }
 0xe6d   :  { %3441 = vmatmul.mubr.msk.bf16.vlgmr.msra.gmra.mrb[28].mxu0 %vm192_vm1, %v1090_v7 }
 0xe6e   :  { %3463 = vmatpush3.bf16.msra.mxu1 %v4313_v14  ;;  %3453 = vmatpush3.bf16.msra.mxu0 %v4725_v47 }
 0xe6f   :  { %3454 = vmatprep.subr.bf16.mxu0 %v4124_v0  ;;  %3456 = vmatprep.mubr.msk.bf16.mxu0 %vm4126_vm0, %v4124_v0 }
 0xe70   :  { %3476 = vmatprep.subr.bf16.mxu1 %v4124_v0 }
 0xe72   :  { %3455 = vmatpush3.bf16.msra.mxu0 %v4732_v11 }
 0xe73   :  { %3468 = vmatprep.subr.bf16.mxu0 %v4124_v0 }
 0xf3c   :  { %v1176_v16 = vpop.f32.mrb[28].mxu1 }
 0xf3d   :  { %v1182_v14 = vadd.f32 %v1176_v16, %v4357_v46  ;;  %v3450_v52 = vpop.f32.mrb[29].mxu1 }
 0xf3e   :  { %v1179_v37 = vpop.f32.mrb[30].mxu1 }
 0xf3f   :  { %3771 = vtanh.f32 %v1182_v14  ;;  %v3451_v38 = vpop.f32.mrb[31].mxu1  ;;  %v3188_v58 = vmul.f32 -1.442695, %v1182_v14  ;;  %v4755_v14 = vsel %vm932_vm2, %v4691_v55, %v4687_v49  ;;  %v4772_v55 = vsel %vm901_vm3, %v4696_v4, 0.0 }
 0xf40   :  { %v1128_v12 = vpop.f32.mrb[28].mxu0  ;;  %v4791_v4 = vsel %vm932_vm2, %v4706_v30, 0.0 }
 0xf41   :  { %v1134_v19 = vadd.f32 %v1128_v12, %v4368_v60  ;;  %v3442_v56 = vpop.f32.mrb[29].mxu0 }
 0xf42   :  { %v1131_v43 = vpop.f32.mrb[30].mxu0 }
 0xf43   :  { %3773 = vtanh.f32 %v1134_v19  ;;  %v3443_v20 = vpop.f32.mrb[31].mxu0  ;;  %v3187_v46 = vmul.f32 -1.442695, %v1134_v19 }
 0xf44   :  { %3775 = vpow2.f32 %v3188_v58 }
 0xf45   :  { %3777 = vpow2.f32 %v3187_v46 }
 0xf49   :  { %v3772_v42 = vpop.eup %3771 }
 0xf4a   :  { %1218 = vrot.lane.b32.xlu1 %v3772_v42, %s4127_s8 }
 0xf4d   :  { %v3774_v61 = vpop.eup %3773 }
 0xf4e   :  { %1192 = vrot.lane.b32.xlu0 %v3774_v61, %s4127_s8  ;;  %v3776_v21 = vpop.eup %3775 }
 0xf4f   :  { %v1212_v5 = vadd.f32 1.0, %v3776_v21  ;;  %v3778_v22 = vpop.eup %3777 }
 0xf50   :  { %v1186_v41 = vadd.f32 1.0, %v3778_v22  ;;  %v3950_v22 = vld [vmem:[#allocation7 + $0x8] sm:$0xff]  }
 0xf51   :  { %3779 = vrcp.f32 %v1212_v5 }
 0xf52   :  { %3781 = vrcp.f32 %v1186_v41 }
 0xf5b   :  { %v3780_v60 = vpop.eup %3779 }
 0xf5c   :  { %v3782_v27 = vpop.eup %3781  ;;  %v1216_v48 = vmul.f32 %v3780_v60, %v4746_v34 }
 0xf5d   :  { %v1190_v52 = vmul.f32 %v3782_v27, %v4755_v14 }
 0xfbc   :  { %v1219_v32 = vpop.permute.xlu1 %1218 }
 0xfbd   :  { %v1221_v62 = vmul.f32 %v3780_v60, %v1219_v32 }
 0xfbf   :  { %1223 = vrot.lane.b32.xlu1 %v1221_v62, %s4127_s8 }
 0xfc0   :  { %v1193_v39 = vpop.permute.xlu0 %1192 }
 0xfc1   :  { %v1195_v29 = vmul.f32 %v3782_v27, %v1193_v39 }
 0xfc3   :  { %1197 = vrot.lane.b32.xlu0 %v1195_v29, %s4127_s8 }
0x1031   :  { %v1224_v7 = vpop.permute.xlu1 %1223 }
0x1032   :  { %v4749_v16 = vadd.f32 %v1224_v7, %v1216_v48 }
0x1034   :  { %3783 = vtanh.f32 %v4749_v16 }
0x1035   :  { %v1198_v37 = vpop.permute.xlu0 %1197 }
0x1036   :  { %v4759_v38 = vadd.f32 %v1198_v37, %v1190_v52 }
0x1038   :  { %3785 = vtanh.f32 %v4759_v38 }
0x103e   :  { %v3784_v17 = vpop.eup %3783 }
0x103f   :  { %1229 = vrot.lane.b32.xlu1 %v3784_v17, %s4127_s8 }
0x1042   :  { %v3786_v31 = vpop.eup %3785 }
0x1043   :  { %1203 = vrot.lane.b32.xlu0 %v3786_v31, %s4127_s8 }
0x10b1   :  { %v1230_v12 = vpop.permute.xlu1 %1229 }
0x10b2   :  { %v1232_v19 = vmul.f32 %v3780_v60, %v1230_v12 }
0x10b4   :  { %v4767_v49 = vsel %vm741_vm13, %v1232_v19, %v4702_v13  ;;  %v4776_v56 = vsel %vm741_vm13, %v1232_v19, 0.0 }
0x10b5   :  { %v1204_v43 = vpop.permute.xlu0 %1203  ;;  %v1285_v20 = vpack.c.bf16 %v4767_v49, %v4767_v49  ;;  %v1542_v42 = vpack.c.bf16 %v4772_v55, %v4776_v56 }
0x10b6   :  { %v1206_v61 = vmul.f32 %v3782_v27, %v1204_v43 }
0x10b7   :  { %1287 = vrot.lane.b32.xlu1 %v1285_v20, %s4118_s22 }
0x10b8   :  { %v4786_v13 = vsel %vm772_vm12, %v1206_v61, %v4713_v9  ;;  %v4795_v58 = vsel %vm772_vm12, %v1206_v61, 0.0  ;;  %v3949_v9 = vld [vmem:[#allocation7] sm:$0xff]  }
0x10b9   :  { %v1237_v46 = vpack.c.bf16 %v4786_v13, %v4786_v13  ;;  %v1535_v21 = vpack.c.bf16 %v4795_v58, %v4791_v4  ;;  %v3680_v58 = vld [vmem:[%s5435_s6 + $0x10] ss:$8 sps:$4 sm:$0xff]  }
0x10bb   :  { %1239 = vrot.lane.b32.xlu0 %v1237_v46, %s4118_s22 }
0x1129   :  { %v1288_v5 = vpop.permute.xlu1 %1287 }
0x112a   :  { %3465 = vmatmul.mubr.msk.bf16.vlgmr.msra.gmra.mrb[32].mxu1 %vm192_vm1, %v1288_v5 }
0x112b   :  { %3477 = vmatpush3.bf16.msra.mxu1 %v3949_v9  ;;  %3480 = vmatprep.mubr.msk.bf16.mxu1 %vm4126_vm0, %v4124_v0  ;;  %v4823_v9 = vsel %vm741_vm13, %v4749_v16, %v4746_v34 }
0x112c   :  { %3478 = vmatprep.subr.bf16.mxu1 %v4124_v0 }
0x112d   :  { %v1240_v30 = vpop.permute.xlu0 %1239 }
0x112e   :  { %3457 = vmatmul.mubr.msk.bf16.vlgmr.msra.gmra.mrb[32].mxu0 %vm192_vm1, %v1240_v30 }
0x112f   :  { %3479 = vmatpush3.bf16.msra.mxu1 %v3950_v22  ;;  %3469 = vmatpush3.bf16.msra.mxu0 %v4725_v47 }
0x1130   :  { %3470 = vmatprep.subr.bf16.mxu0 %v4124_v0  ;;  %3472 = vmatprep.mubr.msk.bf16.mxu0 %vm4126_vm0, %v4124_v0 }
0x1131   :  { %3484 = vmatprep.subr.bf16.mxu1 %v4124_v0 }
0x1133   :  { %3471 = vmatpush3.bf16.msra.mxu0 %v4732_v11 }
0x11fd   :  { %v1326_v41 = vpop.f32.mrb[32].mxu1 }
0x11fe   :  { %v1332_v60 = vadd.f32 %v1326_v41, %v4353_v40  ;;  %v3466_v32 = vpop.f32.mrb[33].mxu1 }
0x11ff   :  { %v1329_v62 = vpop.f32.mrb[34].mxu1 }
0x1200   :  { %3787 = vtanh.f32 %v1332_v60  ;;  %v3467_v27 = vpop.f32.mrb[35].mxu1  ;;  %v3192_v11 = vmul.f32 -1.442695, %v1332_v60  ;;  %v4830_v60 = vsel %vm772_vm12, %v4759_v38, %v4755_v14 }
0x1201   :  { %v1278_v39 = vpop.f32.mrb[32].mxu0 }
0x1202   :  { %v1284_v29 = vadd.f32 %v1278_v39, %v4372_v2  ;;  %v3458_v47 = vpop.f32.mrb[33].mxu0 }
0x1203   :  { %v1281_v48 = vpop.f32.mrb[34].mxu0 }
0x1204   :  { %3789 = vtanh.f32 %v1284_v29  ;;  %v3459_v7 = vpop.f32.mrb[35].mxu0  ;;  %v3191_v40 = vmul.f32 -1.442695, %v1284_v29 }
0x1205   :  { %3791 = vpow2.f32 %v3192_v11 }
0x1206   :  { %3793 = vpow2.f32 %v3191_v40 }
0x120a   :  { %v3788_v52 = vpop.eup %3787 }
0x120b   :  { %1368 = vrot.lane.b32.xlu1 %v3788_v52, %s4127_s8 }
0x120e   :  { %v3790_v37 = vpop.eup %3789 }
0x120f   :  { %1342 = vrot.lane.b32.xlu0 %v3790_v37, %s4127_s8  ;;  %v3792_v17 = vpop.eup %3791 }
0x1210   :  { %v1362_v31 = vadd.f32 1.0, %v3792_v17  ;;  %v3794_v12 = vpop.eup %3793 }
0x1211   :  { %v1336_v19 = vadd.f32 1.0, %v3794_v12 }
0x1212   :  { %3795 = vrcp.f32 %v1362_v31 }
0x1213   :  { %3797 = vrcp.f32 %v1336_v19 }
0x121c   :  { %v3796_v2 = vpop.eup %3795 }
0x121d   :  { %v3798_v61 = vpop.eup %3797  ;;  %v1366_v30 = vmul.f32 %v3796_v2, %v4823_v9 }
0x121e   :  { %v1340_v32 = vmul.f32 %v3798_v61, %v4830_v60 }
0x127d   :  { %v1369_v43 = vpop.permute.xlu1 %1368 }
0x127e   :  { %v1371_v20 = vmul.f32 %v3796_v2, %v1369_v43 }
0x1280   :  { %1373 = vrot.lane.b32.xlu1 %v1371_v20, %s4127_s8 }
0x1281   :  { %v1343_v46 = vpop.permute.xlu0 %1342 }
0x1282   :  { %v1345_v5 = vmul.f32 %v3798_v61, %v1343_v46 }
0x1284   :  { %1347 = vrot.lane.b32.xlu0 %v1345_v5, %s4127_s8 }
0x12f2   :  { %v1374_v22 = vpop.permute.xlu1 %1373 }
0x12f3   :  { %v1376_v41 = vadd.f32 %v1374_v22, %v1366_v30 }
0x12f5   :  { %3799 = vtanh.f32 %v1376_v41 }
0x12f6   :  { %v1348_v62 = vpop.permute.xlu0 %1347 }
0x12f7   :  { %v1350_v27 = vadd.f32 %v1348_v62, %v1340_v32 }
0x12f9   :  { %3801 = vtanh.f32 %v1350_v27 }
0x12ff   :  { %v3800_v39 = vpop.eup %3799 }
0x1300   :  { %1379 = vrot.lane.b32.xlu1 %v3800_v39, %s4127_s8 }
0x1303   :  { %v3802_v34 = vpop.eup %3801 }
0x1304   :  { %1353 = vrot.lane.b32.xlu0 %v3802_v34, %s4127_s8 }
0x1372   :  { %v1380_v16 = vpop.permute.xlu1 %1379 }
0x1373   :  { %v4835_v29 = vmul.f32 %v3796_v2, %v1380_v16 }
0x1375   :  { %v1383_v14 = vsel %vm581_vm9, %v4835_v29, %v4767_v49  ;;  %v1386_v55 = vsel %vm581_vm9, %v4835_v29, 0.0  ;;  %v615_v29 = vsel %vm581_vm9, %v4477_v15, 0.0  ;;  %v4924_v15 = vld [vmem:[#allocation10 + $0x8] sm:$0xff]  }
0x1376   :  { %v1354_v38 = vpop.permute.xlu0 %1353  ;;  %v1435_v47 = vpack.c.bf16 %v1383_v14, %v1383_v14 }
0x1377   :  { %v4841_v48 = vmul.f32 %v3798_v61, %v1354_v38 }
0x1378   :  { %1437 = vrot.lane.b32.xlu1 %v1435_v47, %s4118_s22  ;;  %v1384_v47 = vsel %vm581_vm9, %v1376_v41, %v4823_v9  ;;  %v3671_v9 = vld [vmem:[%s5435_s6 + $0x20] ss:$8 sps:$4 sm:$0xff]   ;;  %v3673_v41 = vld [vmem:[%s5435_s6 + $0x24] ss:$8 sps:$4 sm:$0xff]  }
0x1379   :  { %v1357_v7 = vsel %vm612_vm8, %v4841_v48, %v4786_v13  ;;  %1593 = vmatprep.subr.bf16.mxu0 %v3673_v41  ;;  %v1385_v28 = vsel %vm612_vm8, %v4841_v48, 0.0  ;;  %v4917_v48 = vld [vmem:[#allocation10] sm:$0xff]  }
0x137a   :  { %v1387_v52 = vpack.c.bf16 %v1357_v7, %v1357_v7 }
0x137c   :  { %1389 = vrot.lane.b32.xlu0 %v1387_v52, %s4118_s22 }
0x13ea   :  { %v1438_v37 = vpop.permute.xlu1 %1437 }
0x13eb   :  { %3481 = vmatmul.mubr.msk.bf16.vlgmr.msra.gmra.mrb[36].mxu1 %vm192_vm1, %v1438_v37 }
0x13ec   :  { %3488 = vmatprep.mubr.msk.bf16.mxu1 %vm4126_vm0, %v4124_v0  ;;  %3485 = vmatpush3.bf16.msra.mxu1 %v4917_v48 }
0x13ed   :  { %3486 = vmatprep.subr.bf16.mxu1 %v4124_v0 }
0x13ee   :  { %v1390_v49 = vpop.permute.xlu0 %1389 }
0x13ef   :  { %3473 = vmatmul.mubr.msk.bf16.vlgmr.msra.gmra.mrb[36].mxu0 %vm192_vm1, %v1390_v49  ;;  %v1358_v49 = vsel %vm612_vm8, %v1350_v27, %v4830_v60  ;;  %v3676_v60 = vld [vmem:[%s5435_s6 + $0x34] ss:$8 sps:$4 sm:$0xff]   ;;  %v616_v27 = vsel %vm612_vm8, %v4464_v3, 0.0  ;;  %v3679_v3 = vld [vmem:[%s5435_s6 + $0x4] ss:$8 sps:$4 sm:$0xff]  }
0x13f0   :  { %1625 = vmatprep.mubr.bf16.mxu0 %v4125_v1  ;;  %1594 = vmatpush1.bf16.msra.mxu0 %v3671_v9 }
0x13f1   :  { %1595 = vmatprep.subr.bf16.mxu0 %v3676_v60  ;;  %3487 = vmatpush3.bf16.msra.mxu1 %v4924_v15 }
0x13f2   :  { %3492 = vmatprep.subr.bf16.mxu1 %v4124_v0 }
0x13f4   :  { %3489 = vmatmul.mubr.bf16.vlgmr.msra.gmra.mrb[40].mxu1 %v4125_v1 }
0x13f5   :  { %3496 = vmatprep.mubr.msk.bf16.mxu1 %vm4126_vm0, %v4124_v0 }
0x14be   :  { %v1476_v11 = vpop.f32.mrb[36].mxu1 }
0x14bf   :  { %v1482_v40 = vadd.f32 %v1476_v11, %v4349_v33  ;;  %v3482_v17 = vpop.f32.mrb[37].mxu1 }
0x14c0   :  { %v1479_v31 = vpop.f32.mrb[38].mxu1 }
0x14c1   :  { %3803 = vtanh.f32 %v1482_v40  ;;  %v3483_v13 = vpop.f32.mrb[39].mxu1  ;;  %v3196_v5 = vmul.f32 -1.442695, %v1482_v40 }
0x14c2   :  { %v1428_v12 = vpop.f32.mrb[36].mxu0 }
0x14c3   :  { %v1434_v19 = vadd.f32 %v1428_v12, %v4376_v8  ;;  %v3474_v2 = vpop.f32.mrb[37].mxu0  ;;  %v3674_v12 = vld [vmem:[%s5435_s6 + $0x30] ss:$8 sps:$4 sm:$0xff]  }
0x14c4   :  { %v1431_v43 = vpop.f32.mrb[38].mxu0  ;;  %1596 = vmatpush1.bf16.msra.mxu0 %v3674_v12 }
0x14c5   :  { %3805 = vtanh.f32 %v1434_v19  ;;  %v3475_v20 = vpop.f32.mrb[39].mxu0  ;;  %v3195_v33 = vmul.f32 -1.442695, %v1434_v19  ;;  %v1544_v19 = vpack.c.bf16 %v4413_v57, %v616_v27  ;;  %1710 = vmatprep.subr.bf16.mxu0 %v3679_v3 }
0x14c6   :  { %3807 = vpow2.f32 %v3196_v5 }
0x14c7   :  { %3809 = vpow2.f32 %v3195_v33 }
0x14cb   :  { %v3804_v61 = vpop.eup %3803 }
0x14cc   :  { %1516 = vrot.lane.b32.xlu1 %v3804_v61, %s4127_s8  ;;  %v1533_v61 = vpack.c.bf16 %v615_v29, %v4403_v50  ;;  %v4932_v50 = vld [vmem:[#allocation12] sm:$0xff]  }
0x14cd   :  { %3493 = vmatpush3.bf16.msra.mxu1 %v4932_v50 }
0x14ce   :  { %3494 = vmatprep.subr.bf16.mxu1 %v4124_v0 }
0x14cf   :  { %v3806_v46 = vpop.eup %3805 }
0x14d0   :  { %1492 = vrot.lane.b32.xlu0 %v3806_v46, %s4127_s8  ;;  %v3808_v30 = vpop.eup %3807 }
0x14d1   :  { %v1510_v22 = vadd.f32 1.0, %v3808_v30  ;;  %v3810_v32 = vpop.eup %3809  ;;  %3495 = vmatpush3.bf16.msra.mxu1 %v4935_v51 }
0x14d2   :  { %v1486_v62 = vadd.f32 1.0, %v3810_v32  ;;  %3500 = vmatprep.subr.bf16.mxu1 %v4124_v0 }
0x14d3   :  { %3811 = vrcp.f32 %v1510_v22 }
0x14d4   :  { %3813 = vrcp.f32 %v1486_v62  ;;  %3497 = vmatmul.mubr.bf16.vlgmr.msra.gmra.mrb[44].mxu1 %v4125_v1  ;;  %v1865_v62 = vpop.f32.mrb[40].mxu1 }
0x14d5   :  { %3501 = vmatpush3.bf16.msra.mxu1 %v4917_v48  ;;  %3504 = vmatprep.mubr.msk.bf16.mxu1 %vm4126_vm0, %v4124_v0 }
0x14d6   :  { %3502 = vmatprep.subr.bf16.mxu1 %v4124_v0 }
0x14d9   :  { %3503 = vmatpush3.bf16.msra.mxu1 %v4924_v15 }
0x14da   :  { %3508 = vmatprep.subr.bf16.mxu1 %v4124_v0 }
0x14dd   :  { %v3812_v8 = vpop.eup %3811 }
0x14de   :  { %v3814_v16 = vpop.eup %3813  ;;  %v1514_v7 = vmul.f32 %v3812_v8, %v1384_v47 }
0x14df   :  { %v1490_v11 = vmul.f32 %v3814_v16, %v1358_v49 }
0x153e   :  { %v1517_v39 = vpop.permute.xlu1 %1516 }
0x153f   :  { %v1519_v34 = vmul.f32 %v3812_v8, %v1517_v39 }
0x1541   :  { %1521 = vrot.lane.b32.xlu1 %v1519_v34, %s4127_s8 }
0x1542   :  { %v1493_v14 = vpop.permute.xlu0 %1492 }
0x1543   :  { %v1495_v38 = vmul.f32 %v3814_v16, %v1493_v14 }
0x1545   :  { %1497 = vrot.lane.b32.xlu0 %v1495_v38, %s4127_s8 }
0x15b3   :  { %v1522_v52 = vpop.permute.xlu1 %1521 }
0x15b4   :  { %v1524_v37 = vadd.f32 %v1522_v52, %v1514_v7  ;;  %v1783_v7 = vld [vmem:[%s5438_s9] sm:$0x3] }
0x15b5   :  { %v1792_v52 = vrot.slane %v1783_v7, %v168_v26 }
0x15b6   :  { %3815 = vtanh.f32 %v1524_v37 }
0x15b7   :  { %v1498_v40 = vpop.permute.xlu0 %1497 }
0x15b8   :  { %v1500_v17 = vadd.f32 %v1498_v40, %v1490_v11 }
0x15ba   :  { %3817 = vtanh.f32 %v1500_v17 }
0x15c0   :  { %v3816_v31 = vpop.eup %3815 }
0x15c1   :  { %1527 = vrot.lane.b32.xlu1 %v3816_v31, %s4127_s8 }
0x15c4   :  { %v3818_v13 = vpop.eup %3817 }
0x15c5   :  { %1503 = vrot.lane.b32.xlu0 %v3818_v13, %s4127_s8 }
0x15c9   :  { %1555 = vrot.lane.b32.xlu0 %v1542_v42, %s4118_s22 }
0x15cd   :  { %1559 = vrot.lane.b32.xlu0 %v1544_v19, %s4118_s22 }
0x15d1   :  { %1672 = vrot.lane.b32.xlu0 %v1534_v18, %s4118_s22 }
0x1633   :  { %v1528_v2 = vpop.permute.xlu1 %1527 }
0x1634   :  { %v1530_v43 = vmul.f32 %v3812_v8, %v1528_v2  ;;  %v3490_v8 = vpop.f32.mrb[41].mxu1 }
0x1635   :  { %v1868_v39 = vpop.f32.mrb[42].mxu1 }
0x1636   :  { %v1532_v57 = vsel %vm423_vm4, %v1530_v43, 0.0  ;;  %v3491_v34 = vpop.f32.mrb[43].mxu1 }
0x1637   :  { %v1504_v56 = vpop.permute.xlu0 %1503  ;;  %v1541_v42 = vpack.c.bf16 %v1386_v55, %v1532_v57 }
0x1638   :  { %v1506_v20 = vmul.f32 %v3814_v16, %v1504_v56  ;;  %v1918_v16 = vpop.f32.mrb[44].mxu1 }
0x1639   :  { %1553 = vrot.lane.b32.xlu1 %v1541_v42, %s4118_s22  ;;  %v3498_v14 = vpop.f32.mrb[45].mxu1 }
0x163a   :  { %v1531_v10 = vsel %vm454_vm5, %v1506_v20, 0.0  ;;  %v1921_v38 = vpop.f32.mrb[46].mxu1 }
0x163b   :  { %v1536_v18 = vpack.c.bf16 %v1531_v10, %v1385_v28  ;;  %v3499_v47 = vpop.f32.mrb[47].mxu1 }
0x163d   :  { %1557 = vrot.lane.b32.xlu1 %v1543_v63, %s4118_s22  ;;  %1676 = vrot.lane.b32.xlu0 %v1536_v18, %s4118_s22  ;;  %v3682_v63 = vld [vmem:[%s5435_s6 + $0x14] ss:$8 sps:$4 sm:$0xff]  }
0x1641   :  { %1670 = vrot.lane.b32.xlu1 %v1533_v61, %s4118_s22 }
0x1645   :  { %1674 = vrot.lane.b32.xlu1 %v1535_v21, %s4118_s22  ;;  %v1556_v21 = vpop.permute.xlu0 %1555 }
0x1649   :  { %v1560_v5 = vpop.permute.xlu0 %1559 }
0x164d   :  { %v1673_v30 = vpop.permute.xlu0 %1672 }
0x16ab   :  { %v1554_v4 = vpop.permute.xlu1 %1553 }
0x16ac   :  { %3201 = vmatmul.mubr.msk.bf16.vlgmr.msra.gmra.mrb[40].mxu0 %vm192_vm1, %v1554_v4 }
0x16ad   :  { %1711 = vmatpush1.bf16.msra.mxu0 %v3677_v54  ;;  %1635 = vmatprep.mubr.bf16.mxu0 %v4125_v1 }
0x16ae   :  { %1712 = vmatprep.subr.bf16.mxu0 %v3682_v63 }
0x16af   :  { %v1558_v46 = vpop.permute.xlu1 %1557  ;;  %v1677_v32 = vpop.permute.xlu0 %1676 }
0x16b1   :  { %1713 = vmatpush1.bf16.msra.mxu0 %v3680_v58 }
0x16b2   :  { %3548 = vmatprep.subr.bf16.mxu0 %v4124_v0 }
0x16b3   :  { %v1671_v33 = vpop.permute.xlu1 %1670 }
0x16b4   :  { %3202 = vmatmul.mubr.msk.bf16.gmra.mrb[44].mxu0 %vm192_vm1, %v1556_v21 }
0x16b5   :  { %1645 = vmatprep.mubr.bf16.mxu0 %v4125_v1 }
0x16b7   :  { %v1675_v22 = vpop.permute.xlu1 %1674 }
0x16bc   :  { %3203 = vmatmul.mubr.msk.bf16.gmra.mrb[48].mxu0 %vm192_vm1, %v1558_v46 }
0x16bd   :  { %1655 = vmatprep.mubr.bf16.mxu0 %v4125_v1 }
0x16c4   :  { %3204 = vmatmul.mubr.msk.bf16.gmra.mrb[52].mxu0 %vm192_vm1, %v1560_v5 }
0x16c5   :  { %1742 = vmatprep.mubr.bf16.mxu0 %v4125_v1 }
0x16cc   :  { %3209 = vmatmul.mubr.msk.bf16.vlgmr.msra.gmra.mrb[40].mxu0 %vm192_vm1, %v1671_v33 }
0x16cd   :  { %1752 = vmatprep.mubr.bf16.mxu0 %v4125_v1  ;;  %3549 = vmatpush3.bf16.msra.mxu0 %v4917_v48 }
0x16ce   :  { %3550 = vmatprep.subr.bf16.mxu0 %v4124_v0 }
0x16d1   :  { %3551 = vmatpush3.bf16.msra.mxu0 %v4924_v15 }
0x16d2   :  { %3564 = vmatprep.subr.bf16.mxu0 %v4124_v0 }
0x16d4   :  { %3210 = vmatmul.mubr.msk.bf16.gmra.mrb[44].mxu0 %vm192_vm1, %v1673_v30 }
0x16d5   :  { %1762 = vmatprep.mubr.bf16.mxu0 %v4125_v1 }
0x16dc   :  { %3211 = vmatmul.mubr.msk.bf16.gmra.mrb[48].mxu0 %vm192_vm1, %v1675_v22 }
0x16dd   :  { %1772 = vmatprep.mubr.bf16.mxu0 %v4125_v1  ;;  %v1788_v1 = vrot.slane %v1783_v7, %v164_v24 }
0x16e4   :  { %3212 = vmatmul.mubr.msk.bf16.gmra.mrb[52].mxu0 %vm192_vm1, %v1677_v32 }
0x16e5   :  { %3552 = vmatprep.mubr.msk.bf16.mxu0 %vm4126_vm0, %v4124_v0 }
0x179f   :  { %v1744_v37 = vpop.f32.mrb[40].mxu0 }
0x17a0   :  { %v1795_v49 = vadd.f32 %v1788_v1, %v1744_v37  ;;  %v1746_v11 = vpop.f32.mrb[41].mxu0 }
0x17a1   :  { %v4985_v40 = vadd.f32 %v1792_v52, %v1746_v11  ;;  %v1748_v17 = vpop.f32.mrb[42].mxu0 }
0x17a2   :  { %v4987_v31 = vadd.f32 %v1788_v1, %v1748_v17  ;;  %v1871_v13 = vadd.f32 %v1865_v62, %v1795_v49  ;;  %v1750_v9 = vpop.f32.mrb[43].mxu0 }
0x17a3   :  { %v4989_v41 = vadd.f32 %v1792_v52, %v1750_v9 }
0x17a4   :  { %3819 = vtanh.f32 %v1871_v13  ;;  %v3217_v33 = vmul.f32 -1.442695, %v1871_v13 }
0x17a7   :  { %v1754_v60 = vpop.f32.mrb[44].mxu0 }
0x17a8   :  { %v4991_v27 = vadd.f32 %v1788_v1, %v1754_v60  ;;  %v1756_v24 = vpop.f32.mrb[45].mxu0 }
0x17a9   :  { %v4993_v12 = vadd.f32 %v1792_v52, %v1756_v24  ;;  %v1758_v23 = vpop.f32.mrb[46].mxu0 }
0x17aa   :  { %v4995_v26 = vadd.f32 %v1788_v1, %v1758_v23  ;;  %v1760_v19 = vpop.f32.mrb[47].mxu0 }
0x17ab   :  { %v4997_v3 = vadd.f32 %v1792_v52, %v1760_v19 }
0x17ae   :  { %v3820_v2 = vpop.eup %3819 }
0x17af   :  { %1934 = vrot.lane.b32.xlu1 %v3820_v2, %s4127_s8  ;;  %v1764_v43 = vpop.f32.mrb[48].mxu0 }
0x17b0   :  { %v5000_v55 = vadd.f32 %v1788_v1, %v1764_v43  ;;  %v1766_v57 = vpop.f32.mrb[49].mxu0 }
0x17b1   :  { %v5002_v56 = vadd.f32 %v1792_v52, %v1766_v57  ;;  %v1768_v42 = vpop.f32.mrb[50].mxu0 }
0x17b2   :  { %v5004_v20 = vadd.f32 %v1788_v1, %v1768_v42  ;;  %v1770_v28 = vpop.f32.mrb[51].mxu0 }
0x17b3   :  { %v5006_v10 = vadd.f32 %v1792_v52, %v1770_v28 }
0x17b7   :  { %v1774_v18 = vpop.f32.mrb[52].mxu0 }
0x17b8   :  { %v5008_v29 = vadd.f32 %v1788_v1, %v1774_v18  ;;  %v1776_v61 = vpop.f32.mrb[53].mxu0 }
0x17b9   :  { %v5010_v54 = vadd.f32 %v1792_v52, %v1776_v61  ;;  %v1778_v63 = vpop.f32.mrb[54].mxu0 }
0x17ba   :  { %v5012_v4 = vadd.f32 %v1788_v1, %v1778_v63  ;;  %v1780_v58 = vpop.f32.mrb[55].mxu0 }
0x17bb   :  { %v1810_v21 = vadd.f32 %v1792_v52, %v1780_v58 }
0x17bd   :  { %v1924_v46 = vadd.f32 %v1918_v16, %v1810_v21 }
0x17bf   :  { %3821 = vtanh.f32 %v1924_v46  ;;  %v3218_v32 = vmul.f32 -1.442695, %v1924_v46 }
0x17c0   :  { %3823 = vpow2.f32 %v3217_v33 }
0x17c9   :  { %v3822_v5 = vpop.eup %3821 }
0x17ca   :  { %1960 = vrot.lane.b32.xlu0 %v3822_v5, %s4127_s8  ;;  %v3824_v30 = vpop.eup %3823 }
0x17cb   :  { %v1928_v22 = vadd.f32 1.0, %v3824_v30 }
0x17cd   :  { %3825 = vrcp.f32 %v1928_v22 }
0x17ce   :  { %3827 = vpow2.f32 %v3218_v32 }
0x17d7   :  { %v3826_v62 = vpop.eup %3825 }
0x17d8   :  { %v3828_v34 = vpop.eup %3827  ;;  %v1932_v7 = vmul.f32 0.0, %v3826_v62 }
0x17d9   :  { %v1954_v14 = vadd.f32 1.0, %v3828_v34 }
0x17db   :  { %3829 = vrcp.f32 %v1954_v14 }
0x17e5   :  { %v3830_v16 = vpop.eup %3829 }
0x17e6   :  { %v1958_v49 = vmul.f32 0.0, %v3830_v16 }
0x1821   :  { %v1935_v8 = vpop.permute.xlu1 %1934 }
0x1822   :  { %v1937_v39 = vmul.f32 %v3826_v62, %v1935_v8 }
0x1824   :  { %1939 = vrot.lane.b32.xlu1 %v1937_v39, %s4127_s8 }
0x183c   :  { %v1961_v38 = vpop.permute.xlu0 %1960 }
0x183d   :  { %v1963_v47 = vmul.f32 %v3830_v16, %v1961_v38 }
0x183f   :  { %1965 = vrot.lane.b32.xlu0 %v1963_v47, %s4127_s8 }
0x1896   :  { %v1940_v1 = vpop.permute.xlu1 %1939 }
0x1897   :  { %v5017_v52 = vadd.f32 %v1940_v1, %v1932_v7 }
0x1899   :  { %3831 = vtanh.f32 %v5017_v52 }
0x18a3   :  { %v3832_v37 = vpop.eup %3831 }
0x18a4   :  { %1945 = vrot.lane.b32.xlu1 %v3832_v37, %s4127_s8 }
0x18b1   :  { %v1966_v11 = vpop.permute.xlu0 %1965 }
0x18b2   :  { %v5021_v17 = vadd.f32 %v1966_v11, %v1958_v49  ;;  %v5062_v49 = vsel %vm423_vm4, %v5017_v52, 0.0 }
0x18b4   :  { %3833 = vtanh.f32 %v5021_v17 }
0x18be   :  { %v3834_v13 = vpop.eup %3833 }
0x18bf   :  { %1971 = vrot.lane.b32.xlu0 %v3834_v13, %s4127_s8 }
0x1916   :  { %v1946_v9 = vpop.permute.xlu1 %1945 }
0x1917   :  { %v1948_v60 = vmul.f32 %v3826_v62, %v1946_v9 }
0x1919   :  { %v5027_v24 = vsel %vm423_vm4, %v1948_v60, 0.0 }
0x191a   :  { %v1977_v23 = vpack.c.bf16 %v5027_v24, %v5027_v24 }
0x191c   :  { %1979 = vrot.lane.b32.xlu1 %v1977_v23, %s4118_s22  ;;  %v5072_v23 = vsel %vm454_vm5, %v5021_v17, 0.0 }
0x1931   :  { %v1972_v19 = vpop.permute.xlu0 %1971 }
0x1932   :  { %v1974_v2 = vmul.f32 %v3830_v16, %v1972_v19 }
0x1934   :  { %v5034_v43 = vsel %vm454_vm5, %v1974_v2, 0.0 }
0x1935   :  { %v2025_v57 = vpack.c.bf16 %v5034_v43, %v5034_v43 }
0x1937   :  { %2027 = vrot.lane.b32.xlu0 %v2025_v57, %s4118_s22 }
0x198e   :  { %v1980_v42 = vpop.permute.xlu1 %1979 }
0x198f   :  { %3505 = vmatmul.mubr.msk.bf16.vlgmr.msra.gmra.mrb[48].mxu1 %vm192_vm1, %v1980_v42 }
0x1990   :  { %3509 = vmatpush3.bf16.msra.mxu1 %v4932_v50  ;;  %3512 = vmatprep.mubr.msk.bf16.mxu1 %vm4126_vm0, %v4124_v0 }
0x1991   :  { %3510 = vmatprep.subr.bf16.mxu1 %v4124_v0 }
0x1994   :  { %3511 = vmatpush3.bf16.msra.mxu1 %v4935_v51 }
0x1995   :  { %3516 = vmatprep.subr.bf16.mxu1 %v4124_v0 }
0x19a9   :  { %v2028_v28 = vpop.permute.xlu0 %2027 }
0x19aa   :  { %3513 = vmatmul.mubr.msk.bf16.vlgmr.msra.gmra.mrb[52].mxu1 %vm192_vm1, %v2028_v28 }
0x19ab   :  { %3517 = vmatpush3.bf16.msra.mxu1 %v4917_v48  ;;  %3520 = vmatprep.mubr.msk.bf16.mxu1 %vm4126_vm0, %v4124_v0 }
0x19ac   :  { %3518 = vmatprep.subr.bf16.mxu1 %v4124_v0 }
0x19af   :  { %3519 = vmatpush3.bf16.msra.mxu1 %v4924_v15 }
0x19b0   :  { %3524 = vmatprep.subr.bf16.mxu1 %v4124_v0 }
0x1a62   :  { %v2018_v18 = vpop.f32.mrb[48].mxu1 }
0x1a63   :  { %v2024_v61 = vadd.f32 %v2018_v18, %v4987_v31  ;;  %v3506_v63 = vpop.f32.mrb[49].mxu1 }
0x1a64   :  { %v2021_v58 = vpop.f32.mrb[50].mxu1 }
0x1a65   :  { %3835 = vtanh.f32 %v2024_v61  ;;  %v3507_v21 = vpop.f32.mrb[51].mxu1  ;;  %v3221_v8 = vmul.f32 -1.442695, %v2024_v61 }
0x1a6f   :  { %v3836_v46 = vpop.eup %3835 }
0x1a70   :  { %2082 = vrot.lane.b32.xlu1 %v3836_v46, %s4127_s8 }
0x1a7d   :  { %v2066_v5 = vpop.f32.mrb[52].mxu1 }
0x1a7e   :  { %v2072_v33 = vadd.f32 %v2066_v5, %v5010_v54  ;;  %v3514_v30 = vpop.f32.mrb[53].mxu1 }
0x1a7f   :  { %v2069_v22 = vpop.f32.mrb[54].mxu1 }
0x1a80   :  { %3837 = vtanh.f32 %v2072_v33  ;;  %v3515_v32 = vpop.f32.mrb[55].mxu1  ;;  %v3222_v34 = vmul.f32 -1.442695, %v2072_v33 }
0x1a81   :  { %3839 = vpow2.f32 %v3221_v8 }
0x1a8a   :  { %v3838_v62 = vpop.eup %3837 }
0x1a8b   :  { %2108 = vrot.lane.b32.xlu0 %v3838_v62, %s4127_s8  ;;  %v3840_v31 = vpop.eup %3839 }
0x1a8c   :  { %v2076_v39 = vadd.f32 1.0, %v3840_v31 }
0x1a8e   :  { %3841 = vrcp.f32 %v2076_v39 }
0x1a8f   :  { %3843 = vpow2.f32 %v3222_v34 }
0x1a98   :  { %v3842_v14 = vpop.eup %3841 }
0x1a99   :  { %v3844_v54 = vpop.eup %3843  ;;  %v2080_v11 = vmul.f32 %v3842_v14, %v5062_v49 }
0x1a9a   :  { %v2102_v47 = vadd.f32 1.0, %v3844_v54 }
0x1a9c   :  { %3845 = vrcp.f32 %v2102_v47 }
0x1aa6   :  { %v3846_v7 = vpop.eup %3845 }
0x1aa7   :  { %v2106_v19 = vmul.f32 %v3846_v7, %v5072_v23 }
0x1ae2   :  { %v2083_v16 = vpop.permute.xlu1 %2082 }
0x1ae3   :  { %v2085_v38 = vmul.f32 %v3842_v14, %v2083_v16 }
0x1ae5   :  { %2087 = vrot.lane.b32.xlu1 %v2085_v38, %s4127_s8 }
0x1afd   :  { %v2109_v1 = vpop.permute.xlu0 %2108 }
0x1afe   :  { %v2111_v37 = vmul.f32 %v3846_v7, %v2109_v1 }
0x1b00   :  { %2113 = vrot.lane.b32.xlu0 %v2111_v37, %s4127_s8 }
0x1b57   :  { %v2088_v13 = vpop.permute.xlu1 %2087 }
0x1b58   :  { %v5065_v9 = vadd.f32 %v2088_v13, %v2080_v11 }
0x1b5a   :  { %3847 = vtanh.f32 %v5065_v9 }
0x1b64   :  { %v3848_v60 = vpop.eup %3847 }
0x1b65   :  { %2093 = vrot.lane.b32.xlu1 %v3848_v60, %s4127_s8 }
0x1b72   :  { %v2114_v2 = vpop.permute.xlu0 %2113 }
0x1b73   :  { %v5075_v52 = vadd.f32 %v2114_v2, %v2106_v19  ;;  %v5119_v19 = vsel %vm581_vm9, %v5065_v9, %v5062_v49 }
0x1b75   :  { %3849 = vtanh.f32 %v5075_v52 }
0x1b7f   :  { %v3850_v57 = vpop.eup %3849 }
0x1b80   :  { %2119 = vrot.lane.b32.xlu0 %v3850_v57, %s4127_s8 }
0x1bd7   :  { %v2094_v42 = vpop.permute.xlu1 %2093 }
0x1bd8   :  { %v2096_v28 = vmul.f32 %v3842_v14, %v2094_v42 }
0x1bda   :  { %v5082_v18 = vsel %vm581_vm9, %v2096_v28, %v5027_v24 }
0x1bdb   :  { %v2125_v17 = vpack.c.bf16 %v5082_v18, %v5082_v18 }
0x1bdd   :  { %2127 = vrot.lane.b32.xlu1 %v2125_v17, %s4118_s22  ;;  %v5130_v17 = vsel %vm612_vm8, %v5075_v52, %v5072_v23 }
0x1bf2   :  { %v2120_v61 = vpop.permute.xlu0 %2119 }
0x1bf3   :  { %v2122_v63 = vmul.f32 %v3846_v7, %v2120_v61 }
0x1bf5   :  { %v5090_v58 = vsel %vm612_vm8, %v2122_v63, %v5034_v43 }
0x1bf6   :  { %v2173_v21 = vpack.c.bf16 %v5090_v58, %v5090_v58 }
0x1bf8   :  { %2175 = vrot.lane.b32.xlu0 %v2173_v21, %s4118_s22 }
0x1c4f   :  { %v2128_v46 = vpop.permute.xlu1 %2127 }
0x1c50   :  { %3521 = vmatmul.mubr.msk.bf16.vlgmr.msra.gmra.mrb[56].mxu1 %vm192_vm1, %v2128_v46 }
0x1c51   :  { %3525 = vmatpush3.bf16.msra.mxu1 %v4932_v50  ;;  %3528 = vmatprep.mubr.msk.bf16.mxu1 %vm4126_vm0, %v4124_v0 }
0x1c52   :  { %3526 = vmatprep.subr.bf16.mxu1 %v4124_v0 }
0x1c55   :  { %3527 = vmatpush3.bf16.msra.mxu1 %v4935_v51 }
0x1c56   :  { %3532 = vmatprep.subr.bf16.mxu1 %v4124_v0 }
0x1c6a   :  { %v2176_v24 = vpop.permute.xlu0 %2175 }
0x1c6b   :  { %3529 = vmatmul.mubr.msk.bf16.vlgmr.msra.gmra.mrb[60].mxu1 %vm192_vm1, %v2176_v24 }
0x1c6c   :  { %3533 = vmatpush3.bf16.msra.mxu1 %v4917_v48  ;;  %3536 = vmatprep.mubr.msk.bf16.mxu1 %vm4126_vm0, %v4124_v0 }
0x1c6d   :  { %3534 = vmatprep.subr.bf16.mxu1 %v4124_v0 }
0x1c70   :  { %3535 = vmatpush3.bf16.msra.mxu1 %v4924_v15 }
0x1c71   :  { %3540 = vmatprep.subr.bf16.mxu1 %v4124_v0 }
0x1d23   :  { %v2166_v43 = vpop.f32.mrb[56].mxu1 }
0x1d24   :  { %v2172_v5 = vadd.f32 %v2166_v43, %v4991_v27  ;;  %v3522_v33 = vpop.f32.mrb[57].mxu1 }
0x1d25   :  { %v2169_v30 = vpop.f32.mrb[58].mxu1 }
0x1d26   :  { %3851 = vtanh.f32 %v2172_v5  ;;  %v3523_v22 = vpop.f32.mrb[59].mxu1  ;;  %v3225_v16 = vmul.f32 -1.442695, %v2172_v5 }
0x1d30   :  { %v3852_v32 = vpop.eup %3851 }
0x1d31   :  { %2230 = vrot.lane.b32.xlu1 %v3852_v32, %s4127_s8 }
0x1d3e   :  { %v2214_v62 = vpop.f32.mrb[60].mxu1 }
0x1d3f   :  { %v2220_v8 = vadd.f32 %v2214_v62, %v5006_v10  ;;  %v3530_v31 = vpop.f32.mrb[61].mxu1 }
0x1d40   :  { %v2217_v39 = vpop.f32.mrb[62].mxu1 }
0x1d41   :  { %3853 = vtanh.f32 %v2220_v8  ;;  %v3531_v34 = vpop.f32.mrb[63].mxu1  ;;  %v3226_v54 = vmul.f32 -1.442695, %v2220_v8 }
0x1d42   :  { %3855 = vpow2.f32 %v3225_v16 }
0x1d4b   :  { %v3854_v14 = vpop.eup %3853 }
0x1d4c   :  { %2256 = vrot.lane.b32.xlu0 %v3854_v14, %s4127_s8  ;;  %v3856_v27 = vpop.eup %3855 }
0x1d4d   :  { %v2224_v38 = vadd.f32 1.0, %v3856_v27 }
0x1d4f   :  { %3857 = vrcp.f32 %v2224_v38 }
0x1d50   :  { %3859 = vpow2.f32 %v3226_v54 }
0x1d59   :  { %v3858_v47 = vpop.eup %3857 }
0x1d5a   :  { %v3860_v10 = vpop.eup %3859  ;;  %v2228_v2 = vmul.f32 %v3858_v47, %v5119_v19 }
0x1d5b   :  { %v2250_v37 = vadd.f32 1.0, %v3860_v10 }
0x1d5d   :  { %3861 = vrcp.f32 %v2250_v37 }
0x1d67   :  { %v3862_v11 = vpop.eup %3861 }
0x1d68   :  { %v2254_v61 = vmul.f32 %v3862_v11, %v5130_v17 }
0x1da3   :  { %v2231_v7 = vpop.permute.xlu1 %2230 }
0x1da4   :  { %v2233_v1 = vmul.f32 %v3858_v47, %v2231_v7 }
0x1da6   :  { %2235 = vrot.lane.b32.xlu1 %v2233_v1, %s4127_s8 }
0x1dbe   :  { %v2257_v13 = vpop.permute.xlu0 %2256 }
0x1dbf   :  { %v2259_v60 = vmul.f32 %v3862_v11, %v2257_v13 }
0x1dc1   :  { %2261 = vrot.lane.b32.xlu0 %v2259_v60, %s4127_s8 }
0x1e18   :  { %v2236_v57 = vpop.permute.xlu1 %2235 }
0x1e19   :  { %v5122_v42 = vadd.f32 %v2236_v57, %v2228_v2 }
0x1e1b   :  { %3863 = vtanh.f32 %v5122_v42  ;;  %v5177_v57 = vsel %vm741_vm13, %v5122_v42, %v5119_v19 }
0x1e25   :  { %v3864_v28 = vpop.eup %3863 }
0x1e26   :  { %2241 = vrot.lane.b32.xlu1 %v3864_v28, %s4127_s8 }
0x1e33   :  { %v2262_v49 = vpop.permute.xlu0 %2261 }
0x1e34   :  { %v5133_v9 = vadd.f32 %v2262_v49, %v2254_v61 }
0x1e36   :  { %3865 = vtanh.f32 %v5133_v9 }
0x1e40   :  { %v3866_v63 = vpop.eup %3865 }
0x1e41   :  { %2267 = vrot.lane.b32.xlu0 %v3866_v63, %s4127_s8 }
0x1e98   :  { %v2242_v21 = vpop.permute.xlu1 %2241 }
0x1e99   :  { %v2244_v46 = vmul.f32 %v3858_v47, %v2242_v21  ;;  %v5188_v21 = vsel %vm772_vm12, %v5133_v9, %v5130_v17 }
0x1e9b   :  { %v5140_v24 = vsel %vm741_vm13, %v2244_v46, %v5082_v18 }
0x1e9c   :  { %v2273_v23 = vpack.c.bf16 %v5140_v24, %v5140_v24 }
0x1e9e   :  { %2275 = vrot.lane.b32.xlu1 %v2273_v23, %s4118_s22 }
0x1eb3   :  { %v2268_v52 = vpop.permute.xlu0 %2267 }
0x1eb4   :  { %v2270_v43 = vmul.f32 %v3862_v11, %v2268_v52 }
0x1eb6   :  { %v5148_v5 = vsel %vm772_vm12, %v2270_v43, %v5090_v58 }
0x1eb7   :  { %v2321_v33 = vpack.c.bf16 %v5148_v5, %v5148_v5 }
0x1eb9   :  { %2323 = vrot.lane.b32.xlu0 %v2321_v33, %s4118_s22 }
0x1f10   :  { %v2276_v30 = vpop.permute.xlu1 %2275 }
0x1f11   :  { %3537 = vmatmul.mubr.msk.bf16.vlgmr.msra.gmra.mrb[64].mxu1 %vm192_vm1, %v2276_v30 }
0x1f12   :  { %3541 = vmatpush3.bf16.msra.mxu1 %v4932_v50  ;;  %3544 = vmatprep.mubr.msk.bf16.mxu1 %vm4126_vm0, %v4124_v0 }
0x1f13   :  { %3542 = vmatprep.subr.bf16.mxu1 %v4124_v0 }
0x1f16   :  { %3543 = vmatpush3.bf16.msra.mxu1 %v4935_v51 }
0x1f17   :  { %3556 = vmatprep.subr.bf16.mxu1 %v4124_v0 }
0x1f2b   :  { %v2324_v18 = vpop.permute.xlu0 %2323 }
0x1f2c   :  { %3545 = vmatmul.mubr.msk.bf16.vlgmr.msra.gmra.mrb[68].mxu1 %vm192_vm1, %v2324_v18 }
0x1f2d   :  { %3557 = vmatpush3.bf16.msra.mxu1 %v4932_v50  ;;  %3560 = vmatprep.mubr.msk.bf16.mxu1 %vm4126_vm0, %v4124_v0 }
0x1f2e   :  { %3558 = vmatprep.subr.bf16.mxu1 %v4124_v0 }
0x1f31   :  { %3559 = vmatpush3.bf16.msra.mxu1 %v4935_v51 }
0x1f32   :  { %3572 = vmatprep.subr.bf16.mxu1 %v4124_v0 }
0x1fe4   :  { %v2314_v58 = vpop.f32.mrb[64].mxu1 }
0x1fe5   :  { %v2320_v22 = vadd.f32 %v2314_v58, %v4995_v26  ;;  %v3538_v32 = vpop.f32.mrb[65].mxu1 }
0x1fe6   :  { %v2317_v62 = vpop.f32.mrb[66].mxu1 }
0x1fe7   :  { %3867 = vtanh.f32 %v2320_v22  ;;  %v3539_v8 = vpop.f32.mrb[67].mxu1  ;;  %v3229_v54 = vmul.f32 -1.442695, %v2320_v22 }
0x1ff1   :  { %v3868_v31 = vpop.eup %3867 }
0x1ff2   :  { %2378 = vrot.lane.b32.xlu1 %v3868_v31, %s4127_s8 }
0x1fff   :  { %v2362_v39 = vpop.f32.mrb[68].mxu1 }
0x2000   :  { %v2368_v34 = vadd.f32 %v2362_v39, %v5002_v56  ;;  %v3546_v14 = vpop.f32.mrb[69].mxu1 }
0x2001   :  { %v2365_v16 = vpop.f32.mrb[70].mxu1 }
0x2002   :  { %3869 = vtanh.f32 %v2368_v34  ;;  %v3547_v27 = vpop.f32.mrb[71].mxu1  ;;  %v3230_v7 = vmul.f32 -1.442695, %v2368_v34 }
0x2003   :  { %3871 = vpow2.f32 %v3229_v54 }
0x200c   :  { %v3870_v38 = vpop.eup %3869 }
0x200d   :  { %2404 = vrot.lane.b32.xlu0 %v3870_v38, %s4127_s8  ;;  %v3872_v26 = vpop.eup %3871 }
0x200e   :  { %v2372_v47 = vadd.f32 1.0, %v3872_v26 }
0x2010   :  { %3873 = vrcp.f32 %v2372_v47 }
0x2011   :  { %3875 = vpow2.f32 %v3230_v7 }
0x201a   :  { %v3874_v1 = vpop.eup %3873 }
0x201b   :  { %v3876_v56 = vpop.eup %3875  ;;  %v2376_v28 = vmul.f32 %v3874_v1, %v5177_v57 }
0x201c   :  { %v2398_v11 = vadd.f32 1.0, %v3876_v56 }
0x201e   :  { %3877 = vrcp.f32 %v2398_v11 }
0x2028   :  { %v3878_v13 = vpop.eup %3877 }
0x2029   :  { %v2402_v46 = vmul.f32 %v3878_v13, %v5188_v21 }
0x2064   :  { %v2379_v10 = vpop.permute.xlu1 %2378 }
0x2065   :  { %v2381_v37 = vmul.f32 %v3874_v1, %v2379_v10 }
0x2067   :  { %2383 = vrot.lane.b32.xlu1 %v2381_v37, %s4127_s8 }
0x207f   :  { %v2405_v60 = vpop.permute.xlu0 %2404 }
0x2080   :  { %v2407_v2 = vmul.f32 %v3878_v13, %v2405_v60 }
0x2082   :  { %2409 = vrot.lane.b32.xlu0 %v2407_v2, %s4127_s8 }
0x20d9   :  { %v2384_v61 = vpop.permute.xlu1 %2383 }
0x20da   :  { %v5180_v49 = vadd.f32 %v2384_v61, %v2376_v28 }
0x20dc   :  { %3879 = vtanh.f32 %v5180_v49  ;;  %v5235_v2 = vsel %vm901_vm3, %v5180_v49, %v5177_v57 }
0x20e6   :  { %v3880_v63 = vpop.eup %3879 }
0x20e7   :  { %2389 = vrot.lane.b32.xlu1 %v3880_v63, %s4127_s8 }
0x20f4   :  { %v2410_v19 = vpop.permute.xlu0 %2409 }
0x20f5   :  { %v5191_v42 = vadd.f32 %v2410_v19, %v2402_v46 }
0x20f7   :  { %3881 = vtanh.f32 %v5191_v42  ;;  %v5246_v19 = vsel %vm932_vm2, %v5191_v42, %v5188_v21 }
0x2101   :  { %v3882_v23 = vpop.eup %3881 }
0x2102   :  { %2415 = vrot.lane.b32.xlu0 %v3882_v23, %s4127_s8 }
0x2159   :  { %v2390_v52 = vpop.permute.xlu1 %2389 }
0x215a   :  { %v2392_v43 = vmul.f32 %v3874_v1, %v2390_v52 }
0x215c   :  { %v5198_v33 = vsel %vm901_vm3, %v2392_v43, %v5140_v24 }
0x215d   :  { %v2421_v17 = vpack.c.bf16 %v5198_v33, %v5198_v33 }
0x215f   :  { %2423 = vrot.lane.b32.xlu1 %v2421_v17, %s4118_s22 }
0x2174   :  { %v2416_v9 = vpop.permute.xlu0 %2415 }
0x2175   :  { %v2418_v30 = vmul.f32 %v3878_v13, %v2416_v9 }
0x2177   :  { %v5206_v18 = vsel %vm932_vm2, %v2418_v30, %v5148_v5 }
0x2178   :  { %v2469_v58 = vpack.c.bf16 %v5206_v18, %v5206_v18 }
0x217a   :  { %2471 = vrot.lane.b32.xlu0 %v2469_v58, %s4118_s22 }
0x21d1   :  { %v2424_v22 = vpop.permute.xlu1 %2423 }
0x21d2   :  { %3553 = vmatmul.mubr.msk.bf16.vlgmr.msra.gmra.mrb[56].mxu0 %vm192_vm1, %v2424_v22 }
0x21d3   :  { %3565 = vmatpush3.bf16.msra.mxu0 %v4917_v48  ;;  %3568 = vmatprep.mubr.msk.bf16.mxu0 %vm4126_vm0, %v4124_v0 }
0x21d4   :  { %3566 = vmatprep.subr.bf16.mxu0 %v4124_v0 }
0x21d7   :  { %3567 = vmatpush3.bf16.msra.mxu0 %v4924_v15 }
0x21d8   :  { %3580 = vmatprep.subr.bf16.mxu0 %v4124_v0 }
0x21ec   :  { %v2472_v24 = vpop.permute.xlu0 %2471 }
0x21ed   :  { %3561 = vmatmul.mubr.msk.bf16.vlgmr.msra.gmra.mrb[72].mxu1 %vm192_vm1, %v2472_v24 }
0x21ee   :  { %3573 = vmatpush3.bf16.msra.mxu1 %v4932_v50  ;;  %3576 = vmatprep.mubr.msk.bf16.mxu1 %vm4126_vm0, %v4124_v0 }
0x21ef   :  { %3574 = vmatprep.subr.bf16.mxu1 %v4124_v0 }
0x21f2   :  { %3575 = vmatpush3.bf16.msra.mxu1 %v4935_v51 }
0x21f3   :  { %3588 = vmatprep.subr.bf16.mxu1 %v4124_v0 }
0x22a5   :  { %v2462_v5 = vpop.f32.mrb[56].mxu0 }
0x22a6   :  { %v2468_v32 = vadd.f32 %v2462_v5, %v5000_v55  ;;  %v3554_v62 = vpop.f32.mrb[57].mxu0 }
0x22a7   :  { %v2465_v8 = vpop.f32.mrb[58].mxu0 }
0x22a8   :  { %3883 = vtanh.f32 %v2468_v32  ;;  %v3555_v31 = vpop.f32.mrb[59].mxu0  ;;  %v3233_v26 = vmul.f32 -1.442695, %v2468_v32 }
0x22b2   :  { %v3884_v39 = vpop.eup %3883 }
0x22b3   :  { %2526 = vrot.lane.b32.xlu1 %v3884_v39, %s4127_s8 }
0x22c0   :  { %v2510_v34 = vpop.f32.mrb[72].mxu1 }
0x22c1   :  { %v2516_v14 = vadd.f32 %v2510_v34, %v4997_v3  ;;  %v3562_v16 = vpop.f32.mrb[73].mxu1 }
0x22c2   :  { %v2513_v27 = vpop.f32.mrb[74].mxu1 }
0x22c3   :  { %3885 = vtanh.f32 %v2516_v14  ;;  %v3563_v38 = vpop.f32.mrb[75].mxu1  ;;  %v3234_v7 = vmul.f32 -1.442695, %v2516_v14 }
0x22c4   :  { %3887 = vpow2.f32 %v3233_v26 }
0x22cd   :  { %v3886_v54 = vpop.eup %3885 }
0x22ce   :  { %2552 = vrot.lane.b32.xlu0 %v3886_v54, %s4127_s8  ;;  %v3888_v55 = vpop.eup %3887 }
0x22cf   :  { %v2520_v47 = vadd.f32 1.0, %v3888_v55 }
0x22d1   :  { %3889 = vrcp.f32 %v2520_v47 }
0x22d2   :  { %3891 = vpow2.f32 %v3234_v7 }
0x22db   :  { %v3890_v1 = vpop.eup %3889 }
0x22dc   :  { %v3892_v3 = vpop.eup %3891  ;;  %v2524_v28 = vmul.f32 %v3890_v1, %v5235_v2 }
0x22dd   :  { %v2546_v56 = vadd.f32 1.0, %v3892_v3 }
0x22df   :  { %3893 = vrcp.f32 %v2546_v56 }
0x22e9   :  { %v3894_v11 = vpop.eup %3893 }
0x22ea   :  { %v2550_v23 = vmul.f32 %v3894_v11, %v5246_v19 }
0x2325   :  { %v2527_v10 = vpop.permute.xlu1 %2526 }
0x2326   :  { %v2529_v37 = vmul.f32 %v3890_v1, %v2527_v10 }
0x2328   :  { %2531 = vrot.lane.b32.xlu1 %v2529_v37, %s4127_s8 }
0x2340   :  { %v2553_v13 = vpop.permute.xlu0 %2552 }
0x2341   :  { %v2555_v60 = vmul.f32 %v3894_v11, %v2553_v13 }
0x2343   :  { %2557 = vrot.lane.b32.xlu0 %v2555_v60, %s4127_s8 }
0x239a   :  { %v2532_v61 = vpop.permute.xlu1 %2531 }
0x239b   :  { %v5238_v63 = vadd.f32 %v2532_v61, %v2524_v28 }
0x239d   :  { %3895 = vtanh.f32 %v5238_v63 }
0x23a7   :  { %v3896_v46 = vpop.eup %3895 }
0x23a8   :  { %2537 = vrot.lane.b32.xlu1 %v3896_v46, %s4127_s8 }
0x23b5   :  { %v2558_v57 = vpop.permute.xlu0 %2557 }
0x23b6   :  { %v5249_v49 = vadd.f32 %v2558_v57, %v2550_v23 }
0x23b8   :  { %3897 = vtanh.f32 %v5249_v49  ;;  %v5304_v46 = vsel %vm901_vm3, %v5249_v49, %v5246_v19 }
0x23c2   :  { %v3898_v52 = vpop.eup %3897 }
0x23c3   :  { %2563 = vrot.lane.b32.xlu0 %v3898_v52, %s4127_s8 }
0x241a   :  { %v2538_v43 = vpop.permute.xlu1 %2537 }
0x241b   :  { %v2540_v17 = vmul.f32 %v3890_v1, %v2538_v43 }
0x241d   :  { %v5256_v9 = vsel %vm932_vm2, %v2540_v17, %v5198_v33 }
0x241e   :  { %v2569_v21 = vpack.c.bf16 %v5256_v9, %v5256_v9 }
0x2420   :  { %2571 = vrot.lane.b32.xlu1 %v2569_v21, %s4118_s22 }
0x2435   :  { %v2564_v42 = vpop.permute.xlu0 %2563 }
0x2436   :  { %v2566_v30 = vmul.f32 %v3894_v11, %v2564_v42  ;;  %v5293_v11 = vsel %vm932_vm2, %v5238_v63, %v5235_v2 }
0x2438   :  { %v5264_v58 = vsel %vm901_vm3, %v2566_v30, %v5206_v18 }
0x2439   :  { %v2617_v22 = vpack.c.bf16 %v5264_v58, %v5264_v58 }
0x243b   :  { %2619 = vrot.lane.b32.xlu0 %v2617_v22, %s4118_s22 }
0x2492   :  { %v2572_v24 = vpop.permute.xlu1 %2571 }
0x2493   :  { %3569 = vmatmul.mubr.msk.bf16.vlgmr.msra.gmra.mrb[60].mxu0 %vm192_vm1, %v2572_v24 }
0x2494   :  { %3581 = vmatpush3.bf16.msra.mxu0 %v4917_v48  ;;  %3584 = vmatprep.mubr.msk.bf16.mxu0 %vm4126_vm0, %v4124_v0 }
0x2495   :  { %3582 = vmatprep.subr.bf16.mxu0 %v4124_v0 }
0x2498   :  { %3583 = vmatpush3.bf16.msra.mxu0 %v4924_v15 }
0x2499   :  { %3596 = vmatprep.subr.bf16.mxu0 %v4124_v0 }
0x24ad   :  { %v2620_v33 = vpop.permute.xlu0 %2619 }
0x24ae   :  { %3577 = vmatmul.mubr.msk.bf16.vlgmr.msra.gmra.mrb[76].mxu1 %vm192_vm1, %v2620_v33 }
0x24af   :  { %3589 = vmatpush3.bf16.msra.mxu1 %v4932_v50  ;;  %3592 = vmatprep.mubr.msk.bf16.mxu1 %vm4126_vm0, %v4124_v0 }
0x24b0   :  { %3590 = vmatprep.subr.bf16.mxu1 %v4124_v0 }
0x24b3   :  { %3591 = vmatpush3.bf16.msra.mxu1 %v4935_v51 }
0x24b4   :  { %3604 = vmatprep.subr.bf16.mxu1 %v4124_v0 }
0x2566   :  { %v2610_v18 = vpop.f32.mrb[60].mxu0 }
0x2567   :  { %v2616_v5 = vadd.f32 %v2610_v18, %v5004_v20  ;;  %v3570_v32 = vpop.f32.mrb[61].mxu0 }
0x2568   :  { %v2613_v62 = vpop.f32.mrb[62].mxu0 }
0x2569   :  { %3899 = vtanh.f32 %v2616_v5  ;;  %v3571_v8 = vpop.f32.mrb[63].mxu0  ;;  %v3237_v54 = vmul.f32 -1.442695, %v2616_v5 }
0x2573   :  { %v3900_v31 = vpop.eup %3899 }
0x2574   :  { %2674 = vrot.lane.b32.xlu1 %v3900_v31, %s4127_s8 }
0x2581   :  { %v2658_v39 = vpop.f32.mrb[76].mxu1 }
0x2582   :  { %v2664_v34 = vadd.f32 %v2658_v39, %v4993_v12  ;;  %v3578_v14 = vpop.f32.mrb[77].mxu1 }
0x2583   :  { %v2661_v16 = vpop.f32.mrb[78].mxu1 }
0x2584   :  { %3901 = vtanh.f32 %v2664_v34  ;;  %v3579_v27 = vpop.f32.mrb[79].mxu1  ;;  %v3238_v55 = vmul.f32 -1.442695, %v2664_v34 }
0x2585   :  { %3903 = vpow2.f32 %v3237_v54 }
0x258e   :  { %v3902_v38 = vpop.eup %3901 }
0x258f   :  { %2700 = vrot.lane.b32.xlu0 %v3902_v38, %s4127_s8  ;;  %v3904_v20 = vpop.eup %3903 }
0x2590   :  { %v2668_v26 = vadd.f32 1.0, %v3904_v20 }
0x2592   :  { %3905 = vrcp.f32 %v2668_v26 }
0x2593   :  { %3907 = vpow2.f32 %v3238_v55 }
0x259c   :  { %v3906_v47 = vpop.eup %3905 }
0x259d   :  { %v3908_v12 = vpop.eup %3907  ;;  %v2672_v13 = vmul.f32 %v3906_v47, %v5293_v11 }
0x259e   :  { %v2694_v10 = vadd.f32 1.0, %v3908_v12 }
0x25a0   :  { %3909 = vrcp.f32 %v2694_v10 }
0x25aa   :  { %v3910_v37 = vpop.eup %3909 }
0x25ab   :  { %v2698_v44 = vmul.f32 %v3910_v37, %v5304_v46 }
0x25e6   :  { %v2675_v7 = vpop.permute.xlu1 %2674 }
0x25e7   :  { %v2677_v1 = vmul.f32 %v3906_v47, %v2675_v7 }
0x25e9   :  { %2679 = vrot.lane.b32.xlu1 %v2677_v1, %s4127_s8 }
0x2601   :  { %v2701_v3 = vpop.permute.xlu0 %2700 }
0x2602   :  { %v2703_v56 = vmul.f32 %v3910_v37, %v2701_v3 }
0x2604   :  { %2705 = vrot.lane.b32.xlu0 %v2703_v56, %s4127_s8 }
0x265b   :  { %v2680_v60 = vpop.permute.xlu1 %2679 }
0x265c   :  { %v5296_v28 = vadd.f32 %v2680_v60, %v2672_v13 }
0x265e   :  { %3911 = vtanh.f32 %v5296_v28  ;;  %v5351_v20 = vsel %vm772_vm12, %v5296_v28, %v5293_v11 }
0x2668   :  { %v3912_v61 = vpop.eup %3911 }
0x2669   :  { %2685 = vrot.lane.b32.xlu1 %v3912_v61, %s4127_s8 }
0x2676   :  { %v2706_v2 = vpop.permute.xlu0 %2705 }
0x2677   :  { %v5307_v63 = vadd.f32 %v2706_v2, %v2698_v44 }
0x2679   :  { %3913 = vtanh.f32 %v5307_v63  ;;  %v5359_v1 = vsel %vm741_vm13, %v5307_v63, %v5304_v46 }
0x2683   :  { %v3914_v23 = vpop.eup %3913 }
0x2684   :  { %2711 = vrot.lane.b32.xlu0 %v3914_v23, %s4127_s8 }
0x26db   :  { %v2686_v57 = vpop.permute.xlu1 %2685 }
0x26dc   :  { %v2688_v52 = vmul.f32 %v3906_v47, %v2686_v57 }
0x26de   :  { %v5314_v43 = vsel %vm772_vm12, %v2688_v52, %v5256_v9 }
0x26df   :  { %v2717_v36 = vpack.c.bf16 %v5314_v43, %v5314_v43 }
0x26e1   :  { %2719 = vrot.lane.b32.xlu1 %v2717_v36, %s4118_s22 }
0x26f6   :  { %v2712_v19 = vpop.permute.xlu0 %2711 }
0x26f7   :  { %v2714_v49 = vmul.f32 %v3910_v37, %v2712_v19 }
0x26f9   :  { %v5322_v17 = vsel %vm741_vm13, %v2714_v49, %v5264_v58 }
0x26fa   :  { %v2765_v21 = vpack.c.bf16 %v5322_v17, %v5322_v17 }
0x26fc   :  { %2767 = vrot.lane.b32.xlu0 %v2765_v21, %s4118_s22 }
0x2753   :  { %v2720_v42 = vpop.permute.xlu1 %2719 }
0x2754   :  { %3585 = vmatmul.mubr.msk.bf16.vlgmr.msra.gmra.mrb[64].mxu0 %vm192_vm1, %v2720_v42 }
0x2755   :  { %3597 = vmatpush3.bf16.msra.mxu0 %v4917_v48  ;;  %3600 = vmatprep.mubr.msk.bf16.mxu0 %vm4126_vm0, %v4124_v0 }
0x2756   :  { %3598 = vmatprep.subr.bf16.mxu0 %v4124_v0 }
0x2759   :  { %3599 = vmatpush3.bf16.msra.mxu0 %v4924_v15 }
0x275a   :  { %3612 = vmatprep.subr.bf16.mxu0 %v4124_v0 }
0x276e   :  { %v2768_v9 = vpop.permute.xlu0 %2767 }
0x276f   :  { %3593 = vmatmul.mubr.msk.bf16.vlgmr.msra.gmra.mrb[80].mxu1 %vm192_vm1, %v2768_v9 }
0x2770   :  { %3605 = vmatpush3.bf16.msra.mxu1 %v4932_v50  ;;  %3608 = vmatprep.mubr.msk.bf16.mxu1 %vm4126_vm0, %v4124_v0 }
0x2771   :  { %3606 = vmatprep.subr.bf16.mxu1 %v4124_v0 }
0x2774   :  { %3607 = vmatpush3.bf16.msra.mxu1 %v4935_v51 }
0x2775   :  { %3620 = vmatprep.subr.bf16.mxu1 %v4124_v0 }
0x2827   :  { %v2758_v48 = vpop.f32.mrb[64].mxu0 }
0x2828   :  { %v2764_v30 = vadd.f32 %v2758_v48, %v5008_v29  ;;  %v3586_v15 = vpop.f32.mrb[65].mxu0 }
0x2829   :  { %v2761_v58 = vpop.f32.mrb[66].mxu0 }
0x282a   :  { %3915 = vtanh.f32 %v2764_v30  ;;  %v3587_v22 = vpop.f32.mrb[67].mxu0  ;;  %v3241_v62 = vmul.f32 -1.442695, %v2764_v30 }
0x2834   :  { %v3916_v24 = vpop.eup %3915 }
0x2835   :  { %2822 = vrot.lane.b32.xlu1 %v3916_v24, %s4127_s8 }
0x2842   :  { %v2806_v50 = vpop.f32.mrb[80].mxu1 }
0x2843   :  { %v2812_v33 = vadd.f32 %v2806_v50, %v4989_v41  ;;  %v3594_v18 = vpop.f32.mrb[81].mxu1 }
0x2844   :  { %v2809_v5 = vpop.f32.mrb[82].mxu1 }
0x2845   :  { %3917 = vtanh.f32 %v2812_v33  ;;  %v3595_v32 = vpop.f32.mrb[83].mxu1  ;;  %v3242_v31 = vmul.f32 -1.442695, %v2812_v33 }
0x2846   :  { %3919 = vpow2.f32 %v3241_v62 }
0x284f   :  { %v3918_v51 = vpop.eup %3917 }
0x2850   :  { %2848 = vrot.lane.b32.xlu0 %v3918_v51, %s4127_s8  ;;  %v3920_v29 = vpop.eup %3919 }
0x2851   :  { %v2816_v8 = vadd.f32 1.0, %v3920_v29 }
0x2853   :  { %3921 = vrcp.f32 %v2816_v8 }
0x2854   :  { %3923 = vpow2.f32 %v3242_v31 }
0x285d   :  { %v3922_v39 = vpop.eup %3921 }
0x285e   :  { %v3924_v41 = vpop.eup %3923  ;;  %v2820_v26 = vmul.f32 %v3922_v39, %v5351_v20 }
0x285f   :  { %v2842_v16 = vadd.f32 1.0, %v3924_v41 }
0x2861   :  { %3925 = vrcp.f32 %v2842_v16  ;;  %v3690_v16 = vld [vmem:[%s5439_s10 + $0x18] sm:$0xff]  }
0x286b   :  { %v3926_v27 = vpop.eup %3925 }
0x286c   :  { %v2846_v12 = vmul.f32 %v3926_v27, %v5359_v1 }
0x28a7   :  { %v2823_v34 = vpop.permute.xlu1 %2822 }
0x28a8   :  { %v2825_v14 = vmul.f32 %v3922_v39, %v2823_v34 }
0x28aa   :  { %2827 = vrot.lane.b32.xlu1 %v2825_v14, %s4127_s8  ;;  %v3688_v14 = vld [vmem:[%s5439_s10 + $0x8] sm:$0xff]  }
0x28c2   :  { %v2849_v38 = vpop.permute.xlu0 %2848 }
0x28c3   :  { %v2851_v54 = vmul.f32 %v3926_v27, %v2849_v38 }
0x28c5   :  { %2853 = vrot.lane.b32.xlu0 %v2851_v54, %s4127_s8 }
0x291c   :  { %v2828_v55 = vpop.permute.xlu1 %2827 }
0x291d   :  { %v2830_v47 = vadd.f32 %v2828_v55, %v2820_v26 }
0x291f   :  { %3927 = vtanh.f32 %v2830_v47  ;;  %v2838_v5 = vsel %vm612_vm8, %v2830_v47, %v5351_v20 }
0x2929   :  { %v3928_v7 = vpop.eup %3927 }
0x292a   :  { %2833 = vrot.lane.b32.xlu1 %v3928_v7, %s4127_s8 }
0x2937   :  { %v2854_v10 = vpop.permute.xlu0 %2853 }
0x2938   :  { %v2856_v25 = vadd.f32 %v2854_v10, %v2846_v12 }
0x293a   :  { %3929 = vtanh.f32 %v2856_v25  ;;  %v2864_v8 = vsel %vm581_vm9, %v2856_v25, %v5359_v1 }
0x2944   :  { %v3930_v37 = vpop.eup %3929 }
0x2945   :  { %2859 = vrot.lane.b32.xlu0 %v3930_v37, %s4127_s8 }
0x299c   :  { %v2834_v3 = vpop.permute.xlu1 %2833 }
0x299d   :  { %v2836_v56 = vmul.f32 %v3922_v39, %v2834_v3  ;;  %v3253_v3 = vld [vmem:[%s5440_s11] ss:$0 sm:$0xff] }
0x299f   :  { %v5366_v11 = vsel %vm612_vm8, %v2836_v56, %v5314_v43 }
0x29a0   :  { %v2865_v59 = vpack.c.bf16 %v5366_v11, %v5366_v11 }
0x29a2   :  { %2867 = vrot.lane.b32.xlu1 %v2865_v59, %s4118_s22 }
0x29b7   :  { %v2860_v13 = vpop.permute.xlu0 %2859 }
0x29b8   :  { %v2862_v60 = vmul.f32 %v3926_v27, %v2860_v13 }
0x29ba   :  { %v5374_v28 = vsel %vm581_vm9, %v2862_v60, %v5322_v17 }
0x29bb   :  { %v2913_v61 = vpack.c.bf16 %v5374_v28, %v5374_v28 }
0x29bd   :  { %2915 = vrot.lane.b32.xlu0 %v2913_v61, %s4118_s22 }
0x2a14   :  { %v2868_v46 = vpop.permute.xlu1 %2867 }
0x2a15   :  { %3601 = vmatmul.mubr.msk.bf16.vlgmr.msra.gmra.mrb[68].mxu0 %vm192_vm1, %v2868_v46 }
0x2a16   :  { %3616 = vmatprep.mubr.msk.bf16.mxu0 %vm4126_vm0, %v4124_v0  ;;  %3613 = vmatpush3.bf16.msra.mxu0 %v3689_v6 }
0x2a17   :  { %3614 = vmatprep.subr.bf16.mxu0 %v4124_v0 }
0x2a1a   :  { %3615 = vmatpush3.bf16.msra.mxu0 %v3690_v16 }
0x2a2f   :  { %v2916_v44 = vpop.permute.xlu0 %2915 }
0x2a30   :  { %3609 = vmatmul.mubr.msk.bf16.vlgmr.msra.gmra.mrb[84].mxu1 %vm192_vm1, %v2916_v44 }
0x2a31   :  { %3624 = vmatprep.mubr.msk.bf16.mxu1 %vm4126_vm0, %v4124_v0  ;;  %3621 = vmatpush3.bf16.msra.mxu1 %v3687_v35  ;;  %vm3145_vm0 = vcmask 15360  }
0x2a32   :  { %3622 = vmatprep.subr.bf16.mxu1 %v4124_v0 }
0x2a35   :  { %3623 = vmatpush3.bf16.msra.mxu1 %v3688_v14 }
0x2ae8   :  { %v2906_v2 = vpop.f32.mrb[68].mxu0 }
0x2ae9   :  { %v2912_v63 = vadd.f32 %v2906_v2, %v5012_v4  ;;  %v3602_v23 = vpop.f32.mrb[69].mxu0 }
0x2aea   :  { %v2909_v57 = vpop.f32.mrb[70].mxu0 }
0x2aeb   :  { %3931 = vtanh.f32 %v2912_v63  ;;  %v3603_v52 = vpop.f32.mrb[71].mxu0  ;;  %v3245_v9 = vmul.f32 -1.442695, %v2912_v63 }
0x2af5   :  { %v3932_v43 = vpop.eup %3931 }
0x2af6   :  { %2970 = vrot.lane.b32.xlu1 %v3932_v43, %s4127_s8 }
0x2b03   :  { %v2954_v36 = vpop.f32.mrb[84].mxu1 }
0x2b04   :  { %v2960_v19 = vadd.f32 %v2954_v36, %v4985_v40  ;;  %v3610_v49 = vpop.f32.mrb[85].mxu1 }
0x2b05   :  { %v2957_v17 = vpop.f32.mrb[86].mxu1 }
0x2b06   :  { %3933 = vtanh.f32 %v2960_v19  ;;  %v3611_v21 = vpop.f32.mrb[87].mxu1  ;;  %v3246_v30 = vmul.f32 -1.442695, %v2960_v19 }
0x2b07   :  { %3935 = vpow2.f32 %v3245_v9 }
0x2b10   :  { %v3934_v42 = vpop.eup %3933 }
0x2b11   :  { %2995 = vrot.lane.b32.xlu0 %v3934_v42, %s4127_s8  ;;  %v3936_v4 = vpop.eup %3935 }
0x2b12   :  { %v2964_v48 = vadd.f32 1.0, %v3936_v4 }
0x2b14   :  { %3937 = vrcp.f32 %v2964_v48 }
0x2b15   :  { %3939 = vpow2.f32 %v3246_v30 }
0x2b1e   :  { %v3938_v15 = vpop.eup %3937 }
0x2b1f   :  { %v3940_v40 = vpop.eup %3939  ;;  %v2968_v32 = vmul.f32 %v3938_v15, %v2838_v5 }
0x2b20   :  { %v2989_v24 = vadd.f32 1.0, %v3940_v40 }
0x2b22   :  { %3941 = vrcp.f32 %v2989_v24 }
0x2b2c   :  { %v3942_v50 = vpop.eup %3941 }
0x2b2d   :  { %v2993_v31 = vmul.f32 %v3942_v50, %v2864_v8 }
0x2b68   :  { %v2971_v58 = vpop.permute.xlu1 %2970 }
0x2b69   :  { %v2973_v22 = vmul.f32 %v3938_v15, %v2971_v58 }
0x2b6b   :  { %2975 = vrot.lane.b32.xlu1 %v2973_v22, %s4127_s8 }
0x2b83   :  { %v2996_v33 = vpop.permute.xlu0 %2995 }
0x2b84   :  { %v2998_v18 = vmul.f32 %v3942_v50, %v2996_v33 }
0x2b86   :  { %3000 = vrot.lane.b32.xlu0 %v2998_v18, %s4127_s8 }
0x2bdd   :  { %v2976_v51 = vpop.permute.xlu1 %2975 }
0x2bde   :  { %v2978_v62 = vadd.f32 %v2976_v51, %v2968_v32 }
0x2be0   :  { %3943 = vtanh.f32 %v2978_v62 }
0x2bea   :  { %v3944_v29 = vpop.eup %3943 }
0x2beb   :  { %2981 = vrot.lane.b32.xlu1 %v3944_v29, %s4127_s8 }
0x2bf8   :  { %v3001_v39 = vpop.permute.xlu0 %3000 }
0x2bf9   :  { %v3003_v34 = vadd.f32 %v3001_v39, %v2993_v31 }
0x2bfb   :  { %3945 = vtanh.f32 %v3003_v34 }
0x2c05   :  { %v3946_v41 = vpop.eup %3945 }
0x2c06   :  { %3006 = vrot.lane.b32.xlu0 %v3946_v41, %s4127_s8 }
0x2c5d   :  { %v2982_v27 = vpop.permute.xlu1 %2981 }
0x2c5e   :  { %v2984_v38 = vmul.f32 %v3938_v15, %v2982_v27 }
0x2c60   :  { %v2985_v54 = vsel %vm454_vm5, %v2984_v38, %v5366_v11 }
0x2c61   :  { %v3019_v20 = vpack.c.bf16 %v2985_v54, %v2985_v54 }
0x2c63   :  { %3080 = vrot.lane.b32.xlu0 %v3019_v20, %s4118_s22 }
0x2c78   :  { %v3007_v26 = vpop.permute.xlu0 %3006 }
0x2c79   :  { %v3009_v55 = vmul.f32 %v3942_v50, %v3007_v26 }
0x2c7b   :  { %v3010_v47 = vsel %vm423_vm4, %v3009_v55, %v5374_v28 }
0x2c7c   :  { %v3020_v7 = vpack.c.bf16 %v3010_v47, %v3010_v47 }
0x2c7e   :  { %3022 = vrot.lane.b32.xlu1 %v3020_v7, %s4118_s22 }
0x2cd5   :  { %v3081_v0 = vpop.permute.xlu0 %3080 }
0x2cd6   :  { %3625 = vmatmul.mubr.msk.bf16.vlgmr.msra.gmra.mrb[88].mxu1 %vm192_vm1, %v3081_v0 }
0x2cf0   :  { %v3023_v1 = vpop.permute.xlu1 %3022 }
0x2cf1   :  { %3617 = vmatmul.mubr.msk.bf16.vlgmr.msra.gmra.mrb[72].mxu0 %vm192_vm1, %v3023_v1 }
0x2da9   :  { %v3131_v53 = vpop.f32.mrb[88].mxu1 }
0x2daa   :  { %v3626_v12 = vpop.f32.mrb[89].mxu1 }
0x2dab   :  { %v3134_v10 = vpop.f32.mrb[90].mxu1 }
0x2dac   :  { %v3627_v25 = vpop.f32.mrb[91].mxu1 }
0x2dc4   :  { %v3073_v37 = vpop.f32.mrb[72].mxu0 }
0x2dc5   :  { %v3132_v45 = vadd.f32 %v3131_v53, %v3073_v37  ;;  %v3618_v56 = vpop.f32.mrb[73].mxu0 }
0x2dc6   :  { %v3076_v11 = vpop.f32.mrb[74].mxu0 }
0x2dc7   :  { %v3144_v59 = vadd.f32 %v3253_v3, %v3132_v45  ;;  %v3619_v13 = vpop.f32.mrb[75].mxu0 }
0x2dc9   :  { %3146 = vst.msk [vmem:[%s5441_s12] sm:$0xff] %vm3145_vm0, %v3144_v59 }
0x2dca   :  { %3151 = vsyncpa [#allocation3], 1 }
0x2dcb   :  { %3152 = vsyncpa [#allocation5], 1 }
0x2dcc   :  { %3153 = vsyncpa [#allocation8], 1 }
0x2dcd   :  { %3154 = vsyncpa [#allocation11], 1 }

</bundles_post_ra>
